<compile_context>
chip_gen: v6e
topology: v6e:2x2x1
jax: 0.10.0
libtpu: 0.0.40
codegen_flags: <defaults>
</compile_context>

<pallas_src>
import math
from functools import partial

import jax
import jax.numpy as jnp
from jax.experimental import pallas as pl
from jax.experimental.pallas import tpu as pltpu

MM_DTYPE = jnp.bfloat16   # MXU operand dtype; statistics / accumulation in f32
OUT_DTYPE = jnp.bfloat16  # collected-layer output dtype


# ----------------------------------------------------------------------------
# In-kernel helpers (f32)
# ----------------------------------------------------------------------------
def _layernorm(x, g, b, eps=1e-5):
    # PyTorch nn.LayerNorm semantics (biased variance), f32 statistics.
    mu = jnp.mean(x, axis=-1, keepdims=True)
    d = x - mu
    var = jnp.mean(d * d, axis=-1, keepdims=True)
    return d * jax.lax.rsqrt(var + eps) * g + b


def _gelu(x):
    # tanh approximation (single EUP op); deviates slightly from exact erf GELU.
    c = 0.7978845608028654  # sqrt(2/pi)
    return 0.5 * x * (1.0 + jnp.tanh(c * (x + 0.044715 * x * x * x)))


def _divisor_block(total, target):
    """Largest divisor of `total` that is <= target (tile-size picker)."""
    if total <= target:
        return total
    best = 1
    for cand in range(1, target + 1):
        if total % cand == 0:
            best = cand
    return best


def _pick_vmem_limit():
    # Leave headroom for compiler-internal scratch:
    # v5e/v6e (128 MiB) -> ~116 MiB, v7x (64 MiB) -> ~52 MiB.
    try:
        cap = int(pltpu.get_tpu_info().vmem_capacity_bytes)
    except Exception:  # noqa: BLE001  (fall back to compiler default)
        return None
    if cap <= 16 * 1024 * 1024:
        return None
    return cap - 12 * 1024 * 1024


# ----------------------------------------------------------------------------
# Patch embed kernel: patches @ W + b + pos_embed   (grid over batch)
# ----------------------------------------------------------------------------
def patch_embed_kernel(patches_ref, pw_ref, pb_ref, pos_ref, out_ref):
    pe = jnp.dot(patches_ref[0], pw_ref[...],
                 preferred_element_type=jnp.float32)          # (N, C) f32
    out_ref[0] = pe + pb_ref[...] + pos_ref[...].astype(jnp.float32)


def patch_embed_call(patches, patch_w, patch_b, pos_embed, *, vmem_limit):
    B, N, P = patches.shape
    C = patch_w.shape[-1]
    cp = dict(dimension_semantics=("parallel",))
    if vmem_limit is not None:
        cp["vmem_limit_bytes"] = vmem_limit
    return pl.pallas_call(
        patch_embed_kernel,
        out_shape=jax.ShapeDtypeStruct((B, N, C), jnp.float32),
        grid=(B,),
        in_specs=[
            pl.BlockSpec((1, N, P), lambda b: (b, 0, 0)),
            pl.BlockSpec((P, C), lambda b: (0, 0)),
            pl.BlockSpec((1, C), lambda b: (0, 0)),
            pl.BlockSpec((N, C), lambda b: (0, 0)),
        ],
        out_specs=pl.BlockSpec((1, N, C), lambda b: (b, 0, 0)),
        compiler_params=pltpu.CompilerParams(**cp),
    )(patches, patch_w, patch_b, pos_embed)


# ----------------------------------------------------------------------------
# Fused encoder kernel: grid = (B, depth)
# ----------------------------------------------------------------------------
def encoder_kernel(x0_hbm, ln1_g, ln1_b, qkv_w, proj_w, proj_b,
                   ln2_g, ln2_b, fc1_w, fc1_b, fc2_w, fc2_b,
                   norm_g, norm_b,
                   clip_ref, xs_ref, qkv_hnd, omerge, dma_sem,
                   *, num_heads, collect_index, kv_block, hd_block):
    b = pl.program_id(0)
    d = pl.program_id(1)
    N, C = xs_ref.shape
    H = num_heads
    D = C // H
    Hd = fc1_w.shape[-1]

    # ---- first depth step: fetch embedded tokens (HBM -> activation scratch)
    @pl.when(d == 0)
    def _():
        cp = pltpu.make_async_copy(x0_hbm.at[b], xs_ref, dma_sem)
        cp.start()
        cp.wait()

    x = xs_ref[...]                                           # (N, C) f32

    # ================= attention (pre-norm, qkv_bias=False) =================
    # head_dim**-0.5 is folded into the Q columns of qkv_w at init time.
    h_ln = _layernorm(x, ln1_g[0], ln1_b[0]).astype(MM_DTYPE)
    qkv = jnp.dot(h_ln, qkv_w[0], preferred_element_type=jnp.float32)  # (N, 3C)

    # Head split via VMEM store/reload into a head-major scratch (lane slices
    # at 0 / C / 2C are 128-aligned; per-head D-wide sub-slices are staged so
    # the attention einsums below are single batched MXU contractions).
    for hh in range(H):
        qkv_hnd[0, hh] = qkv[:, hh * D:(hh + 1) * D].astype(MM_DTYPE)
        qkv_hnd[1, hh] = qkv[:, C + hh * D:C + (hh + 1) * D].astype(MM_DTYPE)
        qkv_hnd[2, hh] = qkv[:, 2 * C + hh * D:2 * C + (hh + 1) * D].astype(MM_DTYPE)

    q = qkv_hnd[0]                                            # (H, N, D) bf16

    # Flash-style online softmax over K/V tiles: nothing of size (H, N, N) is
    # ever materialized.  (kv_block == N at the toy shape -> one iteration.)
    m_i = jnp.full((H, N, 1), -jnp.inf, jnp.float32)
    l_i = jnp.zeros((H, N, 1), jnp.float32)
    acc = jnp.zeros((H, N, D), jnp.float32)
    for t in range(N // kv_block):
        lo, hi = t * kv_block, (t + 1) * kv_block
        ks = qkv_hnd[1, :, lo:hi, :]                          # (H, KT, D)
        vs = qkv_hnd[2, :, lo:hi, :]
        s = jnp.einsum('hqd,hkd->hqk', q, ks,
                       preferred_element_type=jnp.float32)    # (H, N, KT)
        m_new = jnp.maximum(m_i, jnp.max(s, axis=-1, keepdims=True))
        alpha = jnp.exp(m_i - m_new)
        p = jnp.exp(s - m_new)                                # f32 (v5e-safe)
        l_i = alpha * l_i + jnp.sum(p, axis=-1, keepdims=True)
        acc = alpha * acc + jnp.einsum('hqk,hkd->hqd', p.astype(MM_DTYPE), vs,
                                       preferred_element_type=jnp.float32)
        m_i = m_new
    o = acc * pl.reciprocal(l_i, approx=True)                 # (H, N, D) f32

    # Merge heads back into (N, C) columns (h, d order) + one proj matmul.
    for hh in range(H):
        omerge[:, hh * D:(hh + 1) * D] = o[hh].astype(MM_DTYPE)
    attn = jnp.dot(omerge[...], proj_w[0],
                   preferred_element_type=jnp.float32) + proj_b[0]
    x = x + attn

    # ================= MLP, tiled over the hidden dimension =================
    h2 = _layernorm(x, ln2_g[0], ln2_b[0]).astype(MM_DTYPE)
    mlp = jnp.zeros((N, C), jnp.float32)
    for t in range(Hd // hd_block):
        lo, hi = t * hd_block, (t + 1) * hd_block
        hid = jnp.dot(h2, fc1_w[0, :, lo:hi],
                      preferred_element_type=jnp.float32) + fc1_b[0, :, lo:hi]
        hid = _gelu(hid).astype(MM_DTYPE)
        mlp = mlp + jnp.dot(hid, fc2_w[0, lo:hi, :],
                            preferred_element_type=jnp.float32)
    x = x + mlp + fc2_b[0]
    xs_ref[...] = x                                           # carry to next layer

    # ---- fused final LayerNorm for the collected (return_index) layers ----
    is_out = d == collect_index[0]
    for c in collect_index[1:]:
        is_out = is_out | (d == c)

    @pl.when(is_out)
    def _():
        clip_ref[0, 0] = _layernorm(x, norm_g[...], norm_b[...]).astype(clip_ref.dtype)


# ----------------------------------------------------------------------------
# pallas_call wrapper for the encoder
# ----------------------------------------------------------------------------
def encoder_call(x0, params, cfg, *, vmem_limit):
    B, N, C = x0.shape
    depth = cfg["depth"]
    Hd = params["fc1_w"].shape[-1]
    H = cfg["num_heads"]
    D = C // H
    # PyTorch appends collected layers in ascending block order (the block loop
    # tests `idx in return_index`), so sort ascending here.
    collect = tuple(sorted(set(cfg["return_index"])))
    K = len(collect)

    kv_block = _divisor_block(N, 512)
    hd_block = _divisor_block(Hd, 512)

    def wspec(*s):   # depth-stacked per-layer weights, streamed over d
        return pl.BlockSpec((1,) + s, lambda b, d, s=s: (d,) + (0,) * len(s))

    def cspec(*s):   # shared params
        return pl.BlockSpec(s, lambda b, d, s=s: (0,) * len(s))

    def out_index(b, d):
        # Map depth step -> collected-layer slot; only one (1,1,N,C) block is
        # VMEM-resident at a time and each slot is written back exactly once.
        kk = jnp.int32(0)
        for c in collect:
            kk = kk + (d >= c).astype(jnp.int32)
        kk = jnp.maximum(kk - 1, 0)
        return (kk, b, 0, 0)

    grid_spec = pltpu.PrefetchScalarGridSpec(
        num_scalar_prefetch=0,
        grid=(B, depth),
        in_specs=[
            pl.BlockSpec(memory_space=pl.ANY),                # x0 stays in HBM
            wspec(1, C), wspec(1, C),                         # ln1 g, b
            wspec(C, 3 * C),                                  # qkv_w
            wspec(C, C), wspec(1, C),                         # proj w, b
            wspec(1, C), wspec(1, C),                         # ln2 g, b
            wspec(C, Hd), wspec(1, Hd),                       # fc1 w, b
            wspec(Hd, C), wspec(1, C),                        # fc2 w, b
            cspec(1, C), cspec(1, C),                         # final norm g, b
        ],
        out_specs=pl.BlockSpec((1, 1, N, C), out_index),
        scratch_shapes=[
            pltpu.VMEM((N, C), jnp.float32),                  # carried activation
            pltpu.VMEM((3, H, N, D), MM_DTYPE),               # head-major q/k/v
            pltpu.VMEM((N, C), MM_DTYPE),                     # merged attn output
            pltpu.SemaphoreType.DMA(()),                      # x0 fetch semaphore
        ],
    )

    cp = dict(dimension_semantics=("parallel", "arbitrary"))
    if vmem_limit is not None:
        cp["vmem_limit_bytes"] = vmem_limit

    kern = partial(encoder_kernel, num_heads=H, collect_index=collect,
                   kv_block=kv_block, hd_block=hd_block)
    return pl.pallas_call(
        kern,
        out_shape=jax.ShapeDtypeStruct((K, B, N, C), OUT_DTYPE),
        grid_spec=grid_spec,
        compiler_params=pltpu.CompilerParams(**cp),
    )(x0,
      params["ln1_g"], params["ln1_b"], params["qkv_w"],
      params["proj_w"], params["proj_b"],
      params["ln2_g"], params["ln2_b"],
      params["fc1_w"], params["fc1_b"], params["fc2_w"], params["fc2_b"],
      params["norm_g"], params["norm_b"])


# ----------------------------------------------------------------------------
# Parameter init (deterministic, synthetic) + forward
# ----------------------------------------------------------------------------
def _xavier_uniform(key, shape, dtype=jnp.float32):
    fan_in, fan_out = shape[-2], shape[-1]
    bound = math.sqrt(6.0 / (fan_in + fan_out))
    return jax.random.uniform(key, shape, jnp.float32, -bound, bound).astype(dtype)


def init_params(key, cfg):
    C = cfg["embed_dim"]
    H = cfg["num_heads"]
    D = C // H
    Hd = int(C * cfg["mlp_ratio"])
    P = cfg["in_chans"] * cfg["tubelet_size"] * cfg["patch_size"] ** 2
    N = cfg["num_patches"]
    depth = cfg["depth"]
    k = jax.random.split(key, 6)
    kq, kpr, k1, k2 = jax.random.split(k[2], 4)

    qkv_w = _xavier_uniform(kq, (depth, C, 3 * C), jnp.float32)
    # Fold the attention scale (head_dim**-0.5) into the Q columns (exact,
    # since qkv_bias=False) -> removes a VPU pass over (H, N, D) per layer.
    qkv_w = qkv_w.at[..., :C].multiply(D ** -0.5)

    return {
        # Conv3d weight flattened to (P, C); matmul weights stored bf16 for MXU.
        "patch_w": (0.02 * jax.random.normal(k[0], (P, C), jnp.float32)).astype(MM_DTYPE),
        "patch_b": jnp.zeros((1, C), jnp.float32),
        # learnable pos_embed, trunc_normal(std=0.02); stored bf16.
        "pos_embed": (0.02 * jax.random.truncated_normal(
            k[1], -1.0, 1.0, (N, C))).astype(MM_DTYPE),
        "ln1_g": jnp.ones((depth, 1, C), jnp.float32),
        "ln1_b": jnp.zeros((depth, 1, C), jnp.float32),
        "qkv_w": qkv_w.astype(MM_DTYPE),                      # qkv_bias=False
        "proj_w": _xavier_uniform(kpr, (depth, C, C), MM_DTYPE),
        "proj_b": jnp.zeros((depth, 1, C), jnp.float32),
        "ln2_g": jnp.ones((depth, 1, C), jnp.float32),
        "ln2_b": jnp.zeros((depth, 1, C), jnp.float32),
        "fc1_w": _xavier_uniform(k1, (depth, C, Hd), MM_DTYPE),
        "fc1_b": jnp.zeros((depth, 1, Hd), jnp.float32),
        "fc2_w": _xavier_uniform(k2, (depth, Hd, C), MM_DTYPE),
        "fc2_b": jnp.zeros((depth, 1, C), jnp.float32),
        "norm_g": jnp.ones((1, C), jnp.float32),
        "norm_b": jnp.zeros((1, C), jnp.float32),
    }


def forward(x, params, cfg):
    """PretrainVisionTransformerEncoder.forward -> x_clip_vis: (K, B, N, C)."""
    B, Cin, T, Hh, Ww = x.shape
    ps, tub = cfg["patch_size"], cfg["tubelet_size"]
    Tp, Hp, Wp = T // tub, Hh // ps, Ww // ps

    # Conv3d(kernel==stride) lowered to patch extraction:
    # outer order (t', h', w'), inner order (c, t, h, w) -- matches
    # proj(x).flatten(2).transpose(1, 2).
    xr = x.reshape(B, Cin, Tp, tub, Hp, ps, Wp, ps)
    xr = jnp.transpose(xr, (0, 2, 4, 6, 1, 3, 5, 7))
    patches = xr.reshape(B, Tp * Hp * Wp, Cin * tub * ps * ps).astype(MM_DTYPE)
    # TODO(synk): fold this patchification into the patch-embed DMA to avoid the
    # extra HBM pass over the input.

    vmem_limit = cfg.get("_vmem_limit")
    x0 = patch_embed_call(patches, params["patch_w"], params["patch_b"],
                          params["pos_embed"], vmem_limit=vmem_limit)
    # head is nn.Identity() since num_classes == 0.
    return encoder_call(x0, params, cfg, vmem_limit=vmem_limit)


# ----------------------------------------------------------------------------
if __name__ == "__main__":
    cfg = dict(
        img_size=32, patch_size=8, in_chans=3, embed_dim=128, depth=2,
        num_heads=4, mlp_ratio=4.0, num_frames=2, tubelet_size=1,
        clip_return_layer=2, clip_student_return_interval=1,
    )
    cfg["num_patches"] = (cfg["img_size"] // cfg["patch_size"]) ** 2 * \
                         (cfg["num_frames"] // cfg["tubelet_size"])
    cfg["return_index"] = [cfg["depth"] - i * cfg["clip_student_return_interval"] - 1
                           for i in range(cfg["clip_return_layer"])]
    cfg["_vmem_limit"] = _pick_vmem_limit()

    key = jax.random.PRNGKey(0)
    kx, kp = jax.random.split(key)
    # NCTHW input: (B, C, T, H, W)
    x = jax.random.normal(kx, (2, cfg["in_chans"], cfg["num_frames"],
                               cfg["img_size"], cfg["img_size"]), jnp.float32)
    params = init_params(kp, cfg)

    out = jax.jit(partial(forward, cfg=cfg))(x, params)
    jax.block_until_ready(out)

    K = len(set(cfg["return_index"]))
    assert out.shape == (K, 2, cfg["num_patches"], cfg["embed_dim"]), out.shape
    assert bool(jnp.all(jnp.isfinite(out.astype(jnp.float32))))
    print("KERNEL_OK")
</pallas_src>

<mosaic_0001>
module attributes {stable_mosaic.version = 11 : i64} {
  func.func @patch_embed_kernel(%arg0: i32, %arg1: memref<1x32x192xbf16, #tpu.memory_space<vmem>>, %arg2: memref<192x128xbf16, #tpu.memory_space<vmem>>, %arg3: memref<1x128xf32, #tpu.memory_space<vmem>>, %arg4: memref<32x128xbf16, #tpu.memory_space<vmem>>, %arg5: memref<1x32x128xf32, #tpu.memory_space<vmem>>) attributes {dimension_semantics = [#tpu.dimension_semantics<parallel>], iteration_bounds = array<i64: 2>, scalar_prefetch = 0 : i64, scratch_operands = 0 : i64, tpu.core_type = #tpu.core_type<tc>, window_params = [{transform_indices = @transform_0, window_bounds = array<i64: 1, 32, 192>}, {pipeline_mode = #tpu.pipeline_mode<synchronous>, transform_indices = @transform_1, window_bounds = array<i64: 192, 128>}, {pipeline_mode = #tpu.pipeline_mode<synchronous>, transform_indices = @transform_2, window_bounds = array<i64: 1, 128>}, {pipeline_mode = #tpu.pipeline_mode<synchronous>, transform_indices = @transform_3, window_bounds = array<i64: 32, 128>}, {transform_indices = @transform_4, window_bounds = array<i64: 1, 32, 128>}]} {
    %c0 = arith.constant 0 : index
    %c0_0 = arith.constant 0 : index
    %c0_1 = arith.constant 0 : index
    %0 = vector.load %arg1[%c0, %c0_0, %c0_1] : memref<1x32x192xbf16, #tpu.memory_space<vmem>>, vector<1x32x192xbf16>
    %1 = vector.shape_cast %0 : vector<1x32x192xbf16> to vector<32x192xbf16>
    %c0_2 = arith.constant 0 : index
    %c0_3 = arith.constant 0 : index
    %2 = vector.load %arg2[%c0_2, %c0_3] : memref<192x128xbf16, #tpu.memory_space<vmem>>, vector<192x128xbf16>
    %cst = arith.constant dense<0.000000e+00> : vector<32x128xf32>
    %3 = tpu.matmul %1, %2, %cst {dimension_numbers = #tpu.dot_dimension_numbers<[1], [0], [0], [1], [0, 0, 1, 1], [], []>} : vector<32x192xbf16>, vector<192x128xbf16>, vector<32x128xf32> -> vector<32x128xf32>
    %c0_4 = arith.constant 0 : index
    %c0_5 = arith.constant 0 : index
    %4 = vector.load %arg3[%c0_4, %c0_5] : memref<1x128xf32, #tpu.memory_space<vmem>>, vector<1x128xf32>
    %5 = vector.broadcast %4 : vector<1x128xf32> to vector<32x128xf32>
    %6 = arith.addf %3, %5 : vector<32x128xf32>
    %c0_6 = arith.constant 0 : index
    %c0_7 = arith.constant 0 : index
    %7 = vector.load %arg4[%c0_6, %c0_7] : memref<32x128xbf16, #tpu.memory_space<vmem>>, vector<32x128xbf16>
    %8 = arith.extf %7 : vector<32x128xbf16> to vector<32x128xf32>
    %9 = arith.addf %6, %8 : vector<32x128xf32>
    %c0_8 = arith.constant 0 : index
    %c0_9 = arith.constant 0 : index
    %c0_10 = arith.constant 0 : index
    %10 = vector.load %arg5[%c0_8, %c0_9, %c0_10] : memref<1x32x128xf32, #tpu.memory_space<vmem>>, vector<1x32x128xf32>
    %11 = vector.shape_cast %10 : vector<1x32x128xf32> to vector<32x128xf32>
    %12 = vector.shape_cast %9 : vector<32x128xf32> to vector<1x32x128xf32>
    tpu.vector_store %arg5[%c0_8, %c0_9, %c0_10], %12 {strides = array<i32>} : memref<1x32x128xf32, #tpu.memory_space<vmem>>, vector<1x32x128xf32>,
    return
  }
  func.func @transform_0(%arg0: i32) -> (i32, i32, i32) {
    %c0_i32 = arith.constant 0 : i32
    %c0_i32_0 = arith.constant 0 : i32
    %c0_i32_1 = arith.constant 0 : i32
    return %arg0, %c0_i32, %c0_i32_0 : i32, i32, i32
  }
  func.func @transform_1(%arg0: i32) -> (i32, i32) {
    %c0_i32 = arith.constant 0 : i32
    %c0_i32_0 = arith.constant 0 : i32
    %c0_i32_1 = arith.constant 0 : i32
    return %c0_i32, %c0_i32_0 : i32, i32
  }
  func.func @transform_2(%arg0: i32) -> (i32, i32) {
    %c0_i32 = arith.constant 0 : i32
    %c0_i32_0 = arith.constant 0 : i32
    %c0_i32_1 = arith.constant 0 : i32
    return %c0_i32, %c0_i32_0 : i32, i32
  }
  func.func @transform_3(%arg0: i32) -> (i32, i32) {
    %c0_i32 = arith.constant 0 : i32
    %c0_i32_0 = arith.constant 0 : i32
    %c0_i32_1 = arith.constant 0 : i32
    return %c0_i32, %c0_i32_0 : i32, i32
  }
  func.func @transform_4(%arg0: i32) -> (i32, i32, i32) {
    %c0_i32 = arith.constant 0 : i32
    %c0_i32_0 = arith.constant 0 : i32
    %c0_i32_1 = arith.constant 0 : i32
    return %arg0, %c0_i32, %c0_i32_0 : i32, i32, i32
  }
}

module attributes {stable_mosaic.version = 11 : i64} {
  func.func @encoder_kernel(%arg0: i32, %arg1: i32, %arg2: memref<2x32x128xf32, #tpu.memory_space<any>>, %arg3: memref<1x1x128xf32, #tpu.memory_space<vmem>>, %arg4: memref<1x1x128xf32, #tpu.memory_space<vmem>>, %arg5: memref<1x128x384xbf16, #tpu.memory_space<vmem>>, %arg6: memref<1x128x128xbf16, #tpu.memory_space<vmem>>, %arg7: memref<1x1x128xf32, #tpu.memory_space<vmem>>, %arg8: memref<1x1x128xf32, #tpu.memory_space<vmem>>, %arg9: memref<1x1x128xf32, #tpu.memory_space<vmem>>, %arg10: memref<1x128x512xbf16, #tpu.memory_space<vmem>>, %arg11: memref<1x1x512xf32, #tpu.memory_space<vmem>>, %arg12: memref<1x512x128xbf16, #tpu.memory_space<vmem>>, %arg13: memref<1x1x128xf32, #tpu.memory_space<vmem>>, %arg14: memref<1x128xf32, #tpu.memory_space<vmem>>, %arg15: memref<1x128xf32, #tpu.memory_space<vmem>>, %arg16: memref<1x1x32x128xbf16, #tpu.memory_space<vmem>>, %arg17: memref<32x128xf32, #tpu.memory_space<vmem>>, %arg18: memref<3x4x32x32xbf16, #tpu.memory_space<vmem>>, %arg19: memref<32x128xbf16, #tpu.memory_space<vmem>>, %arg20: memref<!tpu.dma_semaphore, #tpu.memory_space<semaphore_mem>>) attributes {dimension_semantics = [#tpu.dimension_semantics<parallel>, #tpu.dimension_semantics<arbitrary>], iteration_bounds = array<i64: 2, 2>, scalar_prefetch = 0 : i64, scratch_operands = 4 : i64, tpu.core_type = #tpu.core_type<tc>, window_params = [{}, {transform_indices = @transform_1, window_bounds = array<i64: 1, 1, 128>}, {transform_indices = @transform_2, window_bounds = array<i64: 1, 1, 128>}, {transform_indices = @transform_3, window_bounds = array<i64: 1, 128, 384>}, {transform_indices = @transform_4, window_bounds = array<i64: 1, 128, 128>}, {transform_indices = @transform_5, window_bounds = array<i64: 1, 1, 128>}, {transform_indices = @transform_6, window_bounds = array<i64: 1, 1, 128>}, {transform_indices = @transform_7, window_bounds = array<i64: 1, 1, 128>}, {transform_indices = @transform_8, window_bounds = array<i64: 1, 128, 512>}, {transform_indices = @transform_9, window_bounds = array<i64: 1, 1, 512>}, {transform_indices = @transform_10, window_bounds = array<i64: 1, 512, 128>}, {transform_indices = @transform_11, window_bounds = array<i64: 1, 1, 128>}, {pipeline_mode = #tpu.pipeline_mode<synchronous>, transform_indices = @transform_12, window_bounds = array<i64: 1, 128>}, {pipeline_mode = #tpu.pipeline_mode<synchronous>, transform_indices = @transform_13, window_bounds = array<i64: 1, 128>}, {transform_indices = @transform_14, window_bounds = array<i64: 1, 1, 32, 128>}]} {
    %c0_i32 = arith.constant 0 : i32
    %0 = arith.cmpi eq, %arg1, %c0_i32 : i32
    %1 = arith.extui %0 : i1 to i32
    %c0_i32_0 = arith.constant 0 : i32
    %2 = arith.cmpi ne, %1, %c0_i32_0 : i32
    scf.if %2 {
      %c0_i32_128 = arith.constant 0 : i32
      %c0_i32_129 = arith.constant 0 : i32
      %209 = tpu.memref_slice %arg2[%arg0, %c0_i32_128, %c0_i32_129] : memref<2x32x128xf32, #tpu.memory_space<any>> -> memref<1x32x128xf32, #tpu.memory_space<any>>
      %210 = tpu.memref_squeeze %209 : memref<1x32x128xf32, #tpu.memory_space<any>> -> memref<32x128xf32, #tpu.memory_space<any>>
      tpu.enqueue_dma source(%210 : memref<32x128xf32, #tpu.memory_space<any>>) target(%arg17 : memref<32x128xf32, #tpu.memory_space<vmem>>) target_semaphore(%arg20 : memref<!tpu.dma_semaphore, #tpu.memory_space<semaphore_mem>>)
      %c0_i32_130 = arith.constant 0 : i32
      %c0_i32_131 = arith.constant 0 : i32
      %211 = tpu.memref_slice %arg2[%arg0, %c0_i32_130, %c0_i32_131] : memref<2x32x128xf32, #tpu.memory_space<any>> -> memref<1x32x128xf32, #tpu.memory_space<any>>
      %212 = tpu.memref_squeeze %211 : memref<1x32x128xf32, #tpu.memory_space<any>> -> memref<32x128xf32, #tpu.memory_space<any>>
      tpu.wait_dma2 semaphore(%arg20 : memref<!tpu.dma_semaphore, #tpu.memory_space<semaphore_mem>>) src(%212 : memref<32x128xf32, #tpu.memory_space<any>>) dst(%arg17 : memref<32x128xf32, #tpu.memory_space<vmem>>)
    } else {
    }
    %c0 = arith.constant 0 : index
    %c0_1 = arith.constant 0 : index
    %3 = vector.load %arg17[%c0, %c0_1] : memref<32x128xf32, #tpu.memory_space<vmem>>, vector<32x128xf32>
    %c0_2 = arith.constant 0 : index
    %c0_3 = arith.constant 0 : index
    %c0_4 = arith.constant 0 : index
    %4 = vector.load %arg3[%c0_2, %c0_3, %c0_4] : memref<1x1x128xf32, #tpu.memory_space<vmem>>, vector<1x1x128xf32>
    %5 = vector.shape_cast %4 : vector<1x1x128xf32> to vector<1x128xf32>
    %c0_5 = arith.constant 0 : index
    %c0_6 = arith.constant 0 : index
    %c0_7 = arith.constant 0 : index
    %6 = vector.load %arg4[%c0_5, %c0_6, %c0_7] : memref<1x1x128xf32, #tpu.memory_space<vmem>>, vector<1x1x128xf32>
    %7 = vector.shape_cast %6 : vector<1x1x128xf32> to vector<1x128xf32>
    %cst = arith.constant dense<0.000000e+00> : vector<32xf32>
    %8 = vector.multi_reduction <add>, %3, %cst [1] : vector<32x128xf32> to vector<32xf32>
    %9 = vector.shape_cast %8 : vector<32xf32> to vector<32x1xf32>
    %cst_8 = arith.constant 1.280000e+02 : f32
    %10 = vector.broadcast %cst_8 : f32 to vector<32x1xf32>
    %11 = arith.divf %9, %10 : vector<32x1xf32>
    %12 = vector.broadcast %11 : vector<32x1xf32> to vector<32x128xf32>
    %13 = arith.subf %3, %12 : vector<32x128xf32>
    %14 = arith.mulf %13, %13 : vector<32x128xf32>
    %cst_9 = arith.constant dense<0.000000e+00> : vector<32xf32>
    %15 = vector.multi_reduction <add>, %14, %cst_9 [1] : vector<32x128xf32> to vector<32xf32>
    %16 = vector.shape_cast %15 : vector<32xf32> to vector<32x1xf32>
    %cst_10 = arith.constant 1.280000e+02 : f32
    %17 = vector.broadcast %cst_10 : f32 to vector<32x1xf32>
    %18 = arith.divf %16, %17 : vector<32x1xf32>
    %cst_11 = arith.constant 9.99999974E-6 : f32
    %19 = vector.broadcast %cst_11 : f32 to vector<32x1xf32>
    %20 = arith.addf %18, %19 : vector<32x1xf32>
    %21 = math.rsqrt %20 : vector<32x1xf32>
    %22 = vector.broadcast %21 : vector<32x1xf32> to vector<32x128xf32>
    %23 = arith.mulf %13, %22 : vector<32x128xf32>
    %24 = vector.broadcast %5 : vector<1x128xf32> to vector<32x128xf32>
    %25 = arith.mulf %23, %24 : vector<32x128xf32>
    %26 = vector.broadcast %7 : vector<1x128xf32> to vector<32x128xf32>
    %27 = arith.addf %25, %26 : vector<32x128xf32>
    %28 = arith.truncf %27 : vector<32x128xf32> to vector<32x128xbf16>
    %c0_12 = arith.constant 0 : index
    %c0_13 = arith.constant 0 : index
    %c0_14 = arith.constant 0 : index
    %29 = vector.load %arg5[%c0_12, %c0_13, %c0_14] : memref<1x128x384xbf16, #tpu.memory_space<vmem>>, vector<1x128x384xbf16>
    %30 = vector.shape_cast %29 : vector<1x128x384xbf16> to vector<128x384xbf16>
    %cst_15 = arith.constant dense<0.000000e+00> : vector<32x384xf32>
    %31 = tpu.matmul %28, %30, %cst_15 {dimension_numbers = #tpu.dot_dimension_numbers<[1], [0], [0], [1], [0, 0, 1, 1], [], []>} : vector<32x128xbf16>, vector<128x384xbf16>, vector<32x384xf32> -> vector<32x384xf32>
    %32 = vector.extract_strided_slice %31 {offsets = [0, 0], sizes = [32, 32], strides = [1, 1]} : vector<32x384xf32> to vector<32x32xf32>
    %33 = arith.truncf %32 : vector<32x32xf32> to vector<32x32xbf16>
    %c0_16 = arith.constant 0 : index
    %c0_17 = arith.constant 0 : index
    %c0_18 = arith.constant 0 : index
    %c0_19 = arith.constant 0 : index
    %34 = vector.load %arg18[%c0_16, %c0_17, %c0_18, %c0_19] : memref<3x4x32x32xbf16, #tpu.memory_space<vmem>>, vector<1x1x32x32xbf16>
    %35 = vector.shape_cast %34 : vector<1x1x32x32xbf16> to vector<32x32xbf16>
    %36 = vector.shape_cast %33 : vector<32x32xbf16> to vector<1x1x32x32xbf16>
    tpu.vector_store %arg18[%c0_16, %c0_17, %c0_18, %c0_19], %36 {strides = array<i32>} : memref<3x4x32x32xbf16, #tpu.memory_space<vmem>>, vector<1x1x32x32xbf16>,
    %37 = vector.extract_strided_slice %31 {offsets = [0, 128], sizes = [32, 32], strides = [1, 1]} : vector<32x384xf32> to vector<32x32xf32>
    %38 = arith.truncf %37 : vector<32x32xf32> to vector<32x32xbf16>
    %c1 = arith.constant 1 : index
    %c0_20 = arith.constant 0 : index
    %c0_21 = arith.constant 0 : index
    %c0_22 = arith.constant 0 : index
    %39 = vector.load %arg18[%c1, %c0_20, %c0_21, %c0_22] : memref<3x4x32x32xbf16, #tpu.memory_space<vmem>>, vector<1x1x32x32xbf16>
    %40 = vector.shape_cast %39 : vector<1x1x32x32xbf16> to vector<32x32xbf16>
    %41 = vector.shape_cast %38 : vector<32x32xbf16> to vector<1x1x32x32xbf16>
    tpu.vector_store %arg18[%c1, %c0_20, %c0_21, %c0_22], %41 {strides = array<i32>} : memref<3x4x32x32xbf16, #tpu.memory_space<vmem>>, vector<1x1x32x32xbf16>,
    %42 = vector.extract_strided_slice %31 {offsets = [0, 256], sizes = [32, 32], strides = [1, 1]} : vector<32x384xf32> to vector<32x32xf32>
    %43 = arith.truncf %42 : vector<32x32xf32> to vector<32x32xbf16>
    %c2 = arith.constant 2 : index
    %c0_23 = arith.constant 0 : index
    %c0_24 = arith.constant 0 : index
    %c0_25 = arith.constant 0 : index
    %44 = vector.load %arg18[%c2, %c0_23, %c0_24, %c0_25] : memref<3x4x32x32xbf16, #tpu.memory_space<vmem>>, vector<1x1x32x32xbf16>
    %45 = vector.shape_cast %44 : vector<1x1x32x32xbf16> to vector<32x32xbf16>
    %46 = vector.shape_cast %43 : vector<32x32xbf16> to vector<1x1x32x32xbf16>
    tpu.vector_store %arg18[%c2, %c0_23, %c0_24, %c0_25], %46 {strides = array<i32>} : memref<3x4x32x32xbf16, #tpu.memory_space<vmem>>, vector<1x1x32x32xbf16>,
    %47 = vector.extract_strided_slice %31 {offsets = [0, 32], sizes = [32, 32], strides = [1, 1]} : vector<32x384xf32> to vector<32x32xf32>
    %48 = arith.truncf %47 : vector<32x32xf32> to vector<32x32xbf16>
    %c0_26 = arith.constant 0 : index
    %c1_27 = arith.constant 1 : index
    %c0_28 = arith.constant 0 : index
    %c0_29 = arith.constant 0 : index
    %49 = vector.load %arg18[%c0_26, %c1_27, %c0_28, %c0_29] : memref<3x4x32x32xbf16, #tpu.memory_space<vmem>>, vector<1x1x32x32xbf16>
    %50 = vector.shape_cast %49 : vector<1x1x32x32xbf16> to vector<32x32xbf16>
    %51 = vector.shape_cast %48 : vector<32x32xbf16> to vector<1x1x32x32xbf16>
    tpu.vector_store %arg18[%c0_26, %c1_27, %c0_28, %c0_29], %51 {strides = array<i32>} : memref<3x4x32x32xbf16, #tpu.memory_space<vmem>>, vector<1x1x32x32xbf16>,
    %52 = vector.extract_strided_slice %31 {offsets = [0, 160], sizes = [32, 32], strides = [1, 1]} : vector<32x384xf32> to vector<32x32xf32>
    %53 = arith.truncf %52 : vector<32x32xf32> to vector<32x32xbf16>
    %c1_30 = arith.constant 1 : index
    %c1_31 = arith.constant 1 : index
    %c0_32 = arith.constant 0 : index
    %c0_33 = arith.constant 0 : index
    %54 = vector.load %arg18[%c1_30, %c1_31, %c0_32, %c0_33] : memref<3x4x32x32xbf16, #tpu.memory_space<vmem>>, vector<1x1x32x32xbf16>
    %55 = vector.shape_cast %54 : vector<1x1x32x32xbf16> to vector<32x32xbf16>
    %56 = vector.shape_cast %53 : vector<32x32xbf16> to vector<1x1x32x32xbf16>
    tpu.vector_store %arg18[%c1_30, %c1_31, %c0_32, %c0_33], %56 {strides = array<i32>} : memref<3x4x32x32xbf16, #tpu.memory_space<vmem>>, vector<1x1x32x32xbf16>,
    %57 = vector.extract_strided_slice %31 {offsets = [0, 288], sizes = [32, 32], strides = [1, 1]} : vector<32x384xf32> to vector<32x32xf32>
    %58 = arith.truncf %57 : vector<32x32xf32> to vector<32x32xbf16>
    %c2_34 = arith.constant 2 : index
    %c1_35 = arith.constant 1 : index
    %c0_36 = arith.constant 0 : index
    %c0_37 = arith.constant 0 : index
    %59 = vector.load %arg18[%c2_34, %c1_35, %c0_36, %c0_37] : memref<3x4x32x32xbf16, #tpu.memory_space<vmem>>, vector<1x1x32x32xbf16>
    %60 = vector.shape_cast %59 : vector<1x1x32x32xbf16> to vector<32x32xbf16>
    %61 = vector.shape_cast %58 : vector<32x32xbf16> to vector<1x1x32x32xbf16>
    tpu.vector_store %arg18[%c2_34, %c1_35, %c0_36, %c0_37], %61 {strides = array<i32>} : memref<3x4x32x32xbf16, #tpu.memory_space<vmem>>, vector<1x1x32x32xbf16>,
    %62 = vector.extract_strided_slice %31 {offsets = [0, 64], sizes = [32, 32], strides = [1, 1]} : vector<32x384xf32> to vector<32x32xf32>
    %63 = arith.truncf %62 : vector<32x32xf32> to vector<32x32xbf16>
    %c0_38 = arith.constant 0 : index
    %c2_39 = arith.constant 2 : index
    %c0_40 = arith.constant 0 : index
    %c0_41 = arith.constant 0 : index
    %64 = vector.load %arg18[%c0_38, %c2_39, %c0_40, %c0_41] : memref<3x4x32x32xbf16, #tpu.memory_space<vmem>>, vector<1x1x32x32xbf16>
    %65 = vector.shape_cast %64 : vector<1x1x32x32xbf16> to vector<32x32xbf16>
    %66 = vector.shape_cast %63 : vector<32x32xbf16> to vector<1x1x32x32xbf16>
    tpu.vector_store %arg18[%c0_38, %c2_39, %c0_40, %c0_41], %66 {strides = array<i32>} : memref<3x4x32x32xbf16, #tpu.memory_space<vmem>>, vector<1x1x32x32xbf16>,
    %67 = vector.extract_strided_slice %31 {offsets = [0, 192], sizes = [32, 32], strides = [1, 1]} : vector<32x384xf32> to vector<32x32xf32>
    %68 = arith.truncf %67 : vector<32x32xf32> to vector<32x32xbf16>
    %c1_42 = arith.constant 1 : index
    %c2_43 = arith.constant 2 : index
    %c0_44 = arith.constant 0 : index
    %c0_45 = arith.constant 0 : index
    %69 = vector.load %arg18[%c1_42, %c2_43, %c0_44, %c0_45] : memref<3x4x32x32xbf16, #tpu.memory_space<vmem>>, vector<1x1x32x32xbf16>
    %70 = vector.shape_cast %69 : vector<1x1x32x32xbf16> to vector<32x32xbf16>
    %71 = vector.shape_cast %68 : vector<32x32xbf16> to vector<1x1x32x32xbf16>
    tpu.vector_store %arg18[%c1_42, %c2_43, %c0_44, %c0_45], %71 {strides = array<i32>} : memref<3x4x32x32xbf16, #tpu.memory_space<vmem>>, vector<1x1x32x32xbf16>,
    %72 = vector.extract_strided_slice %31 {offsets = [0, 320], sizes = [32, 32], strides = [1, 1]} : vector<32x384xf32> to vector<32x32xf32>
    %73 = arith.truncf %72 : vector<32x32xf32> to vector<32x32xbf16>
    %c2_46 = arith.constant 2 : index
    %c2_47 = arith.constant 2 : index
    %c0_48 = arith.constant 0 : index
    %c0_49 = arith.constant 0 : index
    %74 = vector.load %arg18[%c2_46, %c2_47, %c0_48, %c0_49] : memref<3x4x32x32xbf16, #tpu.memory_space<vmem>>, vector<1x1x32x32xbf16>
    %75 = vector.shape_cast %74 : vector<1x1x32x32xbf16> to vector<32x32xbf16>
    %76 = vector.shape_cast %73 : vector<32x32xbf16> to vector<1x1x32x32xbf16>
    tpu.vector_store %arg18[%c2_46, %c2_47, %c0_48, %c0_49], %76 {strides = array<i32>} : memref<3x4x32x32xbf16, #tpu.memory_space<vmem>>, vector<1x1x32x32xbf16>,
    %77 = vector.extract_strided_slice %31 {offsets = [0, 96], sizes = [32, 32], strides = [1, 1]} : vector<32x384xf32> to vector<32x32xf32>
    %78 = arith.truncf %77 : vector<32x32xf32> to vector<32x32xbf16>
    %c0_50 = arith.constant 0 : index
    %c3 = arith.constant 3 : index
    %c0_51 = arith.constant 0 : index
    %c0_52 = arith.constant 0 : index
    %79 = vector.load %arg18[%c0_50, %c3, %c0_51, %c0_52] : memref<3x4x32x32xbf16, #tpu.memory_space<vmem>>, vector<1x1x32x32xbf16>
    %80 = vector.shape_cast %79 : vector<1x1x32x32xbf16> to vector<32x32xbf16>
    %81 = vector.shape_cast %78 : vector<32x32xbf16> to vector<1x1x32x32xbf16>
    tpu.vector_store %arg18[%c0_50, %c3, %c0_51, %c0_52], %81 {strides = array<i32>} : memref<3x4x32x32xbf16, #tpu.memory_space<vmem>>, vector<1x1x32x32xbf16>,
    %82 = vector.extract_strided_slice %31 {offsets = [0, 224], sizes = [32, 32], strides = [1, 1]} : vector<32x384xf32> to vector<32x32xf32>
    %83 = arith.truncf %82 : vector<32x32xf32> to vector<32x32xbf16>
    %c1_53 = arith.constant 1 : index
    %c3_54 = arith.constant 3 : index
    %c0_55 = arith.constant 0 : index
    %c0_56 = arith.constant 0 : index
    %84 = vector.load %arg18[%c1_53, %c3_54, %c0_55, %c0_56] : memref<3x4x32x32xbf16, #tpu.memory_space<vmem>>, vector<1x1x32x32xbf16>
    %85 = vector.shape_cast %84 : vector<1x1x32x32xbf16> to vector<32x32xbf16>
    %86 = vector.shape_cast %83 : vector<32x32xbf16> to vector<1x1x32x32xbf16>
    tpu.vector_store %arg18[%c1_53, %c3_54, %c0_55, %c0_56], %86 {strides = array<i32>} : memref<3x4x32x32xbf16, #tpu.memory_space<vmem>>, vector<1x1x32x32xbf16>,
    %87 = vector.extract_strided_slice %31 {offsets = [0, 352], sizes = [32, 32], strides = [1, 1]} : vector<32x384xf32> to vector<32x32xf32>
    %88 = arith.truncf %87 : vector<32x32xf32> to vector<32x32xbf16>
    %c2_57 = arith.constant 2 : index
    %c3_58 = arith.constant 3 : index
    %c0_59 = arith.constant 0 : index
    %c0_60 = arith.constant 0 : index
    %89 = vector.load %arg18[%c2_57, %c3_58, %c0_59, %c0_60] : memref<3x4x32x32xbf16, #tpu.memory_space<vmem>>, vector<1x1x32x32xbf16>
    %90 = vector.shape_cast %89 : vector<1x1x32x32xbf16> to vector<32x32xbf16>
    %91 = vector.shape_cast %88 : vector<32x32xbf16> to vector<1x1x32x32xbf16>
    tpu.vector_store %arg18[%c2_57, %c3_58, %c0_59, %c0_60], %91 {strides = array<i32>} : memref<3x4x32x32xbf16, #tpu.memory_space<vmem>>, vector<1x1x32x32xbf16>,
    %c0_61 = arith.constant 0 : index
    %c0_62 = arith.constant 0 : index
    %c0_63 = arith.constant 0 : index
    %c0_64 = arith.constant 0 : index
    %92 = vector.load %arg18[%c0_61, %c0_62, %c0_63, %c0_64] : memref<3x4x32x32xbf16, #tpu.memory_space<vmem>>, vector<1x4x32x32xbf16>
    %93 = vector.shape_cast %92 : vector<1x4x32x32xbf16> to vector<4x32x32xbf16>
    %cst_65 = arith.constant 0xFF800000 : f32
    %94 = vector.broadcast %cst_65 : f32 to vector<4x32x1xf32>
    %cst_66 = arith.constant 0.000000e+00 : f32
    %95 = vector.broadcast %cst_66 : f32 to vector<4x32x1xf32>
    %cst_67 = arith.constant 0.000000e+00 : f32
    %96 = vector.broadcast %cst_67 : f32 to vector<4x32x32xf32>
    %c1_68 = arith.constant 1 : index
    %c0_69 = arith.constant 0 : index
    %c0_70 = arith.constant 0 : index
    %c0_71 = arith.constant 0 : index
    %97 = vector.load %arg18[%c1_68, %c0_69, %c0_70, %c0_71] : memref<3x4x32x32xbf16, #tpu.memory_space<vmem>>, vector<1x4x32x32xbf16>
    %98 = vector.shape_cast %97 : vector<1x4x32x32xbf16> to vector<4x32x32xbf16>
    %c2_72 = arith.constant 2 : index
    %c0_73 = arith.constant 0 : index
    %c0_74 = arith.constant 0 : index
    %c0_75 = arith.constant 0 : index
    %99 = vector.load %arg18[%c2_72, %c0_73, %c0_74, %c0_75] : memref<3x4x32x32xbf16, #tpu.memory_space<vmem>>, vector<1x4x32x32xbf16>
    %100 = vector.shape_cast %99 : vector<1x4x32x32xbf16> to vector<4x32x32xbf16>
    "tpu.trace_start"() <{level = 10 : i32, message = "hqd,hkd->hqk"}> : () -> ()
    %cst_76 = arith.constant dense<0.000000e+00> : vector<4x32x32xf32>
    %101 = tpu.matmul %93, %98, %cst_76 {dimension_numbers = #tpu.dot_dimension_numbers<[2], [2], [1], [1], [0, 0, 0, 1, 1, 1], [0], [0]>} : vector<4x32x32xbf16>, vector<4x32x32xbf16>, vector<4x32x32xf32> -> vector<4x32x32xf32>
    "tpu.trace_stop"() : () -> ()
    %cst_77 = arith.constant dense<0xFF800000> : vector<4x32xf32>
    %102 = vector.multi_reduction <maximumf>, %101, %cst_77 [2] : vector<4x32x32xf32> to vector<4x32xf32>
    %103 = vector.shape_cast %102 : vector<4x32xf32> to vector<4x32x1xf32>
    %104 = arith.maximumf %94, %103 : vector<4x32x1xf32>
    %105 = arith.subf %94, %104 : vector<4x32x1xf32>
    %106 = math.exp %105 : vector<4x32x1xf32>
    %107 = vector.broadcast %104 : vector<4x32x1xf32> to vector<4x32x32xf32>
    %108 = arith.subf %101, %107 : vector<4x32x32xf32>
    %109 = math.exp %108 : vector<4x32x32xf32>
    %110 = arith.mulf %106, %95 : vector<4x32x1xf32>
    %cst_78 = arith.constant dense<0.000000e+00> : vector<4x32xf32>
    %111 = vector.multi_reduction <add>, %109, %cst_78 [2] : vector<4x32x32xf32> to vector<4x32xf32>
    %112 = vector.shape_cast %111 : vector<4x32xf32> to vector<4x32x1xf32>
    %113 = arith.addf %110, %112 : vector<4x32x1xf32>
    %114 = vector.broadcast %106 : vector<4x32x1xf32> to vector<4x32x32xf32>
    %115 = arith.mulf %114, %96 : vector<4x32x32xf32>
    %116 = arith.truncf %109 : vector<4x32x32xf32> to vector<4x32x32xbf16>
    "tpu.trace_start"() <{level = 10 : i32, message = "hqk,hkd->hqd"}> : () -> ()
    %cst_79 = arith.constant dense<0.000000e+00> : vector<4x32x32xf32>
    %117 = tpu.matmul %116, %100, %cst_79 {dimension_numbers = #tpu.dot_dimension_numbers<[2], [1], [1], [2], [0, 0, 0, 1, 1, 2], [0], [0]>} : vector<4x32x32xbf16>, vector<4x32x32xbf16>, vector<4x32x32xf32> -> vector<4x32x32xf32>
    "tpu.trace_stop"() : () -> ()
    %118 = arith.addf %115, %117 : vector<4x32x32xf32>
    %119 = tpu.reciprocal %113 {approx = true} : vector<4x32x1xf32> -> vector<4x32x1xf32>
    %120 = vector.broadcast %119 : vector<4x32x1xf32> to vector<4x32x32xf32>
    %121 = arith.mulf %118, %120 : vector<4x32x32xf32>
    %122 = vector.extract_strided_slice %121 {offsets = [0, 0, 0], sizes = [1, 32, 32], strides = [1, 1, 1]} : vector<4x32x32xf32> to vector<1x32x32xf32>
    %123 = vector.shape_cast %122 : vector<1x32x32xf32> to vector<32x32xf32>
    %124 = arith.truncf %123 : vector<32x32xf32> to vector<32x32xbf16>
    %c0_80 = arith.constant 0 : index
    %c0_81 = arith.constant 0 : index
    %125 = vector.load %arg19[%c0_80, %c0_81] : memref<32x128xbf16, #tpu.memory_space<vmem>>, vector<32x32xbf16>
    tpu.vector_store %arg19[%c0_80, %c0_81], %124 {strides = array<i32>} : memref<32x128xbf16, #tpu.memory_space<vmem>>, vector<32x32xbf16>,
    %126 = vector.extract_strided_slice %121 {offsets = [1, 0, 0], sizes = [1, 32, 32], strides = [1, 1, 1]} : vector<4x32x32xf32> to vector<1x32x32xf32>
    %127 = vector.shape_cast %126 : vector<1x32x32xf32> to vector<32x32xf32>
    %128 = arith.truncf %127 : vector<32x32xf32> to vector<32x32xbf16>
    %c0_82 = arith.constant 0 : index
    %c32 = arith.constant 32 : index
    %129 = vector.load %arg19[%c0_82, %c32] : memref<32x128xbf16, #tpu.memory_space<vmem>>, vector<32x32xbf16>
    tpu.vector_store %arg19[%c0_82, %c32], %128 {strides = array<i32>} : memref<32x128xbf16, #tpu.memory_space<vmem>>, vector<32x32xbf16>,
    %130 = vector.extract_strided_slice %121 {offsets = [2, 0, 0], sizes = [1, 32, 32], strides = [1, 1, 1]} : vector<4x32x32xf32> to vector<1x32x32xf32>
    %131 = vector.shape_cast %130 : vector<1x32x32xf32> to vector<32x32xf32>
    %132 = arith.truncf %131 : vector<32x32xf32> to vector<32x32xbf16>
    %c0_83 = arith.constant 0 : index
    %c64 = arith.constant 64 : index
    %133 = vector.load %arg19[%c0_83, %c64] : memref<32x128xbf16, #tpu.memory_space<vmem>>, vector<32x32xbf16>
    tpu.vector_store %arg19[%c0_83, %c64], %132 {strides = array<i32>} : memref<32x128xbf16, #tpu.memory_space<vmem>>, vector<32x32xbf16>,
    %134 = vector.extract_strided_slice %121 {offsets = [3, 0, 0], sizes = [1, 32, 32], strides = [1, 1, 1]} : vector<4x32x32xf32> to vector<1x32x32xf32>
    %135 = vector.shape_cast %134 : vector<1x32x32xf32> to vector<32x32xf32>
    %136 = arith.truncf %135 : vector<32x32xf32> to vector<32x32xbf16>
    %c0_84 = arith.constant 0 : index
    %c96 = arith.constant 96 : index
    %137 = vector.load %arg19[%c0_84, %c96] : memref<32x128xbf16, #tpu.memory_space<vmem>>, vector<32x32xbf16>
    tpu.vector_store %arg19[%c0_84, %c96], %136 {strides = array<i32>} : memref<32x128xbf16, #tpu.memory_space<vmem>>, vector<32x32xbf16>,
    %c0_85 = arith.constant 0 : index
    %c0_86 = arith.constant 0 : index
    %138 = vector.load %arg19[%c0_85, %c0_86] : memref<32x128xbf16, #tpu.memory_space<vmem>>, vector<32x128xbf16>
    %c0_87 = arith.constant 0 : index
    %c0_88 = arith.constant 0 : index
    %c0_89 = arith.constant 0 : index
    %139 = vector.load %arg6[%c0_87, %c0_88, %c0_89] : memref<1x128x128xbf16, #tpu.memory_space<vmem>>, vector<1x128x128xbf16>
    %140 = vector.shape_cast %139 : vector<1x128x128xbf16> to vector<128x128xbf16>
    %cst_90 = arith.constant dense<0.000000e+00> : vector<32x128xf32>
    %141 = tpu.matmul %138, %140, %cst_90 {dimension_numbers = #tpu.dot_dimension_numbers<[1], [0], [0], [1], [0, 0, 1, 1], [], []>} : vector<32x128xbf16>, vector<128x128xbf16>, vector<32x128xf32> -> vector<32x128xf32>
    %c0_91 = arith.constant 0 : index
    %c0_92 = arith.constant 0 : index
    %c0_93 = arith.constant 0 : index
    %142 = vector.load %arg7[%c0_91, %c0_92, %c0_93] : memref<1x1x128xf32, #tpu.memory_space<vmem>>, vector<1x1x128xf32>
    %143 = vector.shape_cast %142 : vector<1x1x128xf32> to vector<1x128xf32>
    %144 = vector.broadcast %143 : vector<1x128xf32> to vector<32x128xf32>
    %145 = arith.addf %141, %144 : vector<32x128xf32>
    %146 = arith.addf %3, %145 : vector<32x128xf32>
    %c0_94 = arith.constant 0 : index
    %c0_95 = arith.constant 0 : index
    %c0_96 = arith.constant 0 : index
    %147 = vector.load %arg8[%c0_94, %c0_95, %c0_96] : memref<1x1x128xf32, #tpu.memory_space<vmem>>, vector<1x1x128xf32>
    %148 = vector.shape_cast %147 : vector<1x1x128xf32> to vector<1x128xf32>
    %c0_97 = arith.constant 0 : index
    %c0_98 = arith.constant 0 : index
    %c0_99 = arith.constant 0 : index
    %149 = vector.load %arg9[%c0_97, %c0_98, %c0_99] : memref<1x1x128xf32, #tpu.memory_space<vmem>>, vector<1x1x128xf32>
    %150 = vector.shape_cast %149 : vector<1x1x128xf32> to vector<1x128xf32>
    %cst_100 = arith.constant dense<0.000000e+00> : vector<32xf32>
    %151 = vector.multi_reduction <add>, %146, %cst_100 [1] : vector<32x128xf32> to vector<32xf32>
    %152 = vector.shape_cast %151 : vector<32xf32> to vector<32x1xf32>
    %cst_101 = arith.constant 1.280000e+02 : f32
    %153 = vector.broadcast %cst_101 : f32 to vector<32x1xf32>
    %154 = arith.divf %152, %153 : vector<32x1xf32>
    %155 = vector.broadcast %154 : vector<32x1xf32> to vector<32x128xf32>
    %156 = arith.subf %146, %155 : vector<32x128xf32>
    %157 = arith.mulf %156, %156 : vector<32x128xf32>
    %cst_102 = arith.constant dense<0.000000e+00> : vector<32xf32>
    %158 = vector.multi_reduction <add>, %157, %cst_102 [1] : vector<32x128xf32> to vector<32xf32>
    %159 = vector.shape_cast %158 : vector<32xf32> to vector<32x1xf32>
    %cst_103 = arith.constant 1.280000e+02 : f32
    %160 = vector.broadcast %cst_103 : f32 to vector<32x1xf32>
    %161 = arith.divf %159, %160 : vector<32x1xf32>
    %cst_104 = arith.constant 9.99999974E-6 : f32
    %162 = vector.broadcast %cst_104 : f32 to vector<32x1xf32>
    %163 = arith.addf %161, %162 : vector<32x1xf32>
    %164 = math.rsqrt %163 : vector<32x1xf32>
    %165 = vector.broadcast %164 : vector<32x1xf32> to vector<32x128xf32>
    %166 = arith.mulf %156, %165 : vector<32x128xf32>
    %167 = vector.broadcast %148 : vector<1x128xf32> to vector<32x128xf32>
    %168 = arith.mulf %166, %167 : vector<32x128xf32>
    %169 = vector.broadcast %150 : vector<1x128xf32> to vector<32x128xf32>
    %170 = arith.addf %168, %169 : vector<32x128xf32>
    %171 = arith.truncf %170 : vector<32x128xf32> to vector<32x128xbf16>
    %cst_105 = arith.constant 0.000000e+00 : f32
    %172 = vector.broadcast %cst_105 : f32 to vector<32x128xf32>
    %c0_106 = arith.constant 0 : index
    %c0_107 = arith.constant 0 : index
    %c0_108 = arith.constant 0 : index
    %173 = vector.load %arg10[%c0_106, %c0_107, %c0_108] : memref<1x128x512xbf16, #tpu.memory_space<vmem>>, vector<1x128x512xbf16>
    %174 = vector.shape_cast %173 : vector<1x128x512xbf16> to vector<128x512xbf16>
    %cst_109 = arith.constant dense<0.000000e+00> : vector<32x512xf32>
    %175 = tpu.matmul %171, %174, %cst_109 {dimension_numbers = #tpu.dot_dimension_numbers<[1], [0], [0], [1], [0, 0, 1, 1], [], []>} : vector<32x128xbf16>, vector<128x512xbf16>, vector<32x512xf32> -> vector<32x512xf32>
    %c0_110 = arith.constant 0 : index
    %c0_111 = arith.constant 0 : index
    %c0_112 = arith.constant 0 : index
    %176 = vector.load %arg11[%c0_110, %c0_111, %c0_112] : memref<1x1x512xf32, #tpu.memory_space<vmem>>, vector<1x1x512xf32>
    %177 = vector.shape_cast %176 : vector<1x1x512xf32> to vector<1x512xf32>
    %178 = vector.broadcast %177 : vector<1x512xf32> to vector<32x512xf32>
    %179 = arith.addf %175, %178 : vector<32x512xf32>
    %cst_113 = arith.constant 5.000000e-01 : f32
    %180 = vector.broadcast %cst_113 : f32 to vector<32x512xf32>
    %181 = arith.mulf %180, %179 : vector<32x512xf32>
    %cst_114 = arith.constant 4.471500e-02 : f32
    %182 = vector.broadcast %cst_114 : f32 to vector<32x512xf32>
    %183 = arith.mulf %182, %179 : vector<32x512xf32>
    %184 = arith.mulf %183, %179 : vector<32x512xf32>
    %185 = arith.mulf %184, %179 : vector<32x512xf32>
    %186 = arith.addf %179, %185 : vector<32x512xf32>
    %cst_115 = arith.constant 0.797884583 : f32
    %187 = vector.broadcast %cst_115 : f32 to vector<32x512xf32>
    %188 = arith.mulf %187, %186 : vector<32x512xf32>
    %189 = math.tanh %188 : vector<32x512xf32>
    %cst_116 = arith.constant 1.000000e+00 : f32
    %190 = vector.broadcast %cst_116 : f32 to vector<32x512xf32>
    %191 = arith.addf %190, %189 : vector<32x512xf32>
    %192 = arith.mulf %181, %191 : vector<32x512xf32>
    %193 = arith.truncf %192 : vector<32x512xf32> to vector<32x512xbf16>
    %c0_117 = arith.constant 0 : index
    %c0_118 = arith.constant 0 : index
    %c0_119 = arith.constant 0 : index
    %194 = vector.load %arg12[%c0_117, %c0_118, %c0_119] : memref<1x512x128xbf16, #tpu.memory_space<vmem>>, vector<1x512x128xbf16>
    %195 = vector.shape_cast %194 : vector<1x512x128xbf16> to vector<512x128xbf16>
    %cst_120 = arith.constant dense<0.000000e+00> : vector<32x128xf32>
    %196 = tpu.matmul %193, %195, %cst_120 {dimension_numbers = #tpu.dot_dimension_numbers<[1], [0], [0], [1], [0, 0, 1, 1], [], []>} : vector<32x512xbf16>, vector<512x128xbf16>, vector<32x128xf32> -> vector<32x128xf32>
    %197 = arith.addf %172, %196 : vector<32x128xf32>
    %198 = arith.addf %146, %197 : vector<32x128xf32>
    %c0_121 = arith.constant 0 : index
    %c0_122 = arith.constant 0 : index
    %c0_123 = arith.constant 0 : index
    %199 = vector.load %arg13[%c0_121, %c0_122, %c0_123] : memref<1x1x128xf32, #tpu.memory_space<vmem>>, vector<1x1x128xf32>
    %200 = vector.shape_cast %199 : vector<1x1x128xf32> to vector<1x128xf32>
    %201 = vector.broadcast %200 : vector<1x128xf32> to vector<32x128xf32>
    %202 = arith.addf %198, %201 : vector<32x128xf32>
    %c0_124 = arith.constant 0 : index
    %c0_125 = arith.constant 0 : index
    %203 = vector.load %arg17[%c0_124, %c0_125] : memref<32x128xf32, #tpu.memory_space<vmem>>, vector<32x128xf32>
    tpu.vector_store %arg17[%c0_124, %c0_125], %202 {strides = array<i32>} : memref<32x128xf32, #tpu.memory_space<vmem>>, vector<32x128xf32>,
    %c0_i32_126 = arith.constant 0 : i32
    %204 = arith.cmpi eq, %arg1, %c0_i32_126 : i32
    %c1_i32 = arith.constant 1 : i32
    %205 = arith.cmpi eq, %arg1, %c1_i32 : i32
    %206 = arith.ori %204, %205 : i1
    %207 = arith.extui %206 : i1 to i32
    %c0_i32_127 = arith.constant 0 : i32
    %208 = arith.cmpi ne, %207, %c0_i32_127 : i32
    scf.if %208 {
      %c0_128 = arith.constant 0 : index
      %c0_129 = arith.constant 0 : index
      %209 = vector.load %arg14[%c0_128, %c0_129] : memref<1x128xf32, #tpu.memory_space<vmem>>, vector<1x128xf32>
      %c0_130 = arith.constant 0 : index
      %c0_131 = arith.constant 0 : index
      %210 = vector.load %arg15[%c0_130, %c0_131] : memref<1x128xf32, #tpu.memory_space<vmem>>, vector<1x128xf32>
      %cst_132 = arith.constant dense<0.000000e+00> : vector<32xf32>
      %211 = vector.multi_reduction <add>, %202, %cst_132 [1] : vector<32x128xf32> to vector<32xf32>
      %212 = vector.shape_cast %211 : vector<32xf32> to vector<32x1xf32>
      %cst_133 = arith.constant 1.280000e+02 : f32
      %213 = vector.broadcast %cst_133 : f32 to vector<32x1xf32>
      %214 = arith.divf %212, %213 : vector<32x1xf32>
      %215 = vector.broadcast %214 : vector<32x1xf32> to vector<32x128xf32>
      %216 = arith.subf %202, %215 : vector<32x128xf32>
      %217 = arith.mulf %216, %216 : vector<32x128xf32>
      %cst_134 = arith.constant dense<0.000000e+00> : vector<32xf32>
      %218 = vector.multi_reduction <add>, %217, %cst_134 [1] : vector<32x128xf32> to vector<32xf32>
      %219 = vector.shape_cast %218 : vector<32xf32> to vector<32x1xf32>
      %cst_135 = arith.constant 1.280000e+02 : f32
      %220 = vector.broadcast %cst_135 : f32 to vector<32x1xf32>
      %221 = arith.divf %219, %220 : vector<32x1xf32>
      %cst_136 = arith.constant 9.99999974E-6 : f32
      %222 = vector.broadcast %cst_136 : f32 to vector<32x1xf32>
      %223 = arith.addf %221, %222 : vector<32x1xf32>
      %224 = math.rsqrt %223 : vector<32x1xf32>
      %225 = vector.broadcast %224 : vector<32x1xf32> to vector<32x128xf32>
      %226 = arith.mulf %216, %225 : vector<32x128xf32>
      %227 = vector.broadcast %209 : vector<1x128xf32> to vector<32x128xf32>
      %228 = arith.mulf %226, %227 : vector<32x128xf32>
      %229 = vector.broadcast %210 : vector<1x128xf32> to vector<32x128xf32>
      %230 = arith.addf %228, %229 : vector<32x128xf32>
      %231 = arith.truncf %230 : vector<32x128xf32> to vector<32x128xbf16>
      %c0_137 = arith.constant 0 : index
      %c0_138 = arith.constant 0 : index
      %c0_139 = arith.constant 0 : index
      %c0_140 = arith.constant 0 : index
      %232 = vector.load %arg16[%c0_137, %c0_138, %c0_139, %c0_140] : memref<1x1x32x128xbf16, #tpu.memory_space<vmem>>, vector<1x1x32x128xbf16>
      %233 = vector.shape_cast %232 : vector<1x1x32x128xbf16> to vector<32x128xbf16>
      %234 = vector.shape_cast %231 : vector<32x128xbf16> to vector<1x1x32x128xbf16>
      tpu.vector_store %arg16[%c0_137, %c0_138, %c0_139, %c0_140], %234 {strides = array<i32>} : memref<1x1x32x128xbf16, #tpu.memory_space<vmem>>, vector<1x1x32x128xbf16>,
    } else {
    }
    return
  }
  func.func @transform_1(%arg0: i32, %arg1: i32) -> (i32, i32, i32) {
    %c0_i32 = arith.constant 0 : i32
    %c0_i32_0 = arith.constant 0 : i32
    %c0_i32_1 = arith.constant 0 : i32
    return %arg1, %c0_i32, %c0_i32_0 : i32, i32, i32
  }
  func.func @transform_2(%arg0: i32, %arg1: i32) -> (i32, i32, i32) {
    %c0_i32 = arith.constant 0 : i32
    %c0_i32_0 = arith.constant 0 : i32
    %c0_i32_1 = arith.constant 0 : i32
    return %arg1, %c0_i32, %c0_i32_0 : i32, i32, i32
  }
  func.func @transform_3(%arg0: i32, %arg1: i32) -> (i32, i32, i32) {
    %c0_i32 = arith.constant 0 : i32
    %c0_i32_0 = arith.constant 0 : i32
    %c0_i32_1 = arith.constant 0 : i32
    return %arg1, %c0_i32, %c0_i32_0 : i32, i32, i32
  }
  func.func @transform_4(%arg0: i32, %arg1: i32) -> (i32, i32, i32) {
    %c0_i32 = arith.constant 0 : i32
    %c0_i32_0 = arith.constant 0 : i32
    %c0_i32_1 = arith.constant 0 : i32
    return %arg1, %c0_i32, %c0_i32_0 : i32, i32, i32
  }
  func.func @transform_5(%arg0: i32, %arg1: i32) -> (i32, i32, i32) {
    %c0_i32 = arith.constant 0 : i32
    %c0_i32_0 = arith.constant 0 : i32
    %c0_i32_1 = arith.constant 0 : i32
    return %arg1, %c0_i32, %c0_i32_0 : i32, i32, i32
  }
  func.func @transform_6(%arg0: i32, %arg1: i32) -> (i32, i32, i32) {
    %c0_i32 = arith.constant 0 : i32
    %c0_i32_0 = arith.constant 0 : i32
    %c0_i32_1 = arith.constant 0 : i32
    return %arg1, %c0_i32, %c0_i32_0 : i32, i32, i32
  }
  func.func @transform_7(%arg0: i32, %arg1: i32) -> (i32, i32, i32) {
    %c0_i32 = arith.constant 0 : i32
    %c0_i32_0 = arith.constant 0 : i32
    %c0_i32_1 = arith.constant 0 : i32
    return %arg1, %c0_i32, %c0_i32_0 : i32, i32, i32
  }
  func.func @transform_8(%arg0: i32, %arg1: i32) -> (i32, i32, i32) {
    %c0_i32 = arith.constant 0 : i32
    %c0_i32_0 = arith.constant 0 : i32
    %c0_i32_1 = arith.constant 0 : i32
    return %arg1, %c0_i32, %c0_i32_0 : i32, i32, i32
  }
  func.func @transform_9(%arg0: i32, %arg1: i32) -> (i32, i32, i32) {
    %c0_i32 = arith.constant 0 : i32
    %c0_i32_0 = arith.constant 0 : i32
    %c0_i32_1 = arith.constant 0 : i32
    return %arg1, %c0_i32, %c0_i32_0 : i32, i32, i32
  }
  func.func @transform_10(%arg0: i32, %arg1: i32) -> (i32, i32, i32) {
    %c0_i32 = arith.constant 0 : i32
    %c0_i32_0 = arith.constant 0 : i32
    %c0_i32_1 = arith.constant 0 : i32
    return %arg1, %c0_i32, %c0_i32_0 : i32, i32, i32
  }
  func.func @transform_11(%arg0: i32, %arg1: i32) -> (i32, i32, i32) {
    %c0_i32 = arith.constant 0 : i32
    %c0_i32_0 = arith.constant 0 : i32
    %c0_i32_1 = arith.constant 0 : i32
    return %arg1, %c0_i32, %c0_i32_0 : i32, i32, i32
  }
  func.func @transform_12(%arg0: i32, %arg1: i32) -> (i32, i32) {
    %c0_i32 = arith.constant 0 : i32
    %c0_i32_0 = arith.constant 0 : i32
    %c0_i32_1 = arith.constant 0 : i32
    return %c0_i32, %c0_i32_0 : i32, i32
  }
  func.func @transform_13(%arg0: i32, %arg1: i32) -> (i32, i32) {
    %c0_i32 = arith.constant 0 : i32
    %c0_i32_0 = arith.constant 0 : i32
    %c0_i32_1 = arith.constant 0 : i32
    return %c0_i32, %c0_i32_0 : i32, i32
  }
  func.func @transform_14(%arg0: i32, %arg1: i32) -> (i32, i32, i32, i32) {
    %c0_i32 = arith.constant 0 : i32
    %0 = arith.cmpi sge, %arg1, %c0_i32 : i32
    %1 = arith.extui %0 : i1 to i32
    %c0_i32_0 = arith.constant 0 : i32
    %2 = arith.addi %c0_i32_0, %1 : i32
    %c1_i32 = arith.constant 1 : i32
    %3 = arith.cmpi sge, %arg1, %c1_i32 : i32
    %4 = arith.extui %3 : i1 to i32
    %5 = arith.addi %2, %4 : i32
    %c1_i32_1 = arith.constant 1 : i32
    %6 = arith.subi %5, %c1_i32_1 : i32
    %c0_i32_2 = arith.constant 0 : i32
    %7 = arith.maxsi %6, %c0_i32_2 : i32
    %c0_i32_3 = arith.constant 0 : i32
    %c0_i32_4 = arith.constant 0 : i32
    %c0_i32_5 = arith.constant 0 : i32
    return %7, %arg0, %c0_i32_3, %c0_i32_4 : i32, i32, i32, i32
  }
}

</mosaic_0001>

<bundles_post_ra>
// kernel: forward.2
= control target key start
LH: loop header
LB: loop body
LE: loop exit
PB: predicated region body
PF: predicated region fallthrough
CT: control target
= control target key end

     0   :  { %s577_s15 = smov 0   ;;  %s676_s0 = inlined_call_operand.vmem [shape: bf16[2,32,192], index: 0, kind: input, shape index: {}]   ;;  %s677_s1 = inlined_call_operand.vmem [shape: bf16[192,128], index: 1, kind: input, shape index: {}]   ;;  %s678_s2 = inlined_call_operand.vmem [shape: f32[1,128], index: 2, kind: input, shape index: {}]   ;;  %s679_s3 = inlined_call_operand.vmem [shape: bf16[32,128], index: 3, kind: input, shape index: {}]   ;;  %s680_s4 = inlined_call_operand.vmem [shape: f32[2,32,128], index: 4, kind: output, shape index: {}]  }
   0x1 LB: > { %s451_s16 = sadd.s32 4294967295, %s549_s15   ;;  %p455_p0 = scmp.ge.s32.totalorder %s549_s15, 1  ;;  %s549_s15 = sphi %s577_s15, %s14_s15  }
   0x2   : > { %p162_p1 = scmp.lt.s32.totalorder %s549_s15, 3 }
   0x4   : > { %p163_p2 = pnand %p455_p0, %p162_p1 }
   0x5   : > { %p188_p3 = scmp.lt.s32.totalorder (!%p163_p2), %s451_s16, 1 }
   0x6   : > { %166 = sbr.rel (%p163_p2) target bundleno = 262 (0x106), region = 36 }
   0xb   : > { %v525_v0 = vld [vmem:[%s677_s1 + $0x38] sm:$0xff]   ;;  %v551_v1 = vmov 0   ;;  %v526_v2 = vld [vmem:[%s677_s1 + $0x30] sm:$0xff]   ;;  %s682_s16 = smov (!%p188_p3, %s451_s16), 1  ;;  %v527_v3 = vld [vmem:[%s677_s1 + $0x28] sm:$0xff]   ;;  %vm324_vm0 = vcmask 523264  }
   0xc   : > { %331 = vmatprep.subr.bf16.mxu0 %v551_v1  ;;  %492 = vmatprep.subr.bf16.mxu1 %v551_v1  ;;  %s481_s23 = sshll.u32 %s682_s16, 5  ;;  %v528_v4 = vld [vmem:[%s677_s1 + $0x20] sm:$0xff]   ;;  %v529_v6 = vld [vmem:[%s677_s1 + $0x18] sm:$0xff]   ;;  %v530_v8 = vld [vmem:[%s677_s1 + $0x10] sm:$0xff]  }
   0xd   : > { %332 = vmatpush1.bf16.msra.mxu0 %v525_v0  ;;  %504 = vmatpush1.bf16.msra.mxu1 %v525_v0  ;;  %s611_s28 = scalar_lea.vmem %s676_s0, %s481_s23  ;;  %v531_v9 = vld [vmem:[%s677_s1 + $0x8] sm:$0xff]   ;;  %v532_v10 = vld [vmem:[%s677_s1] sm:$0xff]   ;;  %v533_v11 = vld [vmem:[%s677_s1 + $0x58] sm:$0xff]   ;;  %s197_s30 = scalar_lea.vmem %s680_s4, %s481_s23 }
   0xe   : > { %333 = vmatprep.subr.bf16.mxu0 %v551_v1  ;;  %493 = vmatprep.subr.bf16.mxu1 %v551_v1  ;;  %v539_v5 = vld [vmem:[%s611_s28 + $0x4] ss:$8 sps:$4 sm:$0xff]   ;;  %v542_v7 = vld [vmem:[%s611_s28 + $0x14] ss:$8 sps:$4 sm:$0xff]   ;;  %v537_v15 = vld [vmem:[%s611_s28] ss:$8 sps:$4 sm:$0xff]  }
   0xf   : > { %477 = vmatprep.mubr.msk.bf16.mxu0 %vm324_vm0, %v539_v5  ;;  %478 = vmatprep.mubr.msk.bf16.mxu1 %vm324_vm0, %v542_v7  ;;  %v534_v12 = vld [vmem:[%s677_s1 + $0x50] sm:$0xff]   ;;  %v535_v13 = vld [vmem:[%s677_s1 + $0x48] sm:$0xff]   ;;  %v536_v14 = vld [vmem:[%s677_s1 + $0x40] sm:$0xff]  }
  0x10   : > { %v540_v16 = vld [vmem:[%s611_s28 + $0x10] ss:$8 sps:$4 sm:$0xff]   ;;  %v484_v17 = vld [vmem:[%s679_s3] sm:$0xff]   ;;  %v491_v18 = vld [vmem:[%s679_s3 + $0x8] sm:$0xff]  }
  0x11   : > { %334 = vmatpush1.bf16.msra.mxu0 %v526_v2  ;;  %505 = vmatpush1.bf16.msra.mxu1 %v526_v2  ;;  %v460_v19 = vld [vmem:[%s678_s2] ss:$0 sm:$0xff]  ;;  %v485_v20 = vunpack.c.l.bf16 %v484_v17  ;;  %v489_v21 = vunpack.c.l.bf16 %v491_v18  ;;  %v486_v30 = vunpack.c.h.bf16 %v484_v17  ;;  %v490_v31 = vunpack.c.h.bf16 %v491_v18 }
  0x12   : > { %335 = vmatprep.subr.bf16.mxu0 %v551_v1  ;;  %494 = vmatprep.subr.bf16.mxu1 %v551_v1 }
  0x15   : > { %336 = vmatpush1.bf16.msra.mxu0 %v527_v3  ;;  %506 = vmatpush1.bf16.msra.mxu1 %v527_v3 }
  0x16   : > { %337 = vmatprep.subr.bf16.mxu0 %v551_v1  ;;  %495 = vmatprep.subr.bf16.mxu1 %v551_v1 }
  0x19   : > { %338 = vmatpush1.bf16.msra.mxu0 %v528_v4  ;;  %507 = vmatpush1.bf16.msra.mxu1 %v528_v4 }
  0x1a   : > { %339 = vmatprep.subr.bf16.mxu0 %v551_v1  ;;  %496 = vmatprep.subr.bf16.mxu1 %v551_v1 }
  0x1d   : > { %340 = vmatpush1.bf16.msra.mxu0 %v529_v6  ;;  %508 = vmatpush1.bf16.msra.mxu1 %v529_v6 }
  0x1e   : > { %341 = vmatprep.subr.bf16.mxu0 %v551_v1  ;;  %497 = vmatprep.subr.bf16.mxu1 %v551_v1 }
  0x21   : > { %342 = vmatpush1.bf16.msra.mxu0 %v530_v8  ;;  %509 = vmatpush1.bf16.msra.mxu1 %v530_v8 }
  0x22   : > { %343 = vmatprep.subr.bf16.mxu0 %v551_v1  ;;  %498 = vmatprep.subr.bf16.mxu1 %v551_v1 }
  0x25   : > { %344 = vmatpush1.bf16.msra.mxu0 %v531_v9  ;;  %510 = vmatpush1.bf16.msra.mxu1 %v531_v9 }
  0x26   : > { %345 = vmatprep.subr.bf16.mxu0 %v551_v1  ;;  %499 = vmatprep.subr.bf16.mxu1 %v551_v1 }
  0x29   : > { %346 = vmatpush1.bf16.msra.mxu0 %v532_v10  ;;  %511 = vmatpush1.bf16.msra.mxu1 %v532_v10 }
  0x2a   : > { %355 = vmatprep.subr.bf16.mxu0 %v551_v1  ;;  %500 = vmatprep.subr.bf16.mxu1 %v551_v1 }
  0x2d   : > { %356 = vmatpush2.bf16.msra.mxu0 %v533_v11  ;;  %512 = vmatpush2.bf16.msra.mxu1 %v533_v11 }
  0x2e   : > { %357 = vmatprep.subr.bf16.mxu0 %v551_v1  ;;  %501 = vmatprep.subr.bf16.mxu1 %v551_v1 }
  0x31   : > { %358 = vmatpush2.bf16.msra.mxu0 %v534_v12  ;;  %513 = vmatpush2.bf16.msra.mxu1 %v534_v12 }
  0x32   : > { %359 = vmatprep.subr.bf16.mxu0 %v551_v1  ;;  %502 = vmatprep.subr.bf16.mxu1 %v551_v1 }
  0x35   : > { %360 = vmatpush2.bf16.msra.mxu0 %v535_v13  ;;  %514 = vmatpush2.bf16.msra.mxu1 %v535_v13 }
  0x36   : > { %361 = vmatprep.subr.bf16.mxu0 %v551_v1  ;;  %503 = vmatprep.subr.bf16.mxu1 %v551_v1 }
  0x39   : > { %362 = vmatpush2.bf16.msra.mxu0 %v536_v14  ;;  %515 = vmatpush2.bf16.msra.mxu1 %v536_v14 }
  0x3c   : > { %364 = vmatmul.mubr.bf16.vlgmr.msra.gmra.mxu0 %v537_v15  ;;  %372 = vmatmul.mubr.bf16.vlgmr.msra.gmra.mxu1 %v540_v16 }
  0xfc   : > { %v365_v22 = vpop.f32.mrf.mxu0  ;;  %v373_v23 = vpop.f32.mrf.mxu1 }
  0xfd   : > { %v366_v24 = vadd.f32 %v460_v19, %v365_v22  ;;  %v374_v25 = vadd.f32 %v460_v19, %v373_v23 }
  0xfe   : > { %v367_v26 = vpop.f32.mrf.mxu0  ;;  %v375_v27 = vpop.f32.mrf.mxu1 }
  0xff   : > { %v388_v28 = vadd.f32 %v485_v20, %v366_v24  ;;  %v390_v29 = vadd.f32 %v489_v21, %v374_v25 }
 0x100   : > { %v368_v32 = vpop.f32.mrf.mxu0  ;;  %v376_v33 = vpop.f32.mrf.mxu1 }
 0x101   : > { %392 = vst [vmem:[%s197_s30] sm:$0xff] %v388_v28  ;;  %394 = vst [vmem:[%s197_s30 + $0x10] sm:$0xff] %v390_v29  ;;  %v369_v34 = vadd.f32 %v460_v19, %v368_v32  ;;  %v377_v35 = vadd.f32 %v460_v19, %v376_v33 }
 0x102   : > { %v370_v36 = vpop.f32.mrf.mxu0  ;;  %v378_v37 = vpop.f32.mrf.mxu1 }
 0x103   : > { %v389_v38 = vadd.f32 %v486_v30, %v369_v34  ;;  %v391_v39 = vadd.f32 %v490_v31, %v377_v35 }
 0x105   : > { %393 = vst [vmem:[%s197_s30 + $0x8] sm:$0xff] %v389_v38  ;;  %395 = vst [vmem:[%s197_s30 + $0x18] sm:$0xff] %v391_v39 }
 0x106 PF: > { %s14_s15 = sadd.s32 1, %s549_s15  }
 0x107   : > { %p11_p4 = scmp.ge.s32.totalorder %s14_s15, 4  }
 0x109   :  { %13 = sbr.rel (!%p11_p4) target bundleno = 1 (0x1), region = 66 }

// kernel: forward.3
= control target key start
LH: loop header
LB: loop body
LE: loop exit
PB: predicated region body
PF: predicated region fallthrough
CT: control target
= control target key end

     0   :  { %s5610_s0 = inlined_call_operand.vmem [shape: f32[2,32,128], index: 0, kind: input, shape index: {}]   ;;  %s5611_s1 = inlined_call_operand.vmem [shape: f32[2,1,128], index: 1, kind: input, shape index: {}]   ;;  %s5612_s2 = inlined_call_operand.vmem [shape: f32[2,1,128], index: 2, kind: input, shape index: {}]   ;;  %s5613_s3 = inlined_call_operand.vmem [shape: bf16[2,128,384], index: 3, kind: input, shape index: {}]   ;;  %s5614_s4 = inlined_call_operand.vmem [shape: bf16[2,128,128], index: 4, kind: input, shape index: {}]   ;;  %s5615_s5 = inlined_call_operand.vmem [shape: f32[2,1,128], index: 5, kind: input, shape index: {}]   ;;  %s5616_s6 = inlined_call_operand.vmem [shape: f32[2,1,128], index: 6, kind: input, shape index: {}]   ;;  %s5617_s7 = inlined_call_operand.vmem [shape: f32[2,1,128], index: 7, kind: input, shape index: {}]   ;;  %s5618_s8 = inlined_call_operand.vmem [shape: bf16[2,128,512], index: 8, kind: input, shape index: {}]   ;;  %s5619_s9 = inlined_call_operand.vmem [shape: f32[2,1,512], index: 9, kind: input, shape index: {}]   ;;  %s5620_s10 = inlined_call_operand.vmem [shape: bf16[2,512,128], index: 10, kind: input, shape index: {}]   ;;  %s5621_s11 = inlined_call_operand.vmem [shape: f32[2,1,128], index: 11, kind: input, shape index: {}]   ;;  %s5622_s12 = inlined_call_operand.vmem [shape: f32[1,128], index: 12, kind: input, shape index: {}]   ;;  %s5623_s13 = inlined_call_operand.vmem [shape: f32[1,128], index: 13, kind: input, shape index: {}]   ;;  %s5624_s14 = inlined_call_operand.hbm [shape: bf16[2,2,32,128], index: 14, kind: output, shape index: {}]  }
   0x1   :  { %5639 = sst [smem:[#allocation22_spill]] %s5611_s1 }
   0x2   :  { %5640 = sst [smem:[#allocation23_spill]] %s5612_s2 }
   0x3   :  { %5641 = sst [smem:[#allocation24_spill]] %s5614_s4 }
   0x4   :  { %5642 = sst [smem:[#allocation25_spill]] %s5622_s12 }
   0x5   :  { %5643 = sst [smem:[#allocation26_spill]] %s5623_s13 }
   0x6   :  { %5644 = sst [smem:[#allocation27_spill]] %s5624_s14 }
   0x7   :  { %19 = vsyncpa [#allocation7], 0 }
   0x8   :  { %21 = vsyncpa [#allocation7 + $0x1], 0  ;;  %s4665_s29 = smov 0   ;;  %s4667_s30 = smov 0  }
   0x9   :  { %s4669_s15 = smov 0   ;;  %s4671_s16 = smov 0  }
   0xa   :  { %s4673_s17 = smov 0   ;;  %s4675_s18 = smov 0  }
   0xb   :  { %s4677_s19 = smov 0   ;;  %s4679_s20 = smov 0  }
   0xc LB: > { %5645 = sst [smem:[#allocation11_spill]] %s4554_s29  ;;  %s3639_s21 = sadd.s32 4294967295, %s4582_s20   ;;  %s4582_s20 = sphi %s4679_s20, %s27_s20   ;;  %s4578_s19 = sphi %s4677_s19, %s5684_s19   ;;  %s4574_s18 = sphi %s4675_s18, %s5683_s18   ;;  %s4570_s17 = sphi %s4673_s17, %s5682_s17   ;;  %s4566_s16 = sphi %s4671_s16, %s5681_s16   ;;  %s4562_s15 = sphi %s4669_s15, %s5680_s15   ;;  %s4558_s30 = sphi %s4667_s30, %s5679_s30   ;;  %s4554_s29 = sphi %s4665_s29, %s5678_s29  }
   0xd   : > { %5646 = sst [smem:[#allocation12_spill]] %s4558_s30  ;;  %s36_s22 = sadd.s32 1, %s4574_s18 }
   0xe   : > { %5647 = sst [smem:[#allocation13_spill]] %s4562_s15  ;;  %s39_s23 = sadd.s32 1, %s4578_s19 }
   0xf   : > { %5648 = sst [smem:[#allocation14_spill]] %s4574_s18  ;;  %p37_p0 = scmp.ge.s32.totalorder %s36_s22, 2 }
  0x10   : > { %5649 = sst [smem:[#allocation15_spill]] %s4578_s19  ;;  %s3640_s24 = sadd.s32 4294967294, %s4582_s20  }
  0x11   : > { %5650 = sst [smem:[#allocation16_spill]] %s4582_s20  ;;  %p373_p1 = scmp.ge.s32.totalorder %s4574_s18, 1 }
  0x12   : > { %s5686_s22 = smov (%p37_p0, %s36_s22), 0  ;;  %s5688_s23 = smov (!%p37_p0, %s39_s23), %s4578_s19 }
  0x13   : > { %5651 = sst [smem:[#allocation17_spill]] %s5686_s22  ;;  %p41_p2 = scmp.ge.s32.totalorder %s5688_s23, 2 }
  0x14   : > { %s374_s25 = scalar_select %p373_p1, 1, 0 }
  0x15   : > { %s5690_s23 = smov (%p41_p2, %s5688_s23), 0  ;;  %p381_p3 = scmp.ge.s32.totalorder %s5686_s22, 1 }
  0x16   : > { %5652 = sst [smem:[#allocation18_spill]] %s5690_s23  ;;  %s375_s26 = sadd.s32 1, %s374_s25 }
  0x17   : > { %s3641_s27 = sadd.s32 4294967295, %s375_s26  ;;  %s388_s28 = ssub.s32 %s4578_s19, %s5690_s23 }
  0x18   : > { %p377_p4 = scmp.gt.s32.totalorder %s3641_s27, 0  ;;  %p402_p5 = scmp.ne.s32.totalorder %s4562_s15, %s4558_s30 }
  0x19   : > { %s382_s18 = scalar_select %p381_p3, 1, 0 }
  0x1a   : > { %s5692_s27 = smov (!%p377_p4, %s3641_s27), 0  ;;  %p403_p6 = scmp.eq.s32.totalorder %s3639_s21, 3 }
  0x1b   : > { %p408_p7 = scmp.ne.s32.totalorder %s4558_s30, %s4554_s29  ;;  %s383_s14 = sadd.s32 1, %s382_s18 }
  0x1c   : > { %p409_p8 = scmp.eq.s32.totalorder %s3640_s24, 3  ;;  %s3642_s13 = sadd.s32 4294967295, %s383_s14 }
  0x1d   : > { %p4722_p9 = por %p403_p6, %p402_p5  ;;  %p385_p10 = scmp.gt.s32.totalorder %s3642_s13, 0 }
  0x1e   : > { %p4726_p11 = por %p409_p8, %p408_p7  ;;  %p3645_p12 = scmp.ge.s32.totalorder %s4582_s20, 1 }
  0x1f   : > { %s5653_s12 = scalar_select %p4722_p9, 1, 0 }
  0x20   : > { %s5655_s25 = scalar_select %p4726_p11, 1, 0 }
  0x21   : > { %5654 = sst [smem:[#allocation19_spill]] %s5653_s12  ;;  %p508_p13 = scmp.lt.s32.totalorder %s4582_s20, 5 }
  0x22   : > { %5656 = sst [smem:[#allocation20_spill]] %s5655_s25  ;;  %s5694_s13 = smov (!%p385_p10, %s3642_s13), 0 }
  0x23   : > { %p509_p0 = pnand %p3645_p12, %p508_p13  ;;  %s387_s26 = ssub.s32 %s5692_s27, %s5694_s13 }
  0x24   : > { %s389_s21 = sor.u32 %s388_s28, %s387_s26  ;;  %s392_s23 = sadd.s32 1, %s4562_s15 }
  0x25   : > { %p390_p1 = scmp.eq.s32.totalorder %s389_s21, 0  ;;  %512 = sbr.rel (%p509_p0) target bundleno = 2752 (0xac0), region = 72 }
  0x26   : > { %s5629_s14 = sand.u32 (!%p509_p0), 1, %s4558_s30   ;;  %p589_p2 = scmp.lt.s32.totalorder (!%p509_p0), %s4566_s16, 1 }
  0x27   : > { %s4734_s18 = scalar_select %p390_p1, %s4562_s15, %s392_s23  }
  0x28   : > { %s3646_s24 = sshll.u32 (!%p509_p0), %s5629_s14, 4  ;;  %p640_p3 = scmp.eq.s32.totalorder (!%p509_p0), %s4566_s16, 0 }
  0x29   : > { %5657 = sst [smem:[#allocation21_spill]] %s4734_s18  ;;  %s4797_s2 = scalar_lea.vmem (!%p509_p0), [#allocation6], %s3646_s24 }
  0x2a   : > { %s4742_s22 = scalar_select %p589_p2, %s4566_s16, 1 }
  0x2b   : > { %s5660_s4 = sld [smem:[#allocation24_spill]]  ;;  %p3655_p4 = scmp.ne.s32.totalorder %s4566_s16, 0 }
  0x2c   : > { %s4109_s14 = smul.u32 192, %s4742_s22  ;;  %s3843_s19 = sshll.u32 %s4742_s22, 6 }
  0x2d   : > { %s610_s28 = scalar_lea.vmem %s5616_s6, %s4742_s22  ;;  %s3844_s15 = sshll.u32 %s4742_s22, 8 }
  0x2e   : > { %s4766_s30 = scalar_lea.vmem %s5613_s3, %s4109_s14  ;;  %s3652_s25 = sshll.u32 %s4742_s22, 2 }
  0x2f   : > { %s4786_s12 = scalar_lea.vmem %s5619_s9, %s3652_s25  ;;  %s4791_s1 = scalar_lea.vmem %s5620_s10, %s3844_s15 }
  0x30   : > { %s630_s26 = scalar_lea.vmem %s5621_s11, %s4742_s22  ;;  %643 = sbr.rel (%p3655_p4) target bundleno = 59 (0x3b), region = 76 }
  0x31   : > { %s4757_s13 = scalar_lea.vmem %s5660_s4, %s3843_s19  ;;  %s4780_s4 = scalar_lea.vmem %s5618_s8, %s3844_s15 }
  0x32   : > { %s3656_s19 = sshll.u32 (!%p3655_p4), %s4570_s17, 5 }
  0x33   : > { %s645_s25 = scalar_lea.vmem (!%p3655_p4), %s5610_s0, %s3656_s19 }
  0x35   : > { %v679_v0 = vld [vmem:[%s645_s25] sm:$0xff]  ;;  %v681_v1 = vld [vmem:[%s645_s25 + $0x8] sm:$0xff]  ;;  %v683_v2 = vld [vmem:[%s645_s25 + $0x10] sm:$0xff] }
  0x36   : > { %680 = vst [vmem:[#allocation2 + $0x10] sm:$0xff] %v679_v0  ;;  %682 = vst [vmem:[#allocation2] sm:$0xff] %v681_v1  ;;  %v685_v3 = vld [vmem:[%s645_s25 + $0x18] sm:$0xff] }
  0x37   : > { %684 = vst [vmem:[#allocation2 + $0x18] sm:$0xff] %v683_v2  ;;  %686 = vst [vmem:[#allocation2 + $0x8] sm:$0xff] %v685_v3 }
  0x38   : > { %694 = vsyncadd [#allocation5], 512 }
  0x39   : > { %4546 = dma.done.wait [#allocation5], 512 }
  0x3a   : > { %4547 = vsyncadd [#allocation5], 4294966784 }
  0x3b PF: > { %v4186_v8 = vld [vmem:[%s4766_s30 + $0xac] ss:$12 sps:$4 sm:$0xff]   ;;  %v4188_v9 = vld [vmem:[%s4766_s30 + $0xa8] ss:$12 sps:$4 sm:$0xff]   ;;  %v4191_v27 = vld [vmem:[%s4766_s30 + $0xb0] ss:$12 sps:$4 sm:$0xff]   ;;  %s5666_s20 = scalar_lea.vmem %s5617_s7, %s4742_s22 }
  0x3c   : > { %931 = vmatprep.subr.bf16.mxu0 %v4186_v8  ;;  %v4189_v26 = vld [vmem:[%s4766_s30 + $0x94] ss:$12 sps:$4 sm:$0xff]   ;;  %v4192_v28 = vld [vmem:[%s4766_s30 + $0x90] ss:$12 sps:$4 sm:$0xff]   ;;  %3997 = vmatprep.subr.bf16.mxu1 %v4191_v27  ;;  %v4195_v30 = vld [vmem:[%s4766_s30 + $0x98] ss:$12 sps:$4 sm:$0xff]  }
  0x3d   : > { %v698_v4 = vld [vmem:[#allocation2 + $0x10] sm:$0xff]  ;;  %v699_v6 = vld [vmem:[#allocation2] sm:$0xff]  ;;  %932 = vmatpush1.bf16.msra.mxu0 %v4188_v9  ;;  %3998 = vmatpush3.bf16.msra.mxu1 %v4191_v27  ;;  %v4193_v29 = vld [vmem:[%s4766_s30 + $0x7c] ss:$12 sps:$4 sm:$0xff]   ;;  %v4584_v43 = vmov 0   ;;  %s5661_s15 = sld [smem:[#allocation22_spill]] }
  0x3e   : > { %v700_v5 = vld [vmem:[#allocation2 + $0x18] sm:$0xff]  ;;  %704 = vadd.xlane.f32.xlu0 %v698_v4  ;;  %v701_v7 = vld [vmem:[#allocation2 + $0x8] sm:$0xff]  ;;  %933 = vmatprep.subr.bf16.mxu0 %v4189_v26  ;;  %v4197_v32 = vld [vmem:[%s4766_s30 + $0x64] ss:$12 sps:$4 sm:$0xff]   ;;  %s5663_s23 = sld [smem:[#allocation23_spill]]  ;;  %vm1049_vm0 = vcmask 257024  }
  0x3f   : > { %708 = vadd.xlane.f32.xlu1 %v700_v5  ;;  %v4196_v31 = vld [vmem:[%s4766_s30 + $0x78] ss:$12 sps:$4 sm:$0xff]   ;;  %3999 = vmatprep.subr.bf16.mxu1 %v4195_v30  ;;  %v4199_v33 = vld [vmem:[%s4766_s30 + $0x80] ss:$12 sps:$4 sm:$0xff]   ;;  %v4203_v36 = vld [vmem:[%s4766_s30 + $0x68] ss:$12 sps:$4 sm:$0xff]  }
  0x40   : > { %v4200_v34 = vld [vmem:[%s4766_s30 + $0x60] ss:$12 sps:$4 sm:$0xff]   ;;  %v4204_v37 = vld [vmem:[%s4766_s30 + $0x48] ss:$12 sps:$4 sm:$0xff]   ;;  %v4207_v39 = vld [vmem:[%s4766_s30 + $0x50] ss:$12 sps:$4 sm:$0xff]   ;;  %963 = vmatprep.mubr.bf16.mxu0 %v4584_v43 }
  0x41   : > { %934 = vmatpush1.bf16.msra.mxu0 %v4192_v28  ;;  %4000 = vmatpush3.bf16.msra.mxu1 %v4195_v30  ;;  %v4201_v35 = vld [vmem:[%s4766_s30 + $0x4c] ss:$12 sps:$4 sm:$0xff]   ;;  %v4205_v38 = vld [vmem:[%s4766_s30 + $0x34] ss:$12 sps:$4 sm:$0xff]   ;;  %v4208_v40 = vld [vmem:[%s4766_s30 + $0x30] ss:$12 sps:$4 sm:$0xff]  }
  0x42   : > { %706 = vadd.xlane.f32.xlu0 %v699_v6  ;;  %935 = vmatprep.subr.bf16.mxu0 %v4193_v29  ;;  %v4209_v41 = vld [vmem:[%s4766_s30 + $0x1c] ss:$12 sps:$4 sm:$0xff]   ;;  %v4211_v42 = vld [vmem:[%s4766_s30 + $0x38] ss:$12 sps:$4 sm:$0xff]   ;;  %v4215_v46 = vld [vmem:[%s4766_s30 + $0x20] ss:$12 sps:$4 sm:$0xff]  }
  0x43   : > { %710 = vadd.xlane.f32.xlu1 %v701_v7  ;;  %4001 = vmatprep.subr.bf16.mxu1 %v4199_v33  ;;  %v4212_v44 = vld [vmem:[%s4766_s30 + $0x18] ss:$12 sps:$4 sm:$0xff]   ;;  %v4216_v47 = vld [vmem:[%s4766_s30] ss:$12 sps:$4 sm:$0xff]   ;;  %v4217_v48 = vld [vmem:[%s4766_s30 + $0x8] ss:$12 sps:$4 sm:$0xff]   ;;  %s5662_s27 = scalar_lea.vmem %s5661_s15, %s4742_s22 }
  0x44   : > { %v4213_v45 = vld [vmem:[%s4766_s30 + $0x4] ss:$12 sps:$4 sm:$0xff]   ;;  %v3657_v63 = vld [vmem:[%s5662_s27] ss:$0 sm:$0xff]  ;;  %s5664_s21 = scalar_lea.vmem %s5663_s23, %s4742_s22  ;;  %s4585_s19 = smov 96   ;;  %vm1317_vm1 = vcmask 261120  }
  0x45   : > { %936 = vmatpush1.bf16.msra.mxu0 %v4196_v31  ;;  %4002 = vmatpush3.bf16.msra.mxu1 %v4199_v33  ;;  %s4586_s18 = smov 64   ;;  %s4587_s29 = smov 32   ;;  %vm2214_vm2 = vcmask 519424   ;;  %vm2243_vm3 = vcmask 781824   ;;  %vm2272_vm4 = vcmask 1044224  }
  0x46   : > { %937 = vmatprep.subr.bf16.mxu0 %v4197_v32  ;;  %4003 = vmatprep.subr.bf16.mxu1 %v4203_v36  ;;  %s5665_s30 = scalar_lea.vmem %s5615_s5, %s4742_s22  ;;  %p3330_p5 = scmp.eq.s32.totalorder %s4566_s16, 1 }
  0x48   : > { %p5521_p6 = por %p3330_p5, %p640_p3 }
  0x49   : > { %938 = vmatpush1.bf16.msra.mxu0 %v4200_v34  ;;  %4004 = vmatpush3.bf16.msra.mxu1 %v4203_v36  ;;  %s5668_s14 = sld [smem:[#allocation25_spill]] (%p5521_p6) }
  0x4a   : > { %939 = vmatprep.subr.bf16.mxu0 %v4201_v35  ;;  %4005 = vmatprep.subr.bf16.mxu1 %v4207_v39 }
  0x4d   : > { %940 = vmatpush1.bf16.msra.mxu0 %v4204_v37  ;;  %4006 = vmatpush3.bf16.msra.mxu1 %v4207_v39 }
  0x4e   : > { %941 = vmatprep.subr.bf16.mxu0 %v4205_v38  ;;  %4007 = vmatprep.subr.bf16.mxu1 %v4211_v42 }
  0x51   : > { %942 = vmatpush1.bf16.msra.mxu0 %v4208_v40  ;;  %4008 = vmatpush3.bf16.msra.mxu1 %v4211_v42 }
  0x52   : > { %943 = vmatprep.subr.bf16.mxu0 %v4209_v41  ;;  %4009 = vmatprep.subr.bf16.mxu1 %v4215_v46 }
  0x55   : > { %944 = vmatpush1.bf16.msra.mxu0 %v4212_v44  ;;  %4010 = vmatpush3.bf16.msra.mxu1 %v4215_v46 }
  0x56   : > { %945 = vmatprep.subr.bf16.mxu0 %v4213_v45  ;;  %4011 = vmatprep.subr.bf16.mxu1 %v4217_v48 }
  0x59   : > { %946 = vmatpush1.bf16.msra.mxu0 %v4216_v47  ;;  %4012 = vmatpush3.bf16.msra.mxu1 %v4217_v48 }
  0xc7   : > { %v705_v10 = vpop.xlane.xlu0 %704 }
  0xc8   : > { %v709_v11 = vpop.xlane.xlu1 %708  ;;  %v713_v12 = vmul.f32 0.0078125, %v705_v10 }
  0xc9   : > { %v715_v13 = vmul.f32 0.0078125, %v709_v11 }
  0xca   : > { %v4806_v14 = vsub.f32 %v698_v4, %v713_v12  ;;  %v3658_v4 = vld [vmem:[%s5664_s21] ss:$0 sm:$0xff] }
  0xcb   : > { %v4808_v15 = vsub.f32 %v700_v5, %v715_v13  ;;  %v707_v16 = vpop.xlane.xlu0 %706 }
  0xcc   : > { %v711_v17 = vpop.xlane.xlu1 %710  ;;  %v714_v18 = vmul.f32 0.0078125, %v707_v16  ;;  %v721_v19 = vmul.f32 %v4806_v14, %v4806_v14 }
  0xcd   : > { %v716_v20 = vmul.f32 0.0078125, %v711_v17  ;;  %v723_v23 = vmul.f32 %v4808_v15, %v4808_v15 }
  0xce   : > { %v4812_v21 = vsub.f32 %v699_v6, %v714_v18  ;;  %725 = vadd.xlane.f32.xlu0 %v721_v19 }
  0xcf   : > { %v4814_v22 = vsub.f32 %v701_v7, %v716_v20 }
  0xd0   : > { %v722_v24 = vmul.f32 %v4812_v21, %v4812_v21 }
  0xd1   : > { %v724_v25 = vmul.f32 %v4814_v22, %v4814_v22 }
  0xd2   : > { %729 = vadd.xlane.f32.xlu0 %v723_v23  ;;  %727 = vadd.xlane.f32.xlu1 %v722_v24 }
  0xd6   : > { %731 = vadd.xlane.f32.xlu1 %v724_v25 }
 0x157   : > { %v726_v49 = vpop.xlane.xlu0 %725 }
 0x158   : > { %v733_v50 = vmul.f32 0.0078125, %v726_v49 }
 0x15a   : > { %v737_v51 = vadd.f32 1e-05, %v733_v50 }
 0x15b   : > { %v728_v52 = vpop.xlane.xlu1 %727  ;;  %v730_v53 = vpop.xlane.xlu0 %729 }
 0x15c   : > { %4332 = vrsqrt.f32 %v737_v51  ;;  %v734_v54 = vmul.f32 0.0078125, %v728_v52  ;;  %v735_v55 = vmul.f32 0.0078125, %v730_v53 }
 0x15e   : > { %v738_v56 = vadd.f32 1e-05, %v734_v54  ;;  %v739_v57 = vadd.f32 1e-05, %v735_v55 }
 0x15f   : > { %v732_v58 = vpop.xlane.xlu1 %731 }
 0x160   : > { %4334 = vrsqrt.f32 %v738_v56  ;;  %v736_v59 = vmul.f32 0.0078125, %v732_v58 }
 0x161   : > { %4336 = vrsqrt.f32 %v739_v57 }
 0x162   : > { %v740_v60 = vadd.f32 1e-05, %v736_v59 }
 0x164   : > { %4338 = vrsqrt.f32 %v740_v60 }
 0x169   : > { %v4333_v61 = vpop.eup %4332 }
 0x16a   : > { %v745_v62 = vmul.f32 %v4333_v61, %v4806_v14 }
 0x16c   : > { %v755_v3 = vmul.f32 %v3657_v63, %v745_v62 }
 0x16d   : > { %v4335_v0 = vpop.eup %4334 }
 0x16e   : > { %v4337_v1 = vpop.eup %4336  ;;  %v746_v2 = vmul.f32 %v4335_v0, %v4812_v21  ;;  %v765_v8 = vadd.f32 %v3658_v4, %v755_v3 }
 0x16f   : > { %v747_v5 = vmul.f32 %v4337_v1, %v4808_v15 }
 0x170   : > { %v756_v6 = vmul.f32 %v3657_v63, %v746_v2 }
 0x171   : > { %v4339_v7 = vpop.eup %4338  ;;  %v757_v11 = vmul.f32 %v3657_v63, %v747_v5 }
 0x172   : > { %v766_v9 = vadd.f32 %v3658_v4, %v756_v6  ;;  %v748_v10 = vmul.f32 %v4339_v7, %v4814_v22 }
 0x173   : > { %v767_v14 = vadd.f32 %v3658_v4, %v757_v11 }
 0x174   : > { %v769_v12 = vpack.c.bf16 %v766_v9, %v765_v8  ;;  %v758_v13 = vmul.f32 %v3657_v63, %v748_v10 }
 0x176   : > { %964 = vmatmul.mubr.bf16.vlgmr.msra.gmra.mxu0 %v769_v12  ;;  %4013 = vmatprep.mubr.bf16.mxu1 %v769_v12  ;;  %v768_v16 = vadd.f32 %v3658_v4, %v758_v13 }
 0x177   : > { %973 = vmatprep.mubr.bf16.mxu0 %v4584_v43 }
 0x178   : > { %v770_v17 = vpack.c.bf16 %v768_v16, %v767_v14 }
 0x17a   : > { %4014 = vmatmul.mubr.bf16.vlgmr.msra.gmra.mxu1 %v770_v17 }
 0x17e   : > { %974 = vmatmul.mubr.bf16.gmra.mxu0 %v770_v17 }
 0x236   : > { %v965_v18 = vpop.f32.mrf.mxu0 }
 0x237   : > { %v4860_v15 = vpack.c.bf16 %v965_v18, %v965_v18 }
 0x238   : > { %v967_v19 = vpop.f32.mrf.mxu0 }
 0x239   : > { %1050 = vst.msk [vmem:[#allocation3] sm:$0xf] %vm1049_vm0, %v4860_v15  ;;  %v3850_v20 = vpack.c.bf16 %v967_v19, %v967_v19  ;;  %1096 = vrot.lane.b32.xlu0 %v4860_v15, %s4585_s19 }
 0x23a   : > { %v969_v21 = vpop.f32.mrf.mxu0  ;;  %v4015_v22 = vpop.f32.mrf.mxu1 }
 0x23b   : > { %1071 = vst.msk [vmem:[#allocation3 + $0x40] sm:$0xf] %vm1049_vm0, %v3850_v20  ;;  %v4867_v23 = vpack.c.bf16 %v969_v21, %v969_v21  ;;  %v4869_v24 = vpack.c.bf16 %v4015_v22, %v4015_v22  ;;  %1113 = vrot.lane.b32.xlu1 %v3850_v20, %s4585_s19 }
 0x23c   : > { %v971_v25 = vpop.f32.mrf.mxu0  ;;  %v1018_v26 = vpop.f32.mrf.mxu1 }
 0x23d   : > { %1051 = vst.msk [vmem:[#allocation3 + $0x4] sm:$0xf] %vm1049_vm0, %v4867_v23  ;;  %1094 = vst.msk [vmem:[#allocation3 + $0x88] sm:$0xf] %vm1049_vm0, %v4869_v24  ;;  %v3851_v27 = vpack.c.bf16 %v971_v25, %v971_v25  ;;  %v4876_v28 = vpack.c.bf16 %v1018_v26, %v1018_v26 }
 0x23e   : > { %v975_v29 = vpop.f32.mrf.mxu0  ;;  %v4016_v30 = vpop.f32.mrf.mxu1 }
 0x23f   : > { %1072 = vst.msk [vmem:[#allocation3 + $0x44] sm:$0xf] %vm1049_vm0, %v3851_v27  ;;  %1092 = vst.msk [vmem:[#allocation3 + $0x80] sm:$0xf] %vm1049_vm0, %v4876_v28  ;;  %v3848_v31 = vpack.c.bf16 %v975_v29, %v975_v29  ;;  %v3857_v32 = vpack.c.bf16 %v4016_v30, %v4016_v30  ;;  %1098 = vrot.lane.b32.xlu1 %v4867_v23, %s4585_s19 }
 0x240   : > { %v977_v33 = vpop.f32.mrf.mxu0  ;;  %v1021_v34 = vpop.f32.mrf.mxu1 }
 0x241   : > { %1052 = vst.msk [vmem:[#allocation3 + $0x8] sm:$0xf] %vm1049_vm0, %v3848_v31  ;;  %1095 = vst.msk [vmem:[#allocation3 + $0x8c] sm:$0xf] %vm1049_vm0, %v3857_v32  ;;  %v3852_v35 = vpack.c.bf16 %v977_v33, %v977_v33  ;;  %v4885_v36 = vpack.c.bf16 %v1021_v34, %v1021_v34  ;;  %1100 = vrot.lane.b32.xlu0 %v3848_v31, %s4585_s19 }
 0x242   : > { %v979_v37 = vpop.f32.mrf.mxu0 }
 0x243   : > { %1073 = vst.msk [vmem:[#allocation3 + $0x48] sm:$0xf] %vm1049_vm0, %v3852_v35  ;;  %1093 = vst.msk [vmem:[#allocation3 + $0x84] sm:$0xf] %vm1049_vm0, %v4885_v36  ;;  %v3849_v38 = vpack.c.bf16 %v979_v37, %v979_v37  ;;  %1115 = vrot.lane.b32.xlu1 %v3851_v27, %s4585_s19 }
 0x244   : > { %v981_v39 = vpop.f32.mrf.mxu0  ;;  %v4218_v40 = vld [vmem:[#allocation3] sm:$0xff]  }
 0x245   : > { %1053 = vst.msk [vmem:[#allocation3 + $0xc] sm:$0xf] %vm1049_vm0, %v3849_v38  ;;  %v3853_v41 = vpack.c.bf16 %v981_v39, %v981_v39  ;;  %1117 = vrot.lane.b32.xlu0 %v3852_v35, %s4585_s19  ;;  %4021 = vmatprep.mubr.msk.bf16.mxu1 %vm1317_vm1, %v4218_v40 }
 0x246   : > { %v4220_v45 = vld [vmem:[#allocation3 + $0x40] sm:$0xff]  }
 0x247   : > { %1074 = vst.msk [vmem:[#allocation3 + $0x4c] sm:$0xf] %vm1049_vm0, %v3853_v41  ;;  %1102 = vrot.lane.b32.xlu1 %v3849_v38, %s4585_s19  ;;  %v1325_v46 = vsel %vm1317_vm1, %v4220_v45, 0 }
 0x248   : > { %v4231_v22 = vld [vmem:[#allocation3 + $0x88] sm:$0xff]  }
 0x249   : > { %1164 = vrot.lane.b32.xlu0 %v3850_v20, %s4586_s18 }
 0x24b   : > { %1119 = vrot.lane.b32.xlu1 %v3853_v41, %s4585_s19 }
 0x24c   : > { %v4221_v47 = vld [vmem:[#allocation3 + $0x8] sm:$0xff]  }
 0x24d   : > { %1168 = vrot.lane.b32.xlu0 %v3852_v35, %s4586_s18 }
 0x24e   : > { %v4219_v42 = vld [vmem:[#allocation3 + $0x48] sm:$0xff]  }
 0x24f   : > { %1166 = vrot.lane.b32.xlu1 %v3851_v27, %s4586_s18  ;;  %4101 = vmatprep.subr.msk.bf16.mxu1 %vm1317_vm1, %v4219_v42  ;;  %v1328_v44 = vsel %vm1317_vm1, %v4219_v42, 0 }
 0x250   : > { %4018 = vmatpush3.bf16.xpose.msra.mxu1 %v1328_v44 }
 0x251   : > { %1219 = vrot.lane.b32.xlu0 %v3852_v35, %s4587_s29  ;;  %4102 = vmatprep.subr.msk.bf16.mxu1 %vm1317_vm1, %v4220_v45 }
 0x253   : > { %1217 = vrot.lane.b32.xlu1 %v3851_v27, %s4587_s29 }
 0x255   : > { %1215 = vrot.lane.b32.xlu0 %v3850_v20, %s4587_s29 }
 0x257   : > { %1170 = vrot.lane.b32.xlu1 %v3853_v41, %s4586_s18 }
 0x258   : > { %4020 = vmatpush3.bf16.xpose.msra.mxu1 %v1325_v46 }
 0x259   : > { %1147 = vrot.lane.b32.xlu0 %v4860_v15, %s4586_s18 }
 0x25b   : > { %1221 = vrot.lane.b32.xlu1 %v3853_v41, %s4587_s29 }
 0x25d   : > { %1151 = vrot.lane.b32.xlu0 %v3848_v31, %s4586_s18 }
 0x25f   : > { %1149 = vrot.lane.b32.xlu1 %v4867_v23, %s4586_s18  ;;  %4022 = vmatmul.mubr.msk.bf16.vlgmr.msra.gmra.mxu1 %vm1317_vm1, %v4221_v47 }
 0x261   : > { %1198 = vrot.lane.b32.xlu0 %v4860_v15, %s4587_s29 }
 0x263   : > { %1153 = vrot.lane.b32.xlu1 %v3849_v38, %s4586_s18 }
 0x265   : > { %1202 = vrot.lane.b32.xlu0 %v3848_v31, %s4587_s29  ;;  %v4234_v31 = vld [vmem:[#allocation3 + $0x80] sm:$0xff]  }
 0x267   : > { %1200 = vrot.lane.b32.xlu1 %v4867_v23, %s4587_s29 }
 0x269   : > { %1134 = vrot.lane.b32.xlu0 %v4869_v24, %s4585_s19 }
 0x26b   : > { %1204 = vrot.lane.b32.xlu1 %v3849_v38, %s4587_s29 }
 0x26d   : > { %1185 = vrot.lane.b32.xlu0 %v4869_v24, %s4586_s18 }
 0x26f   : > { %1136 = vrot.lane.b32.xlu1 %v3857_v32, %s4585_s19 }
 0x271   : > { %1236 = vrot.lane.b32.xlu0 %v4869_v24, %s4587_s29 }
 0x273   : > { %1130 = vrot.lane.b32.xlu1 %v4876_v28, %s4585_s19 }
 0x275   : > { %1181 = vrot.lane.b32.xlu0 %v4876_v28, %s4586_s18 }
 0x277   : > { %1132 = vrot.lane.b32.xlu1 %v4885_v36, %s4585_s19 }
 0x27b   : > { %1187 = vrot.lane.b32.xlu1 %v3857_v32, %s4586_s18 }
 0x27f   : > { %1238 = vrot.lane.b32.xlu1 %v3857_v32, %s4587_s29 }
 0x283   : > { %1183 = vrot.lane.b32.xlu1 %v4885_v36, %s4586_s18 }
 0x2ab   : > { %v1097_v48 = vpop.permute.xlu0 %1096 }
 0x2ac   : > { %1109 = vst.msk [vmem:[#allocation3 + $0x10] sm:$0xf] %vm1049_vm0, %v1097_v48 }
 0x2ad   : > { %v1114_v49 = vpop.permute.xlu1 %1113 }
 0x2ae   : > { %1126 = vst.msk [vmem:[#allocation3 + $0x50] sm:$0xf] %vm1049_vm0, %v1114_v49 }
 0x2b1   : > { %v1099_v50 = vpop.permute.xlu1 %1098 }
 0x2b2   : > { %1110 = vst.msk [vmem:[#allocation3 + $0x14] sm:$0xf] %vm1049_vm0, %v1099_v50 }
 0x2b3   : > { %v1101_v51 = vpop.permute.xlu0 %1100 }
 0x2b4   : > { %1111 = vst.msk [vmem:[#allocation3 + $0x18] sm:$0xf] %vm1049_vm0, %v1101_v51 }
 0x2b5   : > { %v1116_v52 = vpop.permute.xlu1 %1115 }
 0x2b6   : > { %1127 = vst.msk [vmem:[#allocation3 + $0x54] sm:$0xf] %vm1049_vm0, %v1116_v52 }
 0x2b7   : > { %v1118_v53 = vpop.permute.xlu0 %1117 }
 0x2b8   : > { %1128 = vst.msk [vmem:[#allocation3 + $0x58] sm:$0xf] %vm1049_vm0, %v1118_v53 }
 0x2b9   : > { %v1103_v54 = vpop.permute.xlu1 %1102  ;;  %v4222_v55 = vld [vmem:[#allocation3 + $0x10] sm:$0xff]  }
 0x2ba   : > { %1112 = vst.msk [vmem:[#allocation3 + $0x1c] sm:$0xf] %vm1049_vm0, %v1103_v54  ;;  %4029 = vmatprep.mubr.msk.bf16.mxu1 %vm1317_vm1, %v4222_v55 }
 0x2bb   : > { %v1165_v56 = vpop.permute.xlu0 %1164 }
 0x2bc   : > { %1177 = vst.msk [vmem:[#allocation3 + $0x60] sm:$0xf] %vm1049_vm0, %v1165_v56 }
 0x2bd   : > { %v1120_v57 = vpop.permute.xlu1 %1119  ;;  %v4224_v1 = vld [vmem:[#allocation3 + $0x50] sm:$0xff]  }
 0x2be   : > { %1129 = vst.msk [vmem:[#allocation3 + $0x5c] sm:$0xf] %vm1049_vm0, %v1120_v57  ;;  %v1406_v6 = vsel %vm1317_vm1, %v4224_v1, 0 }
 0x2bf   : > { %v1169_v58 = vpop.permute.xlu0 %1168 }
 0x2c0   : > { %1179 = vst.msk [vmem:[#allocation3 + $0x68] sm:$0xf] %vm1049_vm0, %v1169_v58 }
 0x2c1   : > { %v1167_v59 = vpop.permute.xlu1 %1166  ;;  %v4227_v13 = vld [vmem:[#allocation3 + $0x18] sm:$0xff]  }
 0x2c2   : > { %1178 = vst.msk [vmem:[#allocation3 + $0x64] sm:$0xf] %vm1049_vm0, %v1167_v59 }
 0x2c3   : > { %v1220_v60 = vpop.permute.xlu0 %1219 }
 0x2c4   : > { %1230 = vst.msk [vmem:[#allocation3 + $0x78] sm:$0xf] %vm1049_vm0, %v1220_v60 }
 0x2c5   : > { %v1218_v61 = vpop.permute.xlu1 %1217  ;;  %v4223_v62 = vld [vmem:[#allocation3 + $0x58] sm:$0xff]  }
 0x2c6   : > { %1229 = vst.msk [vmem:[#allocation3 + $0x74] sm:$0xf] %vm1049_vm0, %v1218_v61  ;;  %4103 = vmatprep.subr.msk.bf16.mxu1 %vm1317_vm1, %v4223_v62  ;;  %v1409_v0 = vsel %vm1317_vm1, %v4223_v62, 0 }
 0x2c7   : > { %v1216_v63 = vpop.permute.xlu0 %1215  ;;  %4026 = vmatpush3.bf16.xpose.msra.mxu1 %v1409_v0 }
 0x2c8   : > { %1228 = vst.msk [vmem:[#allocation3 + $0x70] sm:$0xf] %vm1049_vm0, %v1216_v63  ;;  %4104 = vmatprep.subr.msk.bf16.mxu1 %vm1317_vm1, %v4224_v1 }
 0x2c9   : > { %v1171_v2 = vpop.permute.xlu1 %1170  ;;  %v4226_v11 = vld [vmem:[#allocation3 + $0x60] sm:$0xff]  }
 0x2ca   : > { %1180 = vst.msk [vmem:[#allocation3 + $0x6c] sm:$0xf] %vm1049_vm0, %v1171_v2  ;;  %v1487_v21 = vsel %vm1317_vm1, %v4226_v11, 0 }
 0x2cb   : > { %v1148_v3 = vpop.permute.xlu0 %1147 }
 0x2cc   : > { %1160 = vst.msk [vmem:[#allocation3 + $0x20] sm:$0xf] %vm1049_vm0, %v1148_v3 }
 0x2cd   : > { %v1222_v4 = vpop.permute.xlu1 %1221 }
 0x2ce   : > { %1231 = vst.msk [vmem:[#allocation3 + $0x7c] sm:$0xf] %vm1049_vm0, %v1222_v4 }
 0x2cf   : > { %v1152_v5 = vpop.permute.xlu0 %1151  ;;  %4028 = vmatpush3.bf16.xpose.msra.mxu1 %v1406_v6  ;;  %v4229_v18 = vld [vmem:[#allocation3 + $0x70] sm:$0xff]  }
 0x2d0   : > { %1162 = vst.msk [vmem:[#allocation3 + $0x28] sm:$0xf] %vm1049_vm0, %v1152_v5  ;;  %v1568_v25 = vsel %vm1317_vm1, %v4229_v18, 0 }
 0x2d1   : > { %v1150_v7 = vpop.permute.xlu1 %1149  ;;  %v4225_v8 = vld [vmem:[#allocation3 + $0x68] sm:$0xff]  }
 0x2d2   : > { %1161 = vst.msk [vmem:[#allocation3 + $0x24] sm:$0xf] %vm1049_vm0, %v1150_v7  ;;  %4105 = vmatprep.subr.msk.bf16.mxu0 %vm1317_vm1, %v4225_v8  ;;  %v1490_v10 = vsel %vm1317_vm1, %v4225_v8, 0 }
 0x2d3   : > { %v1199_v9 = vpop.permute.xlu0 %1198  ;;  %4034 = vmatpush3.bf16.xpose.msra.mxu0 %v1490_v10 }
 0x2d4   : > { %1211 = vst.msk [vmem:[#allocation3 + $0x30] sm:$0xf] %vm1049_vm0, %v1199_v9  ;;  %4106 = vmatprep.subr.msk.bf16.mxu0 %vm1317_vm1, %v4226_v11 }
 0x2d5   : > { %v1154_v12 = vpop.permute.xlu1 %1153  ;;  %v4228_v14 = vld [vmem:[#allocation3 + $0x78] sm:$0xff]  }
 0x2d6   : > { %1163 = vst.msk [vmem:[#allocation3 + $0x2c] sm:$0xf] %vm1049_vm0, %v1154_v12  ;;  %4030 = vmatmul.mubr.msk.bf16.vlgmr.msra.gmra.mxu1 %vm1317_vm1, %v4227_v13  ;;  %4107 = vmatprep.subr.msk.bf16.mxu1 %vm1317_vm1, %v4228_v14  ;;  %v1571_v17 = vsel %vm1317_vm1, %v4228_v14, 0 }
 0x2d7   : > { %v1203_v16 = vpop.permute.xlu0 %1202  ;;  %4042 = vmatpush3.bf16.xpose.msra.mxu1 %v1571_v17 }
 0x2d8   : > { %1213 = vst.msk [vmem:[#allocation3 + $0x38] sm:$0xf] %vm1049_vm0, %v1203_v16  ;;  %4108 = vmatprep.subr.msk.bf16.mxu1 %vm1317_vm1, %v4229_v18 }
 0x2d9   : > { %v1201_v15 = vpop.permute.xlu1 %1200  ;;  %v4230_v19 = vld [vmem:[#allocation3 + $0x20] sm:$0xff]  }
 0x2da   : > { %1212 = vst.msk [vmem:[#allocation3 + $0x34] sm:$0xf] %vm1049_vm0, %v1201_v15  ;;  %4037 = vmatprep.mubr.msk.bf16.mxu0 %vm1317_vm1, %v4230_v19 }
 0x2db   : > { %v1135_v20 = vpop.permute.xlu0 %1134  ;;  %4036 = vmatpush3.bf16.xpose.msra.mxu0 %v1487_v21 }
 0x2dc   : > { %1145 = vst.msk [vmem:[#allocation3 + $0x98] sm:$0xf] %vm1049_vm0, %v1135_v20  ;;  %4049 = vmatprep.subr.bf16.mxu0 %v4231_v22 }
 0x2dd   : > { %v1205_v23 = vpop.permute.xlu1 %1204  ;;  %v4232_v27 = vld [vmem:[#allocation3 + $0x28] sm:$0xff]  }
 0x2de   : > { %1214 = vst.msk [vmem:[#allocation3 + $0x3c] sm:$0xf] %vm1049_vm0, %v1205_v23 }
 0x2df   : > { %v1186_v24 = vpop.permute.xlu0 %1185  ;;  %4044 = vmatpush3.bf16.xpose.msra.mxu1 %v1568_v25 }
 0x2e0   : > { %1196 = vst.msk [vmem:[#allocation3 + $0xa8] sm:$0xf] %vm1049_vm0, %v1186_v24 }
 0x2e1   : > { %v1137_v26 = vpop.permute.xlu1 %1136  ;;  %v4233_v29 = vld [vmem:[#allocation3 + $0x30] sm:$0xff]  }
 0x2e2   : > { %1146 = vst.msk [vmem:[#allocation3 + $0x9c] sm:$0xf] %vm1049_vm0, %v1137_v26  ;;  %4038 = vmatmul.mubr.msk.bf16.vlgmr.msra.gmra.mxu0 %vm1317_vm1, %v4232_v27  ;;  %4045 = vmatprep.mubr.msk.bf16.mxu1 %vm1317_vm1, %v4233_v29 }
 0x2e3   : > { %v1237_v30 = vpop.permute.xlu0 %1236  ;;  %4050 = vmatpush3.bf16.msra.mxu0 %v4231_v22 }
 0x2e4   : > { %1247 = vst.msk [vmem:[#allocation3 + $0xb8] sm:$0xf] %vm1049_vm0, %v1237_v30  ;;  %4051 = vmatprep.subr.bf16.mxu0 %v4234_v31 }
 0x2e5   : > { %v1131_v32 = vpop.permute.xlu1 %1130  ;;  %v4235_v33 = vld [vmem:[#allocation3 + $0x38] sm:$0xff]  }
 0x2e6   : > { %1143 = vst.msk [vmem:[#allocation3 + $0x90] sm:$0xf] %vm1049_vm0, %v1131_v32  ;;  %4046 = vmatmul.mubr.msk.bf16.vlgmr.msra.gmra.mxu1 %vm1317_vm1, %v4235_v33 }
 0x2e7   : > { %v1182_v34 = vpop.permute.xlu0 %1181  ;;  %4052 = vmatpush3.bf16.msra.mxu0 %v4234_v31 }
 0x2e8   : > { %1194 = vst.msk [vmem:[#allocation3 + $0xa0] sm:$0xf] %vm1049_vm0, %v1182_v34 }
 0x2e9   : > { %v1133_v35 = vpop.permute.xlu1 %1132  ;;  %v4236_v37 = vld [vmem:[#allocation3 + $0x98] sm:$0xff]  }
 0x2ea   : > { %1144 = vst.msk [vmem:[#allocation3 + $0x94] sm:$0xf] %vm1049_vm0, %v1133_v35  ;;  %4057 = vmatprep.subr.bf16.mxu1 %v4236_v37 }
 0x2eb   : > { %4058 = vmatpush3.bf16.msra.mxu1 %v4236_v37 }
 0x2ed   : > { %v1188_v38 = vpop.permute.xlu1 %1187 }
 0x2ee   : > { %1197 = vst.msk [vmem:[#allocation3 + $0xac] sm:$0xf] %vm1049_vm0, %v1188_v38 }
 0x2f1   : > { %v1239_v39 = vpop.permute.xlu1 %1238  ;;  %v4237_v40 = vld [vmem:[#allocation3 + $0x90] sm:$0xff]  }
 0x2f2   : > { %1248 = vst.msk [vmem:[#allocation3 + $0xbc] sm:$0xf] %vm1049_vm0, %v1239_v39  ;;  %4059 = vmatprep.subr.bf16.mxu1 %v4237_v40 }
 0x2f3   : > { %4060 = vmatpush3.bf16.msra.mxu1 %v4237_v40 }
 0x2f5   : > { %v1184_v41 = vpop.permute.xlu1 %1183  ;;  %v4991_v42 = vld [vmem:[#allocation3 + $0xa8] sm:$0xff]  }
 0x2f6   : > { %1195 = vst.msk [vmem:[#allocation3 + $0xa4] sm:$0xf] %vm1049_vm0, %v1184_v41  ;;  %4065 = vmatprep.subr.bf16.mxu0 %v4991_v42 }
 0x2f9   : > { %v4995_v44 = vld [vmem:[#allocation3 + $0xb8] sm:$0xff]  }
 0x2fa   : > { %4073 = vmatprep.subr.bf16.mxu1 %v4995_v44 }
 0x2fd   : > { %v4240_v32 = vld [vmem:[#allocation3 + $0xa0] sm:$0xff]  }
 0x31f   : > { %v4023_v45 = vpop.f32.mrf.mxu1 }
 0x320   : > { %v1628_v46 = vsel %vm1317_vm1, %v4023_v45, -inf }
 0x321   : > { %1629 = vmax.xlane.f32.xlu0 %v1628_v46  ;;  %v1364_v47 = vpop.f32.mrf.mxu1 }
 0x322   : > { %v1622_v49 = vsel %vm1317_vm1, %v1364_v47, -inf }
 0x323   : > { %v4024_v48 = vpop.f32.mrf.mxu1 }
 0x324   : > { %v1631_v52 = vsel %vm1317_vm1, %v4024_v48, -inf }
 0x325   : > { %1623 = vmax.xlane.f32.xlu0 %v1622_v49  ;;  %v1367_v50 = vpop.f32.mrf.mxu1 }
 0x326   : > { %v1625_v51 = vsel %vm1317_vm1, %v1367_v50, -inf }
 0x327   : > { %1626 = vmax.xlane.f32.xlu1 %v1625_v51 }
 0x329   : > { %1632 = vmax.xlane.f32.xlu0 %v1631_v52 }
 0x396   : > { %v5002_v53 = vpop.f32.mrf.mxu1 }
 0x397   : > { %v1640_v54 = vsel %vm1317_vm1, %v5002_v53, -inf }
 0x398   : > { %1641 = vmax.xlane.f32.xlu0 %v1640_v54  ;;  %v5006_v55 = vpop.f32.mrf.mxu1 }
 0x399   : > { %v1634_v63 = vsel %vm1317_vm1, %v5006_v55, -inf }
 0x39a   : > { %v5008_v56 = vpop.f32.mrf.mxu1 }
 0x39b   : > { %v1643_v57 = vsel %vm1317_vm1, %v5008_v56, -inf }
 0x39c   : > { %1644 = vmax.xlane.f32.xlu1 %v1643_v57  ;;  %v5018_v61 = vpop.f32.mrf.mxu1 }
 0x39d   : > { %v1637_v4 = vsel %vm1317_vm1, %v5018_v61, -inf }
 0x3a2   : > { %v5012_v58 = vpop.f32.mrf.mxu0 }
 0x3a3   : > { %v1652_v59 = vsel %vm1317_vm1, %v5012_v58, -inf }
 0x3a4   : > { %1653 = vmax.xlane.f32.xlu0 %v1652_v59  ;;  %v5016_v60 = vpop.f32.mrf.mxu0 }
 0x3a5   : > { %v1646_v3 = vsel %vm1317_vm1, %v5016_v60, -inf }
 0x3a6   : > { %v5020_v62 = vpop.f32.mrf.mxu0  ;;  %v5026_v1 = vpop.f32.mrf.mxu1 }
 0x3a7   : > { %v1655_v0 = vsel %vm1317_vm1, %v5020_v62, -inf  ;;  %v1664_v11 = vsel %vm1317_vm1, %v5026_v1, -inf }
 0x3a8   : > { %1635 = vmax.xlane.f32.xlu0 %v1634_v63  ;;  %1656 = vmax.xlane.f32.xlu1 %v1655_v0  ;;  %v5034_v5 = vpop.f32.mrf.mxu0  ;;  %v5036_v6 = vpop.f32.mrf.mxu1 }
 0x3a9   : > { %v1649_v10 = vsel %vm1317_vm1, %v5034_v5, -inf  ;;  %v1658_v19 = vsel %vm1317_vm1, %v5036_v6, -inf }
 0x3aa   : > { %v5028_v2 = vpop.xlane.xlu0 %1629  ;;  %v5046_v12 = vpop.f32.mrf.mxu1 }
 0x3ab   : > { %v1720_v8 = vsub.f32 %v4023_v45, %v5028_v2  ;;  %v1667_v20 = vsel %vm1317_vm1, %v5046_v12, -inf }
 0x3ac   : > { %1647 = vmax.xlane.f32.xlu0 %v1646_v3  ;;  %1638 = vmax.xlane.f32.xlu1 %v1637_v4  ;;  %v5057_v21 = vpop.f32.mrf.mxu1 }
 0x3ad   : > { %v1738_v18 = vmul.f32 1.442695, %v1720_v8  ;;  %v1661_v24 = vsel %vm1317_vm1, %v5057_v21, -inf }
 0x3ae   : > { %v5038_v7 = vpop.xlane.xlu0 %1623 }
 0x3af   : > { %v1718_v9 = vsub.f32 %v1364_v47, %v5038_v7 }
 0x3b0   : > { %v5048_v13 = vpop.xlane.xlu1 %1626  ;;  %1650 = vmax.xlane.f32.xlu1 %v1649_v10  ;;  %1665 = vmax.xlane.f32.xlu0 %v1664_v11 }
 0x3b1   : > { %v1734_v14 = vmul.f32 1.442695, %v1718_v9  ;;  %v1719_v16 = vsub.f32 %v1367_v50, %v5048_v13 }
 0x3b2   : > { %v5051_v17 = vpop.xlane.xlu0 %1632 }
 0x3b3   : > { %v1736_v15 = vmul.f32 1.442695, %v1719_v16  ;;  %v1721_v22 = vsub.f32 %v4024_v48, %v5051_v17  ;;  %4340 = vpow2.f32 %v1734_v14 }
 0x3b4   : > { %1659 = vmax.xlane.f32.xlu0 %v1658_v19  ;;  %1668 = vmax.xlane.f32.xlu1 %v1667_v20 }
 0x3b5   : > { %4342 = vpow2.f32 %v1736_v15  ;;  %v1740_v23 = vmul.f32 1.442695, %v1721_v22 }
 0x3b6   : > { %4344 = vpow2.f32 %v1738_v18 }
 0x3b7   : > { %4346 = vpow2.f32 %v1740_v23 }
 0x3b8   : > { %1662 = vmax.xlane.f32.xlu1 %v1661_v24 }
 0x3c0   : > { %v5062_v25 = vpop.eup %4340 }
 0x3c2   : > { %v5064_v26 = vpop.eup %4342 }
 0x3c3   : > { %v5066_v27 = vpop.eup %4344  ;;  %v1846_v29 = vpack.c.bf16 %v5064_v26, %v5062_v25 }
 0x3c4   : > { %v5070_v30 = vpop.eup %4346 }
 0x3c5   : > { %4053 = vmatprep.mubr.msk.bf16.mxu0 %vm1317_vm1, %v1846_v29  ;;  %v1847_v31 = vpack.c.bf16 %v5070_v30, %v5066_v27 }
 0x3c7   : > { %4054 = vmatmul.mubr.msk.bf16.vlgmr.msra.gmra.mxu0 %vm1317_vm1, %v1847_v31 }
 0x3c8   : > { %4066 = vmatpush3.bf16.msra.mxu0 %v4991_v42 }
 0x3c9   : > { %1234 = vrot.lane.b32.xlu1 %v4885_v36, %s4587_s29  ;;  %4067 = vmatprep.subr.bf16.mxu0 %v4240_v32 }
 0x3ca   : > { %1232 = vrot.lane.b32.xlu0 %v4876_v28, %s4587_s29 }
 0x3cc   : > { %4068 = vmatpush3.bf16.msra.mxu0 %v4240_v32 }
 0x421   : > { %v5081_v33 = vpop.xlane.xlu0 %1641 }
 0x422   : > { %v1724_v34 = vsub.f32 %v5002_v53, %v5081_v33 }
 0x424   : > { %v1746_v35 = vmul.f32 1.442695, %v1724_v34 }
 0x425   : > { %v5085_v37 = vpop.xlane.xlu1 %1644 }
 0x426   : > { %4348 = vpow2.f32 %v1746_v35  ;;  %v1725_v28 = vsub.f32 %v5008_v56, %v5085_v37 }
 0x428   : > { %v1748_v52 = vmul.f32 1.442695, %v1725_v28 }
 0x42d   : > { %v5087_v38 = vpop.xlane.xlu0 %1653 }
 0x42e   : > { %v1728_v39 = vsub.f32 %v5012_v58, %v5087_v38 }
 0x430   : > { %v1754_v36 = vmul.f32 1.442695, %v1728_v39 }
 0x431   : > { %v5091_v40 = vpop.xlane.xlu1 %1656  ;;  %v5093_v41 = vpop.xlane.xlu0 %1635 }
 0x432   : > { %v1729_v42 = vsub.f32 %v5020_v62, %v5091_v40  ;;  %4350 = vpow2.f32 %v1754_v36  ;;  %v1722_v45 = vsub.f32 %v5006_v55, %v5093_v41 }
 0x433   : > { %v4349_v46 = vpop.eup %4348 }
 0x434   : > { %v1756_v47 = vmul.f32 1.442695, %v1729_v42  ;;  %v1742_v48 = vmul.f32 1.442695, %v1722_v45  ;;  %v1800_v50 = vsel %vm1317_vm1, %v4349_v46, 0.0 }
 0x435   : > { %v5101_v49 = vpop.xlane.xlu1 %1638  ;;  %v5104_v51 = vpop.xlane.xlu0 %1647  ;;  %1801 = vadd.xlane.f32.xlu0 %v1800_v50 }
 0x436   : > { %v1723_v53 = vsub.f32 %v5018_v61, %v5101_v49  ;;  %4352 = vpow2.f32 %v1756_v47  ;;  %v1726_v54 = vsub.f32 %v5016_v60, %v5104_v51 }
 0x437   : > { %4354 = vpow2.f32 %v1742_v48 }
 0x438   : > { %v1744_v56 = vmul.f32 1.442695, %v1723_v53  ;;  %v1750_v55 = vmul.f32 1.442695, %v1726_v54  ;;  %4356 = vpow2.f32 %v1748_v52 }
 0x439   : > { %v5110_v57 = vpop.xlane.xlu1 %1650  ;;  %v5112_v58 = vpop.xlane.xlu0 %1665 }
 0x43a   : > { %v1727_v59 = vsub.f32 %v5034_v5, %v5110_v57  ;;  %4358 = vpow2.f32 %v1744_v56  ;;  %v1732_v61 = vsub.f32 %v5026_v1, %v5112_v58  ;;  %v1782_v56 = vsel %vm1317_vm1, %v5062_v25, 0.0 }
 0x43b   : > { %4360 = vpow2.f32 %v1750_v55  ;;  %v1785_v55 = vsel %vm1317_vm1, %v5064_v26, 0.0  ;;  %v1671_v25 = vsub.f32 -inf, %v5048_v13  ;;  %v1672_v26 = vsub.f32 -inf, %v5028_v2 }
 0x43c   : > { %v1752_v62 = vmul.f32 1.442695, %v1727_v59  ;;  %v1762_v8 = vmul.f32 1.442695, %v1732_v61  ;;  %v1788_v59 = vsel %vm1317_vm1, %v5066_v27, 0.0 }
 0x43d   : > { %v5118_v63 = vpop.xlane.xlu1 %1668  ;;  %v5120_v60 = vpop.xlane.xlu0 %1659  ;;  %v1688_v27 = vmul.f32 1.442695, %v1671_v25 }
 0x43e   : > { %v1733_v0 = vsub.f32 %v5046_v12, %v5118_v63  ;;  %4362 = vpow2.f32 %v1752_v62  ;;  %v1730_v3 = vsub.f32 %v5036_v6, %v5120_v60  ;;  %v1791_v62 = vsel %vm1317_vm1, %v5070_v30, 0.0 }
 0x43f   : > { %v4351_v4 = vpop.eup %4350  ;;  %4364 = vpow2.f32 %v1762_v8  ;;  %v1690_v30 = vmul.f32 1.442695, %v1672_v26 }
 0x440   : > { %v1758_v5 = vmul.f32 1.442695, %v1730_v3  ;;  %v1812_v10 = vsel %vm1317_vm1, %v4351_v4, 0.0  ;;  %v1764_v11 = vmul.f32 1.442695, %v1733_v0  ;;  %v1670_v3 = vsub.f32 -inf, %v5038_v7 }
 0x441   : > { %v5126_v9 = vpop.xlane.xlu1 %1662  ;;  %v1233_v1 = vpop.permute.xlu0 %1232  ;;  %1813 = vadd.xlane.f32.xlu0 %v1812_v10  ;;  %v1673_v10 = vsub.f32 -inf, %v5051_v17 }
 0x442   : > { %v1731_v14 = vsub.f32 %v5057_v21, %v5126_v9  ;;  %1245 = vst.msk [vmem:[#allocation3 + $0xb0] sm:$0xf] %vm1049_vm0, %v1233_v1  ;;  %4366 = vpow2.f32 %v1758_v5  ;;  %v1686_v8 = vmul.f32 1.442695, %v1670_v3 }
 0x443   : > { %v4353_v12 = vpop.eup %4352  ;;  %4368 = vpow2.f32 %v1764_v11  ;;  %v1692_v7 = vmul.f32 1.442695, %v1673_v10 }
 0x444   : > { %v1760_v16 = vmul.f32 1.442695, %v1731_v14  ;;  %v1815_v6 = vsel %vm1317_vm1, %v4353_v12, 0.0  ;;  %v4355_v15 = vpop.eup %4354  ;;  %v1851_v36 = vpack.c.bf16 %v4353_v12, %v4351_v4 }
 0x445   : > { %v1235_v18 = vpop.permute.xlu1 %1234  ;;  %1816 = vadd.xlane.f32.xlu1 %v1815_v6  ;;  %v4357_v19 = vpop.eup %4356  ;;  %v1794_v20 = vsel %vm1317_vm1, %v4355_v15, 0.0 }
 0x446   : > { %1246 = vst.msk [vmem:[#allocation3 + $0xb4] sm:$0xf] %vm1049_vm0, %v1235_v18  ;;  %4370 = vpow2.f32 %v1760_v16  ;;  %1795 = vadd.xlane.f32.xlu0 %v1794_v20  ;;  %v1849_v29 = vpack.c.bf16 %v4357_v19, %v4349_v46  ;;  %v1803_v28 = vsel %vm1317_vm1, %v4357_v19, 0.0  ;;  %v1676_v18 = vsub.f32 -inf, %v5081_v33 }
 0x447   : > { %v4359_v21 = vpop.eup %4358  ;;  %4372 = vpow2.f32 %v1686_v8 }
 0x448   : > { %v1797_v22 = vsel %vm1317_vm1, %v4359_v21, 0.0  ;;  %v1848_v23 = vpack.c.bf16 %v4359_v21, %v4355_v15  ;;  %v4361_v24 = vpop.eup %4360  ;;  %4374 = vpow2.f32 %v1688_v27  ;;  %v1680_v21 = vsub.f32 -inf, %v5087_v38 }
 0x449   : > { %1798 = vadd.xlane.f32.xlu1 %v1797_v22  ;;  %v1806_v31 = vsel %vm1317_vm1, %v4361_v24, 0.0  ;;  %4376 = vpow2.f32 %v1690_v30  ;;  %v1685_v30 = vsub.f32 -inf, %v5118_v63 }
 0x44a   : > { %4061 = vmatprep.mubr.msk.bf16.mxu1 %vm1317_vm1, %v1848_v23  ;;  %1807 = vadd.xlane.f32.xlu0 %v1806_v31  ;;  %4378 = vpow2.f32 %v1692_v7  ;;  %v1698_v31 = vmul.f32 1.442695, %v1676_v18 }
 0x44b   : > { %v4363_v32 = vpop.eup %4362  ;;  %4062 = vmatmul.mubr.msk.bf16.vlgmr.msra.gmra.mxu1 %vm1317_vm1, %v1849_v29 }
 0x44c   : > { %4074 = vmatpush3.bf16.msra.mxu1 %v4995_v44  ;;  %v1809_v34 = vsel %vm1317_vm1, %v4363_v32, 0.0  ;;  %v1850_v35 = vpack.c.bf16 %v4363_v32, %v4361_v24  ;;  %v4365_v42 = vpop.eup %4364  ;;  %v1677_v32 = vsub.f32 -inf, %v5085_v37  ;;  %v1675_v37 = vsub.f32 -inf, %v5101_v49 }
 0x44d   : > { %v4241_v39 = vld [vmem:[#allocation3 + $0xb0] sm:$0xff]   ;;  %1810 = vadd.xlane.f32.xlu1 %v1809_v34  ;;  %v1824_v53 = vsel %vm1317_vm1, %v4365_v42, 0.0  ;;  %v1683_v49 = vsub.f32 -inf, %v5126_v9 }
 0x44e   : > { %4069 = vmatprep.mubr.msk.bf16.mxu0 %vm1317_vm1, %v1850_v35  ;;  %4075 = vmatprep.subr.bf16.mxu1 %v4241_v39  ;;  %v1700_v38 = vmul.f32 1.442695, %v1677_v32 }
 0x44f   : > { %1804 = vadd.xlane.f32.xlu0 %v1803_v28  ;;  %4070 = vmatmul.mubr.msk.bf16.vlgmr.msra.gmra.mxu0 %vm1317_vm1, %v1851_v36  ;;  %v4367_v45 = vpop.eup %4366  ;;  %v1706_v28 = vmul.f32 1.442695, %v1680_v21 }
 0x450   : > { %4076 = vmatpush3.bf16.msra.mxu1 %v4241_v39  ;;  %v4369_v46 = vpop.eup %4368  ;;  %v1818_v44 = vsel %vm1317_vm1, %v4367_v45, 0.0  ;;  %v1674_v39 = vsub.f32 -inf, %v5093_v41  ;;  %v1678_v41 = vsub.f32 -inf, %v5104_v51  ;;  %v1684_v51 = vsub.f32 -inf, %v5112_v58 }
 0x451   : > { %v1853_v52 = vpack.c.bf16 %v4369_v46, %v4365_v42  ;;  %v1827_v54 = vsel %vm1317_vm1, %v4369_v46, 0.0 }
 0x452   : > { %v1714_v21 = vmul.f32 1.442695, %v1684_v51  ;;  %v4244_v51 = vld [vmem:[%s4757_s13 + $0x28] sm:$0xff]  }
 0x453   : > { %v4371_v47 = vpop.eup %4370  ;;  %1819 = vadd.xlane.f32.xlu0 %v1818_v44  ;;  %v1681_v44 = vsub.f32 -inf, %v5091_v40  ;;  %v1682_v40 = vsub.f32 -inf, %v5120_v60  ;;  %v1712_v60 = vmul.f32 1.442695, %v1683_v49 }
 0x454   : > { %v1821_v48 = vsel %vm1317_vm1, %v4371_v47, 0.0  ;;  %v1852_v50 = vpack.c.bf16 %v4371_v47, %v4367_v45  ;;  %v4373_v16 = vpop.eup %4372 }
 0x455   : > { %1822 = vadd.xlane.f32.xlu1 %v1821_v48  ;;  %v4375_v6 = vpop.eup %4374  ;;  %v1766_v19 = vmul.f32 0.0, %v4373_v16  ;;  %v1710_v8 = vmul.f32 1.442695, %v1682_v40 }
 0x456   : > { %4077 = vmatprep.mubr.msk.bf16.mxu1 %vm1317_vm1, %v1852_v50  ;;  %v4377_v20 = vpop.eup %4376  ;;  %v1767_v23 = vmul.f32 0.0, %v4375_v6  ;;  %v1694_v50 = vmul.f32 1.442695, %v1674_v39 }
 0x457   : > { %1825 = vadd.xlane.f32.xlu0 %v1824_v53  ;;  %4078 = vmatmul.mubr.msk.bf16.vlgmr.msra.gmra.mxu1 %vm1317_vm1, %v1853_v52  ;;  %v4379_v29 = vpop.eup %4378  ;;  %v1768_v36 = vmul.f32 0.0, %v4377_v20  ;;  %v1708_v53 = vmul.f32 1.442695, %v1681_v44 }
 0x458   : > { %2731 = vmatprep.mubr.bf16.mxu1 %v4584_v43  ;;  %v1769_v45 = vmul.f32 0.0, %v4379_v29 }
 0x459   : > { %1828 = vadd.xlane.f32.xlu1 %v1827_v54  ;;  %v1679_v54 = vsub.f32 -inf, %v5110_v57 }
 0x45b   : > { %1783 = vadd.xlane.f32.xlu0 %v1782_v56 }
 0x45d   : > { %1786 = vadd.xlane.f32.xlu1 %v1785_v55  ;;  %v1696_v55 = vmul.f32 1.442695, %v1675_v37 }
 0x45f   : > { %1789 = vadd.xlane.f32.xlu0 %v1788_v59  ;;  %v1702_v59 = vmul.f32 1.442695, %v1678_v41 }
 0x461   : > { %1792 = vadd.xlane.f32.xlu1 %v1791_v62  ;;  %v1704_v62 = vmul.f32 1.442695, %v1679_v54 }
 0x487   : > { %v4055_v34 = vpop.f32.mrf.mxu0 }
 0x488   : > { %v2124_v16 = vadd.f32 %v4055_v34, %v1768_v36 }
 0x489   : > { %v1906_v47 = vpop.f32.mrf.mxu0 }
 0x48a   : > { %v2122_v25 = vadd.f32 %v1906_v47, %v1766_v19 }
 0x48b   : > { %v4056_v56 = vpop.f32.mrf.mxu0 }
 0x48d   : > { %v1909_v3 = vpop.f32.mrf.mxu0 }
 0x48e   : > { %v2123_v27 = vadd.f32 %v1909_v3, %v1767_v23 }
 0x4be   : > { %v5159_v61 = vpop.xlane.xlu0 %1801 }
 0x4ca   : > { %v5161_v0 = vpop.xlane.xlu0 %1813 }
 0x4ce   : > { %v5165_v4 = vpop.xlane.xlu1 %1816 }
 0x4cf   : > { %v5168_v5 = vpop.xlane.xlu0 %1795 }
 0x4d2   : > { %v5171_v1 = vpop.xlane.xlu1 %1798 }
 0x4d3   : > { %v5173_v11 = vpop.xlane.xlu0 %1807 }
 0x4d6   : > { %v5177_v14 = vpop.xlane.xlu1 %1810 }
 0x4d8   : > { %v5175_v13 = vpop.xlane.xlu0 %1804 }
 0x4dc   : > { %v5179_v2 = vpop.xlane.xlu0 %1819 }
 0x4de   : > { %v5181_v12 = vpop.xlane.xlu1 %1822 }
 0x4e0   : > { %v5183_v17 = vpop.xlane.xlu0 %1825 }
 0x4e2   : > { %v5186_v15 = vpop.xlane.xlu1 %1828 }
 0x4e4   : > { %v1784_v22 = vpop.xlane.xlu0 %1783 }
 0x4e5   : > { %v1830_v24 = vadd.f32 %v1784_v22, %v1766_v19  ;;  %v2125_v19 = vadd.f32 %v4056_v56, %v1769_v45 }
 0x4e6   : > { %v1787_v35 = vpop.xlane.xlu1 %1786 }
 0x4e7   : > { %4380 = vrcp.f32 %v1830_v24  ;;  %v1831_v33 = vadd.f32 %v1787_v35, %v1767_v23 }
 0x4e8   : > { %v1790_v42 = vpop.xlane.xlu0 %1789 }
 0x4e9   : > { %4382 = vrcp.f32 %v1831_v33  ;;  %v1832_v46 = vadd.f32 %v1790_v42, %v1768_v36 }
 0x4ea   : > { %4384 = vpow2.f32 %v1698_v31  ;;  %v1793_v48 = vpop.xlane.xlu1 %1792  ;;  %v1716_v31 = vmul.f32 1.442695, %v1685_v30 }
 0x4eb   : > { %4386 = vrcp.f32 %v1832_v46  ;;  %v1833_v52 = vadd.f32 %v1793_v48, %v1769_v45 }
 0x4ec   : > { %4388 = vpow2.f32 %v1706_v28 }
 0x4ed   : > { %4390 = vrcp.f32 %v1833_v52 }
 0x4ee   : > { %4392 = vpow2.f32 %v1700_v38 }
 0x4ef   : > { %4394 = vpow2.f32 %v1694_v50 }
 0x4f0   : > { %4396 = vpow2.f32 %v1708_v53  ;;  %v4242_v53 = vld [vmem:[%s4757_s13 + $0x38] sm:$0xff]  }
 0x4f1   : > { %4398 = vpow2.f32 %v1696_v55  ;;  %4081 = vmatprep.subr.bf16.mxu0 %v4242_v53 }
 0x4f2   : > { %4400 = vpow2.f32 %v1702_v59  ;;  %4082 = vmatpush3.bf16.msra.mxu0 %v4242_v53  ;;  %v4243_v59 = vld [vmem:[%s4757_s13 + $0x30] sm:$0xff]  }
 0x4f3   : > { %4402 = vpow2.f32 %v1704_v62  ;;  %4083 = vmatprep.subr.bf16.mxu0 %v4243_v59 }
 0x4f4   : > { %v4381_v26 = vpop.eup %4380  ;;  %4404 = vpow2.f32 %v1710_v8 }
 0x4f5   : > { %v2154_v57 = vmul.f32 %v4381_v26, %v2122_v25  ;;  %4406 = vpow2.f32 %v1712_v60 }
 0x4f6   : > { %v4383_v10 = vpop.eup %4382  ;;  %4408 = vpow2.f32 %v1714_v21  ;;  %4084 = vmatpush3.bf16.msra.mxu0 %v4243_v59  ;;  %v4245_v21 = vld [vmem:[%s4757_s13 + $0x20] sm:$0xff]  }
 0x4f7   : > { %v4385_v7 = vpop.eup %4384  ;;  %v3858_v6 = vpack.c.bf16 %v2154_v57, %v2154_v57  ;;  %v2155_v18 = vmul.f32 %v4383_v10, %v2123_v27  ;;  %4410 = vpow2.f32 %v1716_v31  ;;  %4085 = vmatprep.subr.bf16.mxu0 %v4244_v51 }
 0x4f8   : > { %v4387_v20 = vpop.eup %4386  ;;  %v1772_v24 = vmul.f32 0.0, %v4385_v7 }
 0x4f9   : > { %v4389_v9 = vpop.eup %4388  ;;  %v2156_v22 = vmul.f32 %v4387_v20, %v2124_v16  ;;  %2186 = vst.msk [vmem:[#allocation4] sm:$0xf] %vm1049_vm0, %v3858_v6  ;;  %v3859_v58 = vpack.c.bf16 %v2155_v18, %v2155_v18 }
 0x4fa   : > { %v4391_v23 = vpop.eup %4390  ;;  %v1836_v35 = vadd.f32 %v5159_v61, %v1772_v24  ;;  %v1776_v39 = vmul.f32 0.0, %v4389_v9  ;;  %4086 = vmatpush3.bf16.msra.mxu0 %v4244_v51 }
 0x4fb   : > { %v4393_v29 = vpop.eup %4392  ;;  %v3860_v63 = vpack.c.bf16 %v2156_v22, %v2156_v22  ;;  %v2157_v32 = vmul.f32 %v4391_v23, %v2125_v19  ;;  %2187 = vst.msk [vmem:[#allocation4 + $0x4] sm:$0xf] %vm1049_vm0, %v3859_v58  ;;  %4087 = vmatprep.subr.bf16.mxu0 %v4245_v21 }
 0x4fc   : > { %v4395_v34 = vpop.eup %4394  ;;  %v1773_v33 = vmul.f32 0.0, %v4393_v29  ;;  %v1840_v42 = vadd.f32 %v5161_v0, %v1776_v39  ;;  %4412 = vrcp.f32 %v1836_v35 }
 0x4fd   : > { %2188 = vst.msk [vmem:[#allocation4 + $0x8] sm:$0xf] %vm1049_vm0, %v3860_v63  ;;  %v3861_v36 = vpack.c.bf16 %v2157_v32, %v2157_v32  ;;  %v4397_v28 = vpop.eup %4396  ;;  %v1770_v45 = vmul.f32 0.0, %v4395_v34 }
 0x4fe   : > { %v4399_v46 = vpop.eup %4398  ;;  %v1837_v38 = vadd.f32 %v5175_v13, %v1773_v33  ;;  %v5207_v47 = vmul.f32 0.0, %v4397_v28  ;;  %4414 = vrcp.f32 %v1840_v42  ;;  %4088 = vmatpush3.bf16.msra.mxu0 %v4245_v21 }
 0x4ff   : > { %2189 = vst.msk [vmem:[#allocation4 + $0xc] sm:$0xf] %vm1049_vm0, %v3861_v36  ;;  %v4401_v44 = vpop.eup %4400  ;;  %v1834_v61 = vadd.f32 %v5168_v5, %v1770_v45  ;;  %v1771_v50 = vmul.f32 0.0, %v4399_v46 }
 0x500   : > { %v4403_v48 = vpop.eup %4402  ;;  %v1841_v37 = vadd.f32 %v5165_v4, %v5207_v47  ;;  %v1774_v0 = vmul.f32 0.0, %v4401_v44  ;;  %4416 = vrcp.f32 %v1837_v38 }
 0x501   : > { %v4405_v52 = vpop.eup %4404  ;;  %4418 = vrcp.f32 %v1834_v61  ;;  %v1835_v41 = vadd.f32 %v5171_v1, %v1771_v50  ;;  %v5214_v54 = vmul.f32 0.0, %v4403_v48 }
 0x502   : > { %v1838_v13 = vadd.f32 %v5173_v11, %v1774_v0  ;;  %v4407_v5 = vpop.eup %4406  ;;  %4420 = vrcp.f32 %v1841_v37  ;;  %v5216_v56 = vmul.f32 0.0, %v4405_v52 }
 0x503   : > { %v4409_v55 = vpop.eup %4408  ;;  %4422 = vrcp.f32 %v1835_v41  ;;  %v1839_v4 = vadd.f32 %v5177_v14, %v5214_v54  ;;  %v5223_v11 = vmul.f32 0.0, %v4407_v5 }
 0x504   : > { %4424 = vrcp.f32 %v1838_v13  ;;  %v1842_v1 = vadd.f32 %v5179_v2, %v5216_v56  ;;  %v4411_v62 = vpop.eup %4410  ;;  %v5225_v3 = vmul.f32 0.0, %v4409_v55  ;;  %v4248_v55 = vld [vmem:[%s4757_s13 + $0x8] sm:$0xff]  }
 0x505   : > { %4426 = vrcp.f32 %v1839_v4  ;;  %v1843_v26 = vadd.f32 %v5181_v12, %v5223_v11  ;;  %v5232_v7 = vmul.f32 0.0, %v4411_v62  ;;  %v4249_v4 = vld [vmem:[%s4757_s13] sm:$0xff]  }
 0x506   : > { %4428 = vrcp.f32 %v1842_v1  ;;  %v1844_v2 = vadd.f32 %v5183_v17, %v5225_v3 }
 0x507   : > { %4430 = vrcp.f32 %v1843_v26  ;;  %v1845_v17 = vadd.f32 %v5186_v15, %v5232_v7 }
 0x508   : > { %4432 = vrcp.f32 %v1844_v2 }
 0x509   : > { %v4413_v25 = vpop.eup %4412  ;;  %4434 = vrcp.f32 %v1845_v17 }
 0x50b   : > { %v4063_v40 = vpop.f32.mrf.mxu1  ;;  %v4415_v30 = vpop.eup %4414 }
 0x50c   : > { %v2128_v49 = vadd.f32 %v4063_v40, %v1772_v24 }
 0x50d   : > { %v1973_v14 = vpop.f32.mrf.mxu1  ;;  %v4417_v12 = vpop.eup %4416 }
 0x50e   : > { %v2160_v8 = vmul.f32 %v4413_v25, %v2128_v49  ;;  %v2126_v27 = vadd.f32 %v1973_v14, %v1770_v45  ;;  %v4419_v9 = vpop.eup %4418 }
 0x50f   : > { %v4064_v57 = vpop.f32.mrf.mxu1  ;;  %v4071_v10 = vpop.f32.mrf.mxu0 }
 0x510   : > { %v3864_v60 = vpack.c.bf16 %v2160_v8, %v2160_v8  ;;  %v2129_v16 = vadd.f32 %v4064_v57, %v1773_v33  ;;  %v2132_v6 = vadd.f32 %v4071_v10, %v1776_v39  ;;  %v2158_v58 = vmul.f32 %v4419_v9, %v2126_v27  ;;  %v4421_v34 = vpop.eup %4420  ;;  %v4246_v39 = vld [vmem:[%s4757_s13 + $0x18] sm:$0xff]  }
 0x511   : > { %v1976_v18 = vpop.f32.mrf.mxu1  ;;  %v2040_v20 = vpop.f32.mrf.mxu0  ;;  %4089 = vmatprep.subr.bf16.mxu0 %v4246_v39 }
 0x512   : > { %v2161_v19 = vmul.f32 %v4417_v12, %v2129_v16  ;;  %v2164_v22 = vmul.f32 %v4415_v30, %v2132_v6  ;;  %2206 = vrot.lane.b32.xlu1 %v3864_v60, %s4587_s29  ;;  %v2127_v23 = vadd.f32 %v1976_v18, %v1771_v50  ;;  %v2130_v63 = vadd.f32 %v2040_v20, %v1774_v0  ;;  %v4423_v36 = vpop.eup %4422 }
 0x513   : > { %v4072_v24 = vpop.f32.mrf.mxu0  ;;  %v4425_v33 = vpop.eup %4424  ;;  %v3862_v45 = vpack.c.bf16 %v2158_v58, %v2158_v58  ;;  %4090 = vmatpush3.bf16.msra.mxu0 %v4246_v39 }
 0x514   : > { %v3865_v29 = vpack.c.bf16 %v2161_v19, %v2161_v19  ;;  %v3868_v31 = vpack.c.bf16 %v2164_v22, %v2164_v22  ;;  %v2133_v32 = vadd.f32 %v4072_v24, %v5207_v47  ;;  %v2159_v46 = vmul.f32 %v4423_v36, %v2127_v23  ;;  %v4247_v47 = vld [vmem:[%s4757_s13 + $0x10] sm:$0xff]   ;;  %v4427_v48 = vpop.eup %4426  ;;  %v3751_v19 = vld [vmem:[%s5665_s30] ss:$0 sm:$0xff] }
 0x515   : > { %v2043_v35 = vpop.f32.mrf.mxu0  ;;  %v2162_v38 = vmul.f32 %v4425_v33, %v2130_v63  ;;  %v4429_v37 = vpop.eup %4428  ;;  %4091 = vmatprep.subr.bf16.mxu0 %v4247_v47  ;;  %v4478_v36 = vld [vmem:[#allocation2] sm:$0xff]  ;;  %v4479_v33 = vld [vmem:[#allocation2 + $0x8] sm:$0xff] }
 0x516   : > { %v2165_v15 = vmul.f32 %v4421_v34, %v2133_v32  ;;  %2235 = vrot.lane.b32.xlu0 %v3868_v31, %s4586_s18  ;;  %2208 = vrot.lane.b32.xlu1 %v3865_v29, %s4587_s29  ;;  %v2131_v28 = vadd.f32 %v2043_v35, %v5214_v54  ;;  %v3863_v41 = vpack.c.bf16 %v2159_v46, %v2159_v46  ;;  %v4431_v59 = vpop.eup %4430  ;;  %v4476_v29 = vld [vmem:[#allocation2 + $0x10] sm:$0xff]  ;;  %v4477_v34 = vld [vmem:[#allocation2 + $0x18] sm:$0xff] }
 0x517   : > { %v4079_v42 = vpop.f32.mrf.mxu1  ;;  %v3866_v53 = vpack.c.bf16 %v2162_v38, %v2162_v38  ;;  %4092 = vmatpush3.bf16.msra.mxu0 %v4247_v47  ;;  %v4433_v1 = vpop.eup %4432  ;;  %v4255_v46 = vld [vmem:[%s4780_s4 + $0xe8] ss:$16 sps:$4 sm:$0xff]   ;;  %v4257_v38 = vld [vmem:[%s4780_s4 + $0xec] ss:$16 sps:$4 sm:$0xff]  }
 0x518   : > { %v3869_v44 = vpack.c.bf16 %v2165_v15, %v2165_v15  ;;  %v2163_v0 = vmul.f32 %v4427_v48, %v2131_v28  ;;  %v2136_v13 = vadd.f32 %v4079_v42, %v5225_v3  ;;  %4093 = vmatprep.subr.bf16.mxu0 %v4248_v55  ;;  %v4435_v26 = vpop.eup %4434  ;;  %v4252_v42 = vld [vmem:[%s4780_s4 + $0xe0] ss:$16 sps:$4 sm:$0xff]  }
 0x519   : > { %v2107_v61 = vpop.f32.mrf.mxu1 }
 0x51a   : > { %v2134_v50 = vadd.f32 %v2107_v61, %v5216_v56  ;;  %2202 = vrot.lane.b32.xlu0 %v3862_v45, %s4587_s29  ;;  %2237 = vrot.lane.b32.xlu1 %v3869_v44, %s4586_s18  ;;  %v3867_v40 = vpack.c.bf16 %v2163_v0, %v2163_v0  ;;  %v2168_v62 = vmul.f32 %v4433_v1, %v2136_v13  ;;  %v4254_v45 = vld [vmem:[%s4780_s4 + $0xe4] ss:$16 sps:$4 sm:$0xff]   ;;  %v4263_v1 = vld [vmem:[%s4780_s4 + $0xcc] ss:$16 sps:$4 sm:$0xff]  }
 0x51b   : > { %v4080_v52 = vpop.f32.mrf.mxu1  ;;  %4094 = vmatpush3.bf16.msra.mxu0 %v4248_v55  ;;  %2699 = vmatprep.subr.bf16.mxu1 %v4254_v45 }
 0x51c   : > { %v2166_v54 = vmul.f32 %v4429_v37, %v2134_v50  ;;  %v2137_v25 = vadd.f32 %v4080_v52, %v5232_v7  ;;  %4095 = vmatprep.subr.bf16.mxu0 %v4249_v4  ;;  %2700 = vmatpush1.bf16.msra.mxu1 %v4252_v42 }
 0x51d   : > { %v2110_v5 = vpop.f32.mrf.mxu1 }
 0x51e   : > { %v2135_v56 = vadd.f32 %v2110_v5, %v5223_v11  ;;  %2231 = vrot.lane.b32.xlu0 %v3866_v53, %s4586_s18  ;;  %2204 = vrot.lane.b32.xlu1 %v3863_v41, %s4587_s29  ;;  %v3870_v49 = vpack.c.bf16 %v2166_v54, %v2166_v54  ;;  %v3872_v11 = vpack.c.bf16 %v2168_v62, %v2168_v62  ;;  %v4261_v62 = vld [vmem:[%s4780_s4 + $0xc8] ss:$16 sps:$4 sm:$0xff]  }
 0x51f   : > { %v2169_v14 = vmul.f32 %v4435_v26, %v2137_v25  ;;  %4096 = vmatpush3.bf16.msra.mxu0 %v4249_v4  ;;  %v4269_v25 = vld [vmem:[%s4780_s4 + $0xac] ss:$16 sps:$4 sm:$0xff]   ;;  %v4267_v26 = vld [vmem:[%s4780_s4 + $0xa8] ss:$16 sps:$4 sm:$0xff]  }
 0x520   : > { %v2167_v3 = vmul.f32 %v4431_v59, %v2135_v56  ;;  %2752 = vmatprep.subr.bf16.mxu0 %v4257_v38  ;;  %v4260_v56 = vld [vmem:[%s4780_s4 + $0xc4] ss:$16 sps:$4 sm:$0xff]   ;;  %v3762_v38 = vld [vmem:[%s610_s28] ss:$0 sm:$0xff] }
 0x521   : > { %v3873_v2 = vpack.c.bf16 %v2169_v14, %v2169_v14  ;;  %2701 = vmatprep.subr.bf16.mxu1 %v4260_v56  ;;  %v4275_v14 = vld [vmem:[%s4780_s4 + $0x8c] ss:$16 sps:$4 sm:$0xff]  }
 0x522   : > { %2233 = vrot.lane.b32.xlu1 %v3867_v40, %s4586_s18  ;;  %2260 = vrot.lane.b32.xlu0 %v3870_v49, %s4585_s19  ;;  %v3871_v51 = vpack.c.bf16 %v2167_v3, %v2167_v3  ;;  %v4258_v40 = vld [vmem:[%s4780_s4 + $0xc0] ss:$16 sps:$4 sm:$0xff]   ;;  %v4266_v49 = vld [vmem:[%s4780_s4 + $0xa4] ss:$16 sps:$4 sm:$0xff]  }
 0x523   : > { %2702 = vmatpush1.bf16.msra.mxu1 %v4258_v40  ;;  %v4264_v3 = vld [vmem:[%s4780_s4 + $0xa0] ss:$16 sps:$4 sm:$0xff]   ;;  %v4301_v40 = vld [vmem:[%s4791_s1 + $0xf8] sm:$0xff]  }
 0x524   : > { %2703 = vmatprep.subr.bf16.mxu1 %v4266_v49  ;;  %v4303_v49 = vld [vmem:[%s4791_s1 + $0xb8] sm:$0xff]  }
 0x526   : > { %2262 = vrot.lane.b32.xlu1 %v3871_v51, %s4585_s19  ;;  %2264 = vrot.lane.b32.xlu0 %v3872_v11, %s4585_s19  ;;  %v4272_v11 = vld [vmem:[%s4780_s4 + $0x84] ss:$16 sps:$4 sm:$0xff]   ;;  %v4270_v51 = vld [vmem:[%s4780_s4 + $0x80] ss:$16 sps:$4 sm:$0xff]  }
 0x527   : > { %2704 = vmatpush1.bf16.msra.mxu1 %v4264_v3  ;;  %v4306_v3 = vld [vmem:[%s4791_s1 + $0x30] sm:$0xff]  }
 0x528   : > { %2705 = vmatprep.subr.bf16.mxu1 %v4272_v11  ;;  %v4308_v11 = vld [vmem:[%s4791_s1 + $0x68] sm:$0xff]  }
 0x52a   : > { %2266 = vrot.lane.b32.xlu1 %v3873_v2, %s4585_s19  ;;  %v4273_v2 = vld [vmem:[%s4780_s4 + $0x88] ss:$16 sps:$4 sm:$0xff]   ;;  %s5669_s19 = sld [smem:[#allocation26_spill]] (%p5521_p6) }
 0x52b   : > { %2706 = vmatpush1.bf16.msra.mxu1 %v4270_v51  ;;  %v4310_v51 = vld [vmem:[%s4791_s1 + $0x28] sm:$0xff]  }
 0x584   : > { %v2207_v8 = vpop.permute.xlu1 %2206 }
 0x585   : > { %2217 = vst.msk [vmem:[#allocation4 + $0x8] sm:$0xf] %vm2214_vm2, %v2207_v8  ;;  %v4278_v8 = vld [vmem:[%s4780_s4 + $0x64] ss:$16 sps:$4 sm:$0xff]  }
 0x586   : > { %2707 = vmatprep.subr.bf16.mxu1 %v4278_v8  ;;  %v4312_v8 = vld [vmem:[%s4791_s1 + $0x60] sm:$0xff]  }
 0x588   : > { %v2209_v27 = vpop.permute.xlu1 %2208  ;;  %v2236_v57 = vpop.permute.xlu0 %2235 }
 0x589   : > { %2218 = vst.msk [vmem:[#allocation4 + $0xc] sm:$0xf] %vm2214_vm2, %v2209_v27  ;;  %v4276_v27 = vld [vmem:[%s4780_s4 + $0x60] ss:$16 sps:$4 sm:$0xff]  }
 0x58a   : > { %2246 = vst.msk [vmem:[#allocation4 + $0x8] sm:$0xf] %vm2243_vm3, %v2236_v57  ;;  %v4279_v57 = vld [vmem:[%s4780_s4 + $0x68] ss:$16 sps:$4 sm:$0xff]   ;;  %2708 = vmatpush1.bf16.msra.mxu1 %v4276_v27  ;;  %v4313_v27 = vld [vmem:[%s4791_s1 + $0xe0] sm:$0xff]  }
 0x58c   : > { %v2238_v10 = vpop.permute.xlu1 %2237  ;;  %v2203_v30 = vpop.permute.xlu0 %2202 }
 0x58d   : > { %2247 = vst.msk [vmem:[#allocation4 + $0xc] sm:$0xf] %vm2243_vm3, %v2238_v10  ;;  %v4281_v10 = vld [vmem:[%s4780_s4 + $0x6c] ss:$16 sps:$4 sm:$0xff]  }
 0x58e   : > { %2215 = vst.msk [vmem:[#allocation4] sm:$0xf] %vm2214_vm2, %v2203_v30  ;;  %v4284_v30 = vld [vmem:[%s4780_s4 + $0x44] ss:$16 sps:$4 sm:$0xff]  }
 0x58f   : > { %2709 = vmatprep.subr.bf16.mxu1 %v4284_v30  ;;  %v4316_v30 = vld [vmem:[%s4791_s1 + $0x58] sm:$0xff]  }
 0x590   : > { %v2205_v7 = vpop.permute.xlu1 %2204  ;;  %v2232_v60 = vpop.permute.xlu0 %2231 }
 0x591   : > { %2216 = vst.msk [vmem:[#allocation4 + $0x4] sm:$0xf] %vm2214_vm2, %v2205_v7  ;;  %v4287_v7 = vld [vmem:[%s4780_s4 + $0x4c] ss:$16 sps:$4 sm:$0xff]  }
 0x592   : > { %2244 = vst.msk [vmem:[#allocation4] sm:$0xf] %vm2243_vm3, %v2232_v60  ;;  %v4282_v60 = vld [vmem:[%s4780_s4 + $0x40] ss:$16 sps:$4 sm:$0xff]  }
 0x593   : > { %2710 = vmatpush1.bf16.msra.mxu1 %v4282_v60  ;;  %v4318_v60 = vld [vmem:[%s4791_s1 + $0x18] sm:$0xff]  }
 0x594   : > { %v2234_v16 = vpop.permute.xlu1 %2233  ;;  %v2261_v6 = vpop.permute.xlu0 %2260 }
 0x595   : > { %2245 = vst.msk [vmem:[#allocation4 + $0x4] sm:$0xf] %vm2243_vm3, %v2234_v16  ;;  %v4285_v16 = vld [vmem:[%s4780_s4 + $0x48] ss:$16 sps:$4 sm:$0xff]  }
 0x596   : > { %2273 = vst.msk [vmem:[#allocation4] sm:$0xf] %vm2272_vm4, %v2261_v6  ;;  %v4290_v6 = vld [vmem:[%s4780_s4 + $0x24] ss:$16 sps:$4 sm:$0xff]  }
 0x597   : > { %2711 = vmatprep.subr.bf16.mxu1 %v4290_v6  ;;  %v4320_v6 = vld [vmem:[%s4791_s1 + $0x50] sm:$0xff]  }
 0x598   : > { %v2263_v12 = vpop.permute.xlu1 %2262  ;;  %v2265_v18 = vpop.permute.xlu0 %2264 }
 0x599   : > { %2274 = vst.msk [vmem:[#allocation4 + $0x4] sm:$0xf] %vm2272_vm4, %v2263_v12  ;;  %2275 = vst.msk [vmem:[#allocation4 + $0x8] sm:$0xf] %vm2272_vm4, %v2265_v18  ;;  %v4293_v12 = vld [vmem:[%s4780_s4 + $0x2c] ss:$16 sps:$4 sm:$0xff]  }
 0x59a   : > { %v4288_v18 = vld [vmem:[%s4780_s4 + $0x20] ss:$16 sps:$4 sm:$0xff]  }
 0x59b   : > { %2712 = vmatpush1.bf16.msra.mxu1 %v4288_v18  ;;  %v4322_v18 = vld [vmem:[%s4791_s1 + $0x10] sm:$0xff]  }
 0x59c   : > { %v2267_v20 = vpop.permute.xlu1 %2266 }
 0x59d   : > { %2276 = vst.msk [vmem:[#allocation4 + $0xc] sm:$0xf] %vm2272_vm4, %v2267_v20  ;;  %v4291_v20 = vld [vmem:[%s4780_s4 + $0x28] ss:$16 sps:$4 sm:$0xff]  }
 0x5a0   : > { %v4250_v21 = vld [vmem:[#allocation4] sm:$0xff]  }
 0x5a1   : > { %4097 = vmatprep.mubr.bf16.mxu0 %v4250_v21  ;;  %v4296_v21 = vld [vmem:[%s4780_s4 + $0x4] ss:$16 sps:$4 sm:$0xff]  }
 0x5a2   : > { %2713 = vmatprep.subr.bf16.mxu1 %v4296_v21  ;;  %v4324_v21 = vld [vmem:[%s4791_s1 + $0x48] sm:$0xff]  }
 0x5a4   : > { %v4251_v9 = vld [vmem:[#allocation4 + $0x8] sm:$0xff]  }
 0x5a5   : > { %4098 = vmatmul.mubr.bf16.vlgmr.msra.gmra.mxu0 %v4251_v9  ;;  %v4299_v9 = vld [vmem:[%s4780_s4 + $0xc] ss:$16 sps:$4 sm:$0xff]  }
 0x5a6   : > { %2784 = vmatprep.mubr.bf16.mxu0 %v4584_v43  ;;  %2753 = vmatpush1.bf16.msra.mxu0 %v4255_v46 }
 0x5a7   : > { %2754 = vmatprep.subr.bf16.mxu0 %v4263_v1 }
 0x5aa   : > { %2755 = vmatpush1.bf16.msra.mxu0 %v4261_v62  ;;  %v4302_v62 = vld [vmem:[%s4791_s1 + $0x38] sm:$0xff]  }
 0x5ab   : > { %2756 = vmatprep.subr.bf16.mxu0 %v4269_v25  ;;  %v4305_v25 = vld [vmem:[%s4791_s1 + $0xf0] sm:$0xff]  }
 0x5ae   : > { %2757 = vmatpush1.bf16.msra.mxu0 %v4267_v26  ;;  %v4307_v26 = vld [vmem:[%s4791_s1 + $0xb0] sm:$0xff]  }
 0x5af   : > { %2758 = vmatprep.subr.bf16.mxu0 %v4275_v14  ;;  %v4309_v14 = vld [vmem:[%s4791_s1 + $0xe8] sm:$0xff]  }
 0x5b2   : > { %2759 = vmatpush1.bf16.msra.mxu0 %v4273_v2  ;;  %v4311_v2 = vld [vmem:[%s4791_s1 + $0xa8] sm:$0xff]  }
 0x5b3   : > { %2760 = vmatprep.subr.bf16.mxu0 %v4281_v10  ;;  %v4315_v10 = vld [vmem:[%s4791_s1 + $0xa0] sm:$0xff]  }
 0x5b6   : > { %2761 = vmatpush1.bf16.msra.mxu0 %v4279_v57  ;;  %v4314_v57 = vld [vmem:[%s4791_s1 + $0x20] sm:$0xff]  }
 0x5b7   : > { %2762 = vmatprep.subr.bf16.mxu0 %v4287_v7  ;;  %v4317_v7 = vld [vmem:[%s4791_s1 + $0xd8] sm:$0xff]  }
 0x5ba   : > { %2763 = vmatpush1.bf16.msra.mxu0 %v4285_v16  ;;  %v4319_v16 = vld [vmem:[%s4791_s1 + $0x98] sm:$0xff]  }
 0x5bb   : > { %2764 = vmatprep.subr.bf16.mxu0 %v4293_v12  ;;  %v4321_v12 = vld [vmem:[%s4791_s1 + $0xd0] sm:$0xff]  }
 0x5be   : > { %2765 = vmatpush1.bf16.msra.mxu0 %v4291_v20  ;;  %v4323_v20 = vld [vmem:[%s4791_s1 + $0x90] sm:$0xff]  }
 0x5bf   : > { %2766 = vmatprep.subr.bf16.mxu0 %v4299_v9  ;;  %v4325_v9 = vld [vmem:[%s4791_s1 + $0xc8] sm:$0xff]  }
 0x665   : > { %v4099_v17 = vpop.f32.mrf.mxu0 }
 0x666   : > { %v2407_v24 = vadd.f32 %v4099_v17, %v3751_v19  ;;  %v4294_v17 = vld [vmem:[%s4780_s4] ss:$16 sps:$4 sm:$0xff]  }
 0x667   : > { %v2398_v22 = vpop.f32.mrf.mxu0  ;;  %2714 = vmatpush1.bf16.msra.mxu1 %v4294_v17  ;;  %v4326_v17 = vld [vmem:[%s4791_s1 + $0x8] sm:$0xff]  }
 0x668   : > { %v2399_v58 = vadd.f32 %v3751_v19, %v2398_v22  ;;  %v5272_v35 = vadd.f32 %v4477_v34, %v2407_v24 }
 0x669   : > { %v4100_v23 = vpop.f32.mrf.mxu0 }
 0x66a   : > { %v5269_v31 = vadd.f32 %v4476_v29, %v2399_v58  ;;  %v2410_v39 = vadd.f32 %v4100_v23, %v3751_v19 }
 0x66b   : > { %v2401_v63 = vpop.f32.mrf.mxu0 }
 0x66c   : > { %v2402_v32 = vadd.f32 %v3751_v19, %v2401_v63  ;;  %2419 = vadd.xlane.f32.xlu0 %v5269_v31  ;;  %v5278_v28 = vadd.f32 %v4479_v33, %v2410_v39  ;;  %v4297_v19 = vld [vmem:[%s4780_s4 + $0x8] ss:$16 sps:$4 sm:$0xff]  }
 0x66d   : > { %2767 = vmatpush1.bf16.msra.mxu0 %v4297_v19  ;;  %v4327_v19 = vld [vmem:[%s4791_s1 + $0x88] sm:$0xff]  }
 0x66e   : > { %v5274_v15 = vadd.f32 %v4478_v36, %v2402_v32  ;;  %3969 = vmatprep.subr.bf16.mxu0 %v4301_v40 }
 0x670   : > { %2421 = vadd.xlane.f32.xlu1 %v5274_v15  ;;  %2423 = vadd.xlane.f32.xlu0 %v5272_v35 }
 0x674   : > { %2425 = vadd.xlane.f32.xlu0 %v5278_v28 }
 0x6f5   : > { %v2420_v44 = vpop.xlane.xlu0 %2419 }
 0x6f6   : > { %v2427_v61 = vmul.f32 0.0078125, %v2420_v44 }
 0x6f8   : > { %v5286_v47 = vsub.f32 %v5269_v31, %v2427_v61 }
 0x6f9   : > { %v2422_v48 = vpop.xlane.xlu1 %2421  ;;  %v2424_v50 = vpop.xlane.xlu0 %2423 }
 0x6fa   : > { %v2428_v37 = vmul.f32 0.0078125, %v2422_v48  ;;  %v2429_v0 = vmul.f32 0.0078125, %v2424_v50  ;;  %v2435_v52 = vmul.f32 %v5286_v47, %v5286_v47 }
 0x6fc   : > { %v5291_v41 = vsub.f32 %v5274_v15, %v2428_v37  ;;  %v5294_v53 = vsub.f32 %v5272_v35, %v2429_v0  ;;  %2439 = vadd.xlane.f32.xlu0 %v2435_v52  ;;  %v3763_v37 = vld [vmem:[%s5666_s20] ss:$0 sm:$0xff] }
 0x6fd   : > { %v2426_v13 = vpop.xlane.xlu0 %2425 }
 0x6fe   : > { %v2430_v54 = vmul.f32 0.0078125, %v2426_v13  ;;  %v2436_v5 = vmul.f32 %v5291_v41, %v5291_v41  ;;  %v2437_v55 = vmul.f32 %v5294_v53, %v5294_v53 }
 0x700   : > { %v5301_v4 = vsub.f32 %v5278_v28, %v2430_v54  ;;  %2441 = vadd.xlane.f32.xlu1 %v2436_v5  ;;  %2443 = vadd.xlane.f32.xlu0 %v2437_v55 }
 0x702   : > { %v2438_v59 = vmul.f32 %v5301_v4, %v5301_v4 }
 0x704   : > { %2445 = vadd.xlane.f32.xlu1 %v2438_v59 }
 0x785   : > { %v2440_v22 = vpop.xlane.xlu0 %2439 }
 0x786   : > { %v2447_v58 = vmul.f32 0.0078125, %v2440_v22  ;;  %v4328_v22 = vld [vmem:[%s4791_s1 + $0x40] sm:$0xff]  }
 0x788   : > { %v2451_v23 = vadd.f32 1e-05, %v2447_v58  ;;  %v4329_v58 = vld [vmem:[%s4791_s1 + $0xc0] sm:$0xff]  }
 0x789   : > { %v2442_v24 = vpop.xlane.xlu1 %2441  ;;  %v2444_v29 = vpop.xlane.xlu0 %2443 }
 0x78a   : > { %4436 = vrsqrt.f32 %v2451_v23  ;;  %v2448_v63 = vmul.f32 0.0078125, %v2442_v24  ;;  %v2449_v32 = vmul.f32 0.0078125, %v2444_v29  ;;  %v4330_v23 = vld [vmem:[%s4791_s1] sm:$0xff]   ;;  %v2519_v29 = vlaneseq }
 0x78b   : > { %v4331_v24 = vld [vmem:[%s4791_s1 + $0x80] sm:$0xff]  }
 0x78c   : > { %v2452_v34 = vadd.f32 1e-05, %v2448_v63  ;;  %v2453_v39 = vadd.f32 1e-05, %v2449_v32  ;;  %v2520_v63 = vshrl.u32 %v2519_v29, 7 }
 0x78d   : > { %v2446_v36 = vpop.xlane.xlu1 %2445 }
 0x78e   : > { %4438 = vrsqrt.f32 %v2452_v34  ;;  %v2450_v33 = vmul.f32 0.0078125, %v2446_v36  ;;  %v2521_v32 = vsub.s32 0, %v2520_v63  ;;  %v2529_v34 = vsub.s32 2, %v2520_v63 }
 0x78f   : > { %4440 = vrsqrt.f32 %v2453_v39  ;;  %v2517_v39 = vld [vmem:[%s4786_s12] sm:$0xf]  ;;  %v2525_v36 = vsub.s32 1, %v2520_v63 }
 0x790   : > { %v2454_v42 = vadd.f32 1e-05, %v2450_v33  ;;  %v2533_v33 = vsub.s32 3, %v2520_v63 }
 0x792   : > { %4442 = vrsqrt.f32 %v2454_v42  ;;  %v5382_v42 = vrot.slane %v2517_v39, %v2521_v32 }
 0x797   : > { %v4437_v45 = vpop.eup %4436 }
 0x798   : > { %v2459_v46 = vmul.f32 %v4437_v45, %v5286_v47  ;;  %v5384_v45 = vrot.slane %v2517_v39, %v2529_v34 }
 0x79a   : > { %v2469_v48 = vmul.f32 %v3762_v38, %v2459_v46 }
 0x79b   : > { %v4439_v44 = vpop.eup %4438 }
 0x79c   : > { %v2460_v61 = vmul.f32 %v4439_v44, %v5291_v41  ;;  %v4441_v50 = vpop.eup %4440  ;;  %v2479_v13 = vadd.f32 %v3763_v37, %v2469_v48  ;;  %v5386_v44 = vrot.slane %v2517_v39, %v2525_v36 }
 0x79d   : > { %v2461_v54 = vmul.f32 %v4441_v50, %v5294_v53 }
 0x79e   : > { %v2470_v0 = vmul.f32 %v3762_v38, %v2460_v61  ;;  %v5388_v61 = vrot.slane %v2517_v39, %v2533_v33 }
 0x79f   : > { %v4443_v52 = vpop.eup %4442  ;;  %v2471_v59 = vmul.f32 %v3762_v38, %v2461_v54 }
 0x7a0   : > { %v2480_v47 = vadd.f32 %v3763_v37, %v2470_v0  ;;  %v2462_v5 = vmul.f32 %v4443_v52, %v5301_v4  ;;  %v4300_v4 = vld [vmem:[%s4791_s1 + $0x78] sm:$0xff]  }
 0x7a1   : > { %v2481_v1 = vadd.f32 %v3763_v37, %v2471_v59  ;;  %3941 = vmatprep.subr.bf16.mxu1 %v4300_v4 }
 0x7a2   : > { %v2483_v41 = vpack.c.bf16 %v2480_v47, %v2479_v13  ;;  %v2472_v55 = vmul.f32 %v3762_v38, %v2462_v5 }
 0x7a4   : > { %2732 = vmatmul.mubr.bf16.vlgmr.msra.gmra.mxu1 %v2483_v41  ;;  %2785 = vmatmul.mubr.bf16.vlgmr.msra.gmra.mxu0 %v2483_v41  ;;  %v2482_v56 = vadd.f32 %v3763_v37, %v2472_v55 }
 0x7a5   : > { %2741 = vmatprep.mubr.bf16.mxu1 %v4584_v43  ;;  %2794 = vmatprep.mubr.bf16.mxu0 %v4584_v43  ;;  %v4304_v43 = vld [vmem:[%s4791_s1 + $0x70] sm:$0xff]  }
 0x7a6   : > { %v2484_v53 = vpack.c.bf16 %v2482_v56, %v2481_v1  ;;  %3942 = vmatpush3.bf16.msra.mxu1 %v4302_v62  ;;  %3970 = vmatpush3.bf16.msra.mxu0 %v4303_v49 }
 0x7a7   : > { %3943 = vmatprep.subr.bf16.mxu1 %v4304_v43  ;;  %3971 = vmatprep.subr.bf16.mxu0 %v4305_v25 }
 0x7aa   : > { %3944 = vmatpush3.bf16.msra.mxu1 %v4306_v3  ;;  %3972 = vmatpush3.bf16.msra.mxu0 %v4307_v26 }
 0x7ab   : > { %3945 = vmatprep.subr.bf16.mxu1 %v4308_v11  ;;  %3973 = vmatprep.subr.bf16.mxu0 %v4309_v14 }
 0x7ac   : > { %2742 = vmatmul.mubr.bf16.gmra.mxu1 %v2484_v53  ;;  %2795 = vmatmul.mubr.bf16.gmra.mxu0 %v2484_v53 }
 0x7ae   : > { %3946 = vmatpush3.bf16.msra.mxu1 %v4310_v51  ;;  %3974 = vmatpush3.bf16.msra.mxu0 %v4311_v2 }
 0x7af   : > { %3947 = vmatprep.subr.bf16.mxu1 %v4312_v8  ;;  %3975 = vmatprep.subr.bf16.mxu0 %v4313_v27 }
 0x7b2   : > { %3948 = vmatpush3.bf16.msra.mxu1 %v4314_v57  ;;  %3976 = vmatpush3.bf16.msra.mxu0 %v4315_v10 }
 0x7b3   : > { %3949 = vmatprep.subr.bf16.mxu1 %v4316_v30  ;;  %3977 = vmatprep.subr.bf16.mxu0 %v4317_v7 }
 0x7b6   : > { %3950 = vmatpush3.bf16.msra.mxu1 %v4318_v60  ;;  %3978 = vmatpush3.bf16.msra.mxu0 %v4319_v16 }
 0x7b7   : > { %3951 = vmatprep.subr.bf16.mxu1 %v4320_v6  ;;  %3979 = vmatprep.subr.bf16.mxu0 %v4321_v12 }
 0x7ba   : > { %3952 = vmatpush3.bf16.msra.mxu1 %v4322_v18  ;;  %3980 = vmatpush3.bf16.msra.mxu0 %v4323_v20 }
 0x7bb   : > { %3953 = vmatprep.subr.bf16.mxu1 %v4324_v21  ;;  %3981 = vmatprep.subr.bf16.mxu0 %v4325_v9 }
 0x7be   : > { %3954 = vmatpush3.bf16.msra.mxu1 %v4326_v17  ;;  %3982 = vmatpush3.bf16.msra.mxu0 %v4327_v19 }
 0x7bf   : > { %3955 = vmatprep.subr.bf16.mxu1 %v4328_v22  ;;  %3983 = vmatprep.subr.bf16.mxu0 %v4329_v58 }
 0x7c2   : > { %3956 = vmatpush3.bf16.msra.mxu1 %v4330_v23  ;;  %3984 = vmatpush3.bf16.msra.mxu0 %v4331_v24 }
 0x864   : > { %v2733_v46 = vpop.f32.mrf.mxu1  ;;  %v2786_v38 = vpop.f32.mrf.mxu0 }
 0x865   : > { %v5391_v48 = vadd.f32 %v2733_v46, %v5382_v42  ;;  %v5394_v50 = vadd.f32 %v2786_v38, %v5384_v45 }
 0x866   : > { %v2735_v37 = vpop.f32.mrf.mxu1  ;;  %v2788_v0 = vpop.f32.mrf.mxu0 }
 0x867   : > { %v2821_v52 = vmul.f32 0.044715, %v5391_v48  ;;  %v2823_v13 = vmul.f32 0.044715, %v5394_v50  ;;  %v5399_v47 = vadd.f32 %v2735_v37, %v5386_v44  ;;  %v5402_v54 = vadd.f32 %v2788_v0, %v5388_v61 }
 0x868   : > { %v2737_v5 = vpop.f32.mrf.mxu1  ;;  %v2790_v41 = vpop.f32.mrf.mxu0 }
 0x869   : > { %v2837_v55 = vmul.f32 %v2821_v52, %v5391_v48  ;;  %v2839_v59 = vmul.f32 %v2823_v13, %v5394_v50  ;;  %v5407_v56 = vadd.f32 %v2737_v5, %v5382_v42  ;;  %v5410_v1 = vadd.f32 %v2790_v41, %v5384_v45 }
 0x86a   : > { %v2739_v53 = vpop.f32.mrf.mxu1  ;;  %v2792_v4 = vpop.f32.mrf.mxu0  ;;  %v2822_v49 = vmul.f32 0.044715, %v5399_v47  ;;  %v2824_v25 = vmul.f32 0.044715, %v5402_v54 }
 0x86b   : > { %v2853_v40 = vmul.f32 %v2837_v55, %v5391_v48  ;;  %v2855_v62 = vmul.f32 %v2839_v59, %v5394_v50  ;;  %v2825_v43 = vmul.f32 0.044715, %v5407_v56  ;;  %v2827_v3 = vmul.f32 0.044715, %v5410_v1 }
 0x86c   : > { %v2743_v26 = vpop.f32.mrf.mxu1  ;;  %v2796_v11 = vpop.f32.mrf.mxu0  ;;  %v5421_v2 = vadd.f32 %v2739_v53, %v5386_v44  ;;  %v5425_v27 = vadd.f32 %v2792_v4, %v5388_v61  ;;  %v2838_v7 = vmul.f32 %v2822_v49, %v5399_v47  ;;  %v2840_v6 = vmul.f32 %v2824_v25, %v5402_v54 }
 0x86d   : > { %v2869_v14 = vadd.f32 %v2853_v40, %v5391_v48  ;;  %v2841_v51 = vmul.f32 %v2825_v43, %v5407_v56  ;;  %v2843_v8 = vmul.f32 %v2827_v3, %v5410_v1  ;;  %v2871_v30 = vadd.f32 %v2855_v62, %v5394_v50 }
 0x86e   : > { %v2745_v57 = vpop.f32.mrf.mxu1  ;;  %v2798_v10 = vpop.f32.mrf.mxu0  ;;  %v2826_v16 = vmul.f32 0.044715, %v5421_v2  ;;  %v2828_v18 = vmul.f32 0.044715, %v5425_v27  ;;  %v5435_v20 = vadd.f32 %v2743_v26, %v5382_v42  ;;  %v2854_v29 = vmul.f32 %v2838_v7, %v5399_v47 }
 0x86f   : > { %v2857_v60 = vmul.f32 %v2841_v51, %v5407_v56  ;;  %v2859_v12 = vmul.f32 %v2843_v8, %v5410_v1  ;;  %v2885_v9 = vmul.f32 0.7978846, %v2869_v14  ;;  %v5440_v22 = vadd.f32 %v2745_v57, %v5386_v44 }
 0x870   : > { %v2747_v21 = vpop.f32.mrf.mxu1  ;;  %v2842_v19 = vmul.f32 %v2826_v16, %v5421_v2  ;;  %v2800_v58 = vpop.f32.mrf.mxu0  ;;  %v2887_v24 = vmul.f32 0.7978846, %v2871_v30  ;;  %v5445_v63 = vadd.f32 %v2796_v11, %v5384_v45  ;;  %v2856_v34 = vmul.f32 %v2840_v6, %v5402_v54 }
 0x871   : > { %v2873_v17 = vadd.f32 %v2857_v60, %v5407_v56  ;;  %v2875_v23 = vadd.f32 %v2859_v12, %v5410_v1  ;;  %v2830_v32 = vmul.f32 0.044715, %v5440_v22  ;;  %v2844_v39 = vmul.f32 %v2828_v18, %v5425_v27 }
 0x872   : > { %v2829_v36 = vmul.f32 0.044715, %v5435_v20  ;;  %v5452_v33 = vadd.f32 %v2798_v10, %v5388_v61  ;;  %v2749_v46 = vpop.f32.mrf.mxu1  ;;  %4444 = vtanh.f32 %v2885_v9  ;;  %v2858_v37 = vmul.f32 %v2842_v19, %v5421_v2  ;;  %v2802_v52 = vpop.f32.mrf.mxu0 }
 0x873   : > { %v2889_v38 = vmul.f32 0.7978846, %v2873_v17  ;;  %v5456_v0 = vadd.f32 %v2747_v21, %v5382_v42  ;;  %v2891_v13 = vmul.f32 0.7978846, %v2875_v23  ;;  %v2846_v5 = vmul.f32 %v2830_v32, %v5440_v22 }
 0x874   : > { %v2832_v41 = vmul.f32 0.044715, %v5452_v33  ;;  %v5461_v55 = vadd.f32 %v2800_v58, %v5384_v45  ;;  %4446 = vtanh.f32 %v2887_v24  ;;  %v2831_v59 = vmul.f32 0.044715, %v5445_v63 }
 0x875   : > { %v2833_v53 = vmul.f32 0.044715, %v5456_v0  ;;  %v5466_v4 = vadd.f32 %v2749_v46, %v5386_v44  ;;  %v2860_v42 = vmul.f32 %v2844_v39, %v5425_v27  ;;  %v2845_v40 = vmul.f32 %v2829_v36, %v5435_v20 }
 0x876   : > { %v2848_v62 = vmul.f32 %v2832_v41, %v5452_v33  ;;  %v5472_v49 = vadd.f32 %v2802_v52, %v5388_v61  ;;  %4448 = vtanh.f32 %v2889_v38  ;;  %v2870_v43 = vadd.f32 %v2854_v29, %v5399_v47 }
 0x877   : > { %v2834_v45 = vmul.f32 0.044715, %v5466_v4  ;;  %v2874_v25 = vadd.f32 %v2858_v37, %v5421_v2  ;;  %4450 = vtanh.f32 %v2891_v13  ;;  %v2862_v44 = vmul.f32 %v2846_v5, %v5440_v22 }
 0x878   : > { %v2835_v3 = vmul.f32 0.044715, %v5461_v55  ;;  %v2836_v26 = vmul.f32 0.044715, %v5472_v49  ;;  %v2849_v11 = vmul.f32 %v2833_v53, %v5456_v0  ;;  %v2886_v61 = vmul.f32 0.7978846, %v2870_v43 }
 0x879   : > { %v2850_v14 = vmul.f32 %v2834_v45, %v5466_v4  ;;  %v2890_v51 = vmul.f32 0.7978846, %v2874_v25  ;;  %v2864_v8 = vmul.f32 %v2848_v62, %v5452_v33  ;;  %v2872_v10 = vadd.f32 %v2856_v34, %v5402_v54 }
 0x87a   : > { %v2852_v57 = vmul.f32 %v2836_v26, %v5472_v49  ;;  %v2876_v30 = vadd.f32 %v2860_v42, %v5425_v27  ;;  %v2847_v7 = vmul.f32 %v2831_v59, %v5445_v63  ;;  %4452 = vtanh.f32 %v2886_v61 }
 0x87b   : > { %v2866_v60 = vmul.f32 %v2850_v14, %v5466_v4  ;;  %4454 = vtanh.f32 %v2890_v51  ;;  %v2888_v6 = vmul.f32 0.7978846, %v2872_v10  ;;  %v2861_v18 = vmul.f32 %v2845_v40, %v5435_v20 }
 0x87c   : > { %v2868_v16 = vmul.f32 %v2852_v57, %v5472_v49  ;;  %v2892_v12 = vmul.f32 0.7978846, %v2876_v30  ;;  %v2851_v21 = vmul.f32 %v2835_v3, %v5461_v55  ;;  %v2878_v9 = vadd.f32 %v2862_v44, %v5440_v22 }
 0x87d   : > { %v2882_v17 = vadd.f32 %v2866_v60, %v5466_v4  ;;  %v2865_v19 = vmul.f32 %v2849_v11, %v5456_v0  ;;  %4456 = vtanh.f32 %v2888_v6  ;;  %v2880_v58 = vadd.f32 %v2864_v8, %v5452_v33 }
 0x87e   : > { %4458 = vtanh.f32 %v2892_v12  ;;  %v2894_v23 = vmul.f32 0.7978846, %v2878_v9  ;;  %v2884_v32 = vadd.f32 %v2868_v16, %v5472_v49  ;;  %v2863_v39 = vmul.f32 %v2847_v7, %v5445_v63 }
 0x87f   : > { %v2898_v24 = vmul.f32 0.7978846, %v2882_v17  ;;  %v4445_v29 = vpop.eup %4444  ;;  %v2896_v34 = vmul.f32 0.7978846, %v2880_v58  ;;  %v2867_v36 = vmul.f32 %v2851_v21, %v5461_v55  ;;  %v2877_v46 = vadd.f32 %v2861_v18, %v5435_v20 }
 0x880   : > { %4460 = vtanh.f32 %v2894_v23  ;;  %v2900_v37 = vmul.f32 0.7978846, %v2884_v32  ;;  %v2881_v52 = vadd.f32 %v2865_v19, %v5456_v0  ;;  %v2879_v53 = vadd.f32 %v2863_v39, %v5445_v63 }
 0x881   : > { %v4447_v38 = vpop.eup %4446  ;;  %4462 = vtanh.f32 %v2898_v24  ;;  %v2893_v13 = vmul.f32 0.7978846, %v2877_v46  ;;  %v2883_v42 = vadd.f32 %v2867_v36, %v5461_v55  ;;  %v2806_v25 = vmul.f32 0.5, %v5399_v47 }
 0x882   : > { %4464 = vtanh.f32 %v2896_v34  ;;  %v2897_v41 = vmul.f32 0.7978846, %v2881_v52  ;;  %v2895_v62 = vmul.f32 0.7978846, %v2879_v53  ;;  %v2809_v3 = vmul.f32 0.5, %v5407_v56 }
 0x883   : > { %v4449_v5 = vpop.eup %4448  ;;  %4466 = vtanh.f32 %v2900_v37  ;;  %v2899_v45 = vmul.f32 0.7978846, %v2883_v42  ;;  %v2917_v11 = vadd.f32 1.0, %v4445_v29  ;;  %v2810_v14 = vmul.f32 0.5, %v5421_v2 }
 0x884   : > { %v4451_v59 = vpop.eup %4450  ;;  %4468 = vtanh.f32 %v2893_v13  ;;  %v2921_v40 = vadd.f32 1.0, %v4449_v5  ;;  %v2805_v57 = vmul.f32 0.5, %v5391_v48  ;;  %v2811_v10 = vmul.f32 0.5, %v5410_v1 }
 0x885   : > { %4470 = vtanh.f32 %v2897_v41  ;;  %v2923_v51 = vadd.f32 1.0, %v4451_v59  ;;  %v2919_v6 = vadd.f32 1.0, %v4447_v38  ;;  %v2808_v56 = vmul.f32 0.5, %v5402_v54 }
 0x886   : > { %4472 = vtanh.f32 %v2895_v62  ;;  %v2937_v30 = vmul.f32 %v2921_v40, %v2809_v3  ;;  %v2812_v12 = vmul.f32 0.5, %v5425_v27  ;;  %v2933_v2 = vmul.f32 %v2917_v11, %v2805_v57 }
 0x887   : > { %v4453_v43 = vpop.eup %4452  ;;  %4474 = vtanh.f32 %v2899_v45  ;;  %v2807_v9 = vmul.f32 0.5, %v5394_v50  ;;  %v2939_v19 = vmul.f32 %v2923_v51, %v2811_v10  ;;  %v2814_v34 = vmul.f32 0.5, %v5440_v22 }
 0x888   : > { %v4455_v44 = vpop.eup %4454  ;;  %v2918_v26 = vadd.f32 1.0, %v4453_v43  ;;  %v2949_v23 = vpack.c.bf16 %v2937_v30, %v2933_v2  ;;  %v2818_v54 = vmul.f32 0.5, %v5466_v4  ;;  %v2816_v50 = vmul.f32 0.5, %v5452_v33 }
 0x889   : > { %v2922_v61 = vadd.f32 1.0, %v4455_v44  ;;  %v2935_v32 = vmul.f32 %v2919_v6, %v2807_v9  ;;  %v2820_v46 = vmul.f32 0.5, %v5472_v49  ;;  %v2813_v22 = vmul.f32 0.5, %v5435_v20 }
 0x88a   : > { %v4457_v8 = vpop.eup %4456  ;;  %v2934_v60 = vmul.f32 %v2918_v26, %v2806_v25  ;;  %v2817_v4 = vmul.f32 0.5, %v5456_v0  ;;  %v2815_v20 = vmul.f32 0.5, %v5445_v63  ;;  %v2819_v0 = vmul.f32 0.5, %v5461_v55 }
 0x88b   : > { %v4459_v7 = vpop.eup %4458  ;;  %v2938_v47 = vmul.f32 %v2922_v61, %v2810_v14  ;;  %v2920_v16 = vadd.f32 1.0, %v4457_v8  ;;  %v2951_v52 = vpack.c.bf16 %v2939_v19, %v2935_v32 }
 0x88c   : > { %v2924_v18 = vadd.f32 1.0, %v4459_v7 }
 0x88d   : > { %v4461_v21 = vpop.eup %4460  ;;  %v2950_v17 = vpack.c.bf16 %v2938_v47, %v2934_v60  ;;  %v2936_v58 = vmul.f32 %v2920_v16, %v2808_v56  ;;  %v3828_v56 = vld [vmem:[%s630_s26] ss:$0 sm:$0xff] }
 0x88e   : > { %v4463_v48 = vpop.eup %4462  ;;  %v2940_v1 = vmul.f32 %v2924_v18, %v2812_v12  ;;  %v2926_v24 = vadd.f32 1.0, %v4461_v21 }
 0x88f   : > { %v4465_v29 = vpop.eup %4464  ;;  %3245 = vmatprep.mubr.bf16.mxu1 %v2950_v17  ;;  %v2930_v27 = vadd.f32 1.0, %v4463_v48 }
 0x890   : > { %v4467_v39 = vpop.eup %4466  ;;  %v2952_v36 = vpack.c.bf16 %v2940_v1, %v2936_v58  ;;  %3246 = vmatmul.mubr.bf16.vlgmr.msra.gmra.mxu1 %v2949_v23  ;;  %v2928_v38 = vadd.f32 1.0, %v4465_v29  ;;  %v2942_v13 = vmul.f32 %v2926_v24, %v2814_v34 }
 0x891   : > { %v4469_v37 = vpop.eup %4468  ;;  %v2946_v5 = vmul.f32 %v2930_v27, %v2818_v54  ;;  %v2932_v41 = vadd.f32 1.0, %v4467_v39 }
 0x892   : > { %v4471_v59 = vpop.eup %4470  ;;  %3294 = vmatprep.mubr.bf16.mxu0 %v2952_v36  ;;  %v2925_v53 = vadd.f32 1.0, %v4469_v37  ;;  %v2944_v40 = vmul.f32 %v2928_v38, %v2816_v50 }
 0x893   : > { %3295 = vmatmul.mubr.bf16.vlgmr.msra.gmra.mxu0 %v2951_v52  ;;  %v2954_v42 = vpack.c.bf16 %v2946_v5, %v2942_v13  ;;  %v2948_v62 = vmul.f32 %v2932_v41, %v2820_v46  ;;  %v2929_v33 = vadd.f32 1.0, %v4471_v59  ;;  %v4473_v45 = vpop.eup %4472 }
 0x894   : > { %v2941_v43 = vmul.f32 %v2925_v53, %v2813_v22  ;;  %v4475_v44 = vpop.eup %4474  ;;  %v2927_v3 = vadd.f32 1.0, %v4473_v45 }
 0x895   : > { %3253 = vmatprep.mubr.bf16.mxu1 %v2954_v42  ;;  %v2956_v49 = vpack.c.bf16 %v2948_v62, %v2944_v40  ;;  %v2945_v25 = vmul.f32 %v2929_v33, %v2817_v4  ;;  %v2931_v11 = vadd.f32 1.0, %v4475_v44 }
 0x896   : > { %v2943_v14 = vmul.f32 %v2927_v3, %v2815_v20 }
 0x897   : > { %3302 = vmatprep.mubr.bf16.mxu0 %v2956_v49  ;;  %v2953_v26 = vpack.c.bf16 %v2945_v25, %v2941_v43  ;;  %v2947_v61 = vmul.f32 %v2931_v11, %v2819_v0 }
 0x899   : > { %3254 = vmatmul.mubr.bf16.gmra.mxu1 %v2953_v26  ;;  %v2955_v51 = vpack.c.bf16 %v2947_v61, %v2943_v14 }
 0x89b   : > { %3303 = vmatmul.mubr.bf16.gmra.mxu0 %v2955_v51 }
 0x950   : > { %v3957_v8 = vpop.f32.mrf.mxu1 }
 0x952   : > { %v3958_v57 = vpop.f32.mrf.mxu1 }
 0x953   : > { %v3985_v10 = vpop.f32.mrf.mxu0  ;;  %v3959_v30 = vadd.f32 %v3958_v57, %v3957_v8 }
 0x954   : > { %v3960_v63 = vpop.f32.mrf.mxu1 }
 0x955   : > { %v3986_v7 = vpop.f32.mrf.mxu0 }
 0x956   : > { %v3987_v55 = vadd.f32 %v3986_v7, %v3985_v10  ;;  %v3961_v60 = vpop.f32.mrf.mxu1 }
 0x957   : > { %v3988_v47 = vpop.f32.mrf.mxu0  ;;  %v3962_v6 = vadd.f32 %v3961_v60, %v3960_v63 }
 0x958   : > { %v3297_v16 = vadd.f32 %v3987_v55, %v3959_v30  ;;  %v3829_v30 = vld [vmem:[%s5668_s14] ss:$0 sm:$0xff] (%p5521_p6) }
 0x959   : > { %v3989_v12 = vpop.f32.mrf.mxu0  ;;  %v3963_v18 = vpop.f32.mrf.mxu1 }
 0x95a   : > { %v3311_v2 = vadd.f32 %v3297_v16, %v5269_v31  ;;  %v3990_v21 = vadd.f32 %v3989_v12, %v3988_v47  ;;  %v3830_v47 = vld [vmem:[%s5669_s19] ss:$0 sm:$0xff] (%p5521_p6) }
 0x95b   : > { %v3964_v9 = vpop.f32.mrf.mxu1  ;;  %v3991_v48 = vpop.f32.mrf.mxu0 }
 0x95c   : > { %v3322_v17 = vadd.f32 %v3828_v56, %v3311_v2  ;;  %v3300_v19 = vadd.f32 %v3990_v21, %v3962_v6  ;;  %v3965_v23 = vadd.f32 %v3964_v9, %v3963_v18 }
 0x95d   : > { %v3966_v58 = vpop.f32.mrf.mxu1  ;;  %v3992_v24 = vpop.f32.mrf.mxu0 }
 0x95e   : > { %3326 = vst [vmem:[#allocation2 + $0x10] sm:$0xff] %v3322_v17  ;;  %v3312_v1 = vadd.f32 %v3300_v19, %v5274_v15  ;;  %v3993_v34 = vadd.f32 %v3992_v24, %v3991_v48  ;;  %3337 = vadd.xlane.f32.xlu0 (%p5521_p6), %v3322_v17 }
 0x95f   : > { %v3967_v29 = vpop.f32.mrf.mxu1  ;;  %v3994_v54 = vpop.f32.mrf.mxu0 }
 0x960   : > { %v3323_v32 = vadd.f32 %v3828_v56, %v3312_v1  ;;  %v3305_v27 = vadd.f32 %v3993_v34, %v3965_v23  ;;  %v3968_v39 = vadd.f32 %v3967_v29, %v3966_v58 }
 0x961   : > { %v3995_v36 = vpop.f32.mrf.mxu0 }
 0x962   : > { %3327 = vst [vmem:[#allocation2] sm:$0xff] %v3323_v32  ;;  %v3313_v31 = vadd.f32 %v3305_v27, %v5272_v35  ;;  %v3996_v50 = vadd.f32 %v3995_v36, %v3994_v54  ;;  %3339 = vadd.xlane.f32.xlu0 (%p5521_p6), %v3323_v32 }
 0x964   : > { %v3324_v46 = vadd.f32 %v3828_v56, %v3313_v31  ;;  %v3308_v38 = vadd.f32 %v3996_v50, %v3968_v39 }
 0x966   : > { %3328 = vst [vmem:[#allocation2 + $0x18] sm:$0xff] %v3324_v46  ;;  %v3314_v37 = vadd.f32 %v3308_v38, %v5278_v28  ;;  %3334 = sbr.rel (!%p5521_p6) target bundleno = 2719 (0xa9f), region = 114  ;;  %3341 = vadd.xlane.f32.xlu1 (%p5521_p6), %v3324_v46 }
 0x968   : > { %v3325_v52 = vadd.f32 %v3828_v56, %v3314_v37 }
 0x96a   : > { %3329 = vst [vmem:[#allocation2 + $0x8] sm:$0xff] %v3325_v52  ;;  %3343 = vadd.xlane.f32.xlu1 (%p5521_p6), %v3325_v52 }
 0x9e7   : > { %v3338_v15 = vpop.xlane.xlu0 %3337 }
 0x9e8   : > { %v3345_v5 = vmul.f32 0.0078125, %v3338_v15 }
 0x9ea   : > { %v3349_v35 = vsub.f32 %v3322_v17, %v3345_v5 }
 0x9eb   : > { %v3340_v22 = vpop.xlane.xlu0 %3339 }
 0x9ec   : > { %v3346_v53 = vmul.f32 0.0078125, %v3340_v22  ;;  %v3353_v42 = vmul.f32 %v3349_v35, %v3349_v35 }
 0x9ee   : > { %v3350_v40 = vsub.f32 %v3323_v32, %v3346_v53  ;;  %3357 = vadd.xlane.f32.xlu0 %v3353_v42 }
 0x9ef   : > { %v3342_v13 = vpop.xlane.xlu1 %3341 }
 0x9f0   : > { %v3347_v41 = vmul.f32 0.0078125, %v3342_v13  ;;  %v3354_v45 = vmul.f32 %v3350_v40, %v3350_v40 }
 0x9f2   : > { %v3351_v59 = vsub.f32 %v3324_v46, %v3347_v41  ;;  %3359 = vadd.xlane.f32.xlu1 %v3354_v45 }
 0x9f3   : > { %v3344_v4 = vpop.xlane.xlu1 %3343 }
 0x9f4   : > { %v3348_v28 = vmul.f32 0.0078125, %v3344_v4  ;;  %v3355_v33 = vmul.f32 %v3351_v59, %v3351_v59 }
 0x9f6   : > { %v3352_v62 = vsub.f32 %v3325_v52, %v3348_v28  ;;  %3361 = vadd.xlane.f32.xlu0 %v3355_v33 }
 0x9f8   : > { %v3356_v49 = vmul.f32 %v3352_v62, %v3352_v62 }
 0x9fa   : > { %3363 = vadd.xlane.f32.xlu1 %v3356_v49 }
 0xa77   : > { %v3358_v43 = vpop.xlane.xlu0 %3357 }
 0xa78   : > { %v3365_v25 = vmul.f32 0.0078125, %v3358_v43 }
 0xa7a   : > { %v3369_v44 = vadd.f32 1e-05, %v3365_v25 }
 0xa7b   : > { %v3360_v3 = vpop.xlane.xlu1 %3359 }
 0xa7c   : > { %4480 = vrsqrt.f32 %v3369_v44  ;;  %v3366_v20 = vmul.f32 0.0078125, %v3360_v3 }
 0xa7e   : > { %v3370_v11 = vadd.f32 1e-05, %v3366_v20 }
 0xa7f   : > { %v3362_v26 = vpop.xlane.xlu0 %3361 }
 0xa80   : > { %v3367_v0 = vmul.f32 0.0078125, %v3362_v26  ;;  %4482 = vrsqrt.f32 %v3370_v11 }
 0xa82   : > { %v3371_v14 = vadd.f32 1e-05, %v3367_v0 }
 0xa83   : > { %v3364_v61 = vpop.xlane.xlu1 %3363 }
 0xa84   : > { %v3368_v51 = vmul.f32 0.0078125, %v3364_v61  ;;  %4484 = vrsqrt.f32 %v3371_v14 }
 0xa86   : > { %v3372_v8 = vadd.f32 1e-05, %v3368_v51 }
 0xa88   : > { %4486 = vrsqrt.f32 %v3372_v8 }
 0xa89   : > { %v4481_v57 = vpop.eup %4480 }
 0xa8a   : > { %v3377_v10 = vmul.f32 %v4481_v57, %v3349_v35 }
 0xa8c   : > { %v3387_v55 = vmul.f32 %v3829_v30, %v3377_v10 }
 0xa8d   : > { %v4483_v63 = vpop.eup %4482 }
 0xa8e   : > { %v3378_v60 = vmul.f32 %v4483_v63, %v3350_v40  ;;  %v3397_v12 = vadd.f32 %v3830_v47, %v3387_v55 }
 0xa90   : > { %v3388_v6 = vmul.f32 %v3829_v30, %v3378_v60 }
 0xa91   : > { %v4485_v7 = vpop.eup %4484 }
 0xa92   : > { %v3379_v16 = vmul.f32 %v4485_v7, %v3351_v59  ;;  %v3398_v18 = vadd.f32 %v3830_v47, %v3388_v6 }
 0xa94   : > { %v3389_v2 = vmul.f32 %v3829_v30, %v3379_v16  ;;  %v3881_v9 = vpack.c.bf16 %v3398_v18, %v3397_v12 }
 0xa95   : > { %v4487_v56 = vpop.eup %4486 }
 0xa96   : > { %v3380_v21 = vmul.f32 %v4487_v56, %v3352_v62  ;;  %3882 = vst [vmem:[%s4797_s2] sm:$0xff] %v3881_v9   ;;  %v3399_v19 = vadd.f32 %v3830_v47, %v3389_v2 }
 0xa98   : > { %v3390_v17 = vmul.f32 %v3829_v30, %v3380_v21 }
 0xa9a   : > { %v3400_v48 = vadd.f32 %v3830_v47, %v3390_v17 }
 0xa9c   : > { %v3886_v58 = vpack.c.bf16 %v3400_v48, %v3399_v19 }
 0xa9e   : > { %3888 = vst [vmem:[%s4797_s2 + $0x8] sm:$0xff] %v3886_v58  }
 0xa9f PF: > { %s5670_s29 = sld [smem:[#allocation12_spill]]  ;;  %p3429_p7 = scmp.ge.s32.totalorder %s4566_s16, 0 }
 0xaa0   : > { %p3431_p8 = scmp.ge.s32.totalorder %s4566_s16, 1  ;;  %s3837_s15 = sshll.u32 %s4570_s17, 2 }
 0xaa1   : > { %s3430_s13 = scalar_select %p3429_p7, 1, 0 }
 0xaa2   : > { %s3432_s30 = scalar_select %p3431_p8, 1, 0 }
 0xaa3   : > { %s3445_s27 = sshll.u32 %s4797_s2, 4  ;;  %s5672_s16 = sld [smem:[#allocation27_spill]]  ;;  %s5548_s27 = int_to_ptr.vmem [resolvable:$true] %s3445_s27 }
 0xaa4   : > { %s3433_s4 = sadd.s32 %s3432_s30, %s3430_s13  ;;  %s4488_s19 = scalar_lea.vmem %s5548_s27, 256 }
 0xaa5   : > { %s3836_s24 = sadd.s32 4294967295, %s3433_s4  ;;  %s5674_s23 = sand.u32 1, %s5670_s29  }
 0xaa6   : > { %p3435_p10 = scmp.gt.s32.totalorder %s3836_s24, 0  ;;  %s5557_s21 = scalar_lea.sflag [#allocation7], %s5674_s23 }
 0xaa7   : > { %p4489_p12 = scmp.ne.s32.totalorder %s5548_s27, %s4488_s19  ;;  %s4588_s2 = smov [#allocation6]  }
 0xaa8   : > { %s5696_s24 = smov (!%p3435_p10, %s3836_s24), 0  ;;  %s4492_s17 = sshll.u32 %s4588_s2, 4  ;;  %s4493_s17 = int_to_ptr.vmem [resolvable:$false] %s4492_s17 }
 0xaa9   : > { %s3838_s20 = sshll.u32 %s5696_s24, 3  ;;  %s5673_s26 = smov %s5672_s16 }
 0xaaa   : > { %s3442_s28 = sadd.s32 %s3838_s20, %s3837_s15  ;;  %p4490_p13 = pnand %p4489_p12, %p4722_p9 }
 0xaab   : > { %s3839_s12 = sshll.u32 %s3442_s28, 6  ;;  %s4494_s13 = scalar_lea.vmem %s4493_s17, 512 }
 0xaac   : > { %s5553_s14 = scalar_lea.hbm %s5672_s16, %s3839_s12  ;;  %p4491_p0 = pneg %p4490_p13 }
 0xaad   : > { %p4495_p1 = scmp.lt.s32.totalorder %s5548_s27, %s4493_s17  ;;  %p4496_p2 = scmp.lt.s32.totalorder %s4494_s13, %s4488_s19 }
 0xaaf   : > { %p4497_p3 = por %p4496_p2, %p4495_p1 }
 0xab1   : > { %p4498_p4 = pnand %p4497_p3, %p4491_p0 }
 0xab3   : > { %4501 = shalt.err (!%p4498_p4)
}
 0xab4   : > { %s4502_s29 = scalar_lea.hbm %s5553_s14, 256  ;;  %s4506_s24 = scalar_lea.hbm %s5673_s26, 1024 }
 0xab5   : > { %p4503_p5 = scmp.ne.s32.totalorder %s5553_s14, %s4502_s29  ;;  %p4507_p8 = scmp.lt.s32.totalorder %s5553_s14, %s5673_s26 }
 0xab6   : > { %p4508_p10 = scmp.lt.s32.totalorder %s4506_s24, %s4502_s29 }
 0xab7   : > { %p4504_p6 = pnand %p4503_p5, %p4722_p9 }
 0xab8   : > { %p4509_p12 = por %p4508_p10, %p4507_p8 }
 0xab9   : > { %p4505_p7 = pneg %p4504_p6 }
 0xabb   : > { %p4510_p13 = pnand %p4509_p12, %p4505_p7 }
 0xabd   : > { %4513 = shalt.err (!%p4510_p13)
}
 0xabe   : > { %s4589_s28 = smov 4  }
 0xabf   : > { %4110 = dma.vmem_to_hbm [thread:$0]  (%p4722_p9), %s5548_s27, 256, %s5553_s14, %s5557_s21, %s4586_s18, %s4586_s18, %s4589_s28  }
 0xac0 PF: > { %s5675_s12 = sld [smem:[#allocation16_spill]] }
 0xac1   : > { %s5676_s1 = sld [smem:[#allocation11_spill]] }
 0xac6   : > { %p4116_p0 = scmp.ge.s32.totalorder %s5675_s12, 2 }
 0xac7   : > { %s3460_s16 = sand.u32 1, %s5676_s1  }
 0xac8   : > { %p4113_p1 = pnand %p4116_p0, %p4726_p11  ;;  %s3461_s23 = scalar_lea.sflag [#allocation7], %s3460_s16 }
 0xaca   : > { %p4114_p2 = pneg %p4113_p1 }
 0xacc   : > { %4549 = dma.done.wait (%p4114_p2), %s3461_s23, 256  }
 0xacd   : > { %4551 = vsyncadd (%p4114_p2), %s3461_s23, 4294967040  ;;  %s27_s20 = sadd.s32 1, %s5675_s12   ;;  %s5678_s29 = sld [smem:[#allocation12_spill]] }
 0xace   : > { %p24_p3 = scmp.ge.s32.totalorder %s27_s20, 6   ;;  %s5679_s30 = sld [smem:[#allocation13_spill]] }
 0xacf   : > { %s5680_s15 = sld [smem:[#allocation21_spill]] }
 0xad0   : > { %s5681_s16 = sld [smem:[#allocation14_spill]]  ;;  %26 = sbr.rel (!%p24_p3) target bundleno = 12 (0xc), region = 199 }
 0xad1   : > { %s5682_s17 = sld [smem:[#allocation15_spill]] }
 0xad2   : > { %s5683_s18 = sld [smem:[#allocation17_spill]] }
 0xad3   : > { %s5684_s19 = sld [smem:[#allocation18_spill]] }
 0xad5   :  { %3466 = vsyncpa [#allocation7], 1 }
 0xad6   :  { %3468 = vsyncpa [#allocation7 + $0x1], 1 }
 0xad7   :  { %3469 = vsyncmov [#allocation5] }
 0xada   :  { %s3470_s25 = vpop.sfrf %3469 }
 0xadb   :  { %p3842_p9 = scmp.ne.s32.totalorder %s3470_s25, 0 }
 0xadd   :  { %3474 = shalt.err (%p3842_p9)  }

</bundles_post_ra>
